<compile_context>
chip_gen: v7x
topology: tpu7x:2x2x1
jax: 0.10.0
libtpu: 0.0.40
codegen_flags: <defaults>
</compile_context>

<pallas_src>
import jax
import jax.numpy as jnp
from jax.experimental import pallas as pl
from jax.experimental.pallas import tpu as pltpu


# Model dims (match the PyTorch Generator).
Z_DIM = 100
C_DIM = 10             # embedding dim == number of classes
IN_DIM = Z_DIM + C_DIM # 110 = concat([z, c])
IN_PAD = 128           # layer-1 K padded to one lane group
H1, H2, H3 = 256, 512, 1024
OUT_DIM = 784
OUT_PAD = 896          # 7 * 128 -> lane-dense output block
TB_MAX = 512           # max batch tile (amortizes ~0.35us per-grid-step cost)


def _cdiv(a, b):
    return (a + b - 1) // b


def _round_up(n, m):
    return ((n + m - 1) // m) * m


def generator_kernel(x_ref, w1_ref, b1_ref, w2_ref, b2_ref,
                     w3_ref, b3_ref, w4_ref, b4_ref, out_ref):
    """Fused MLP: 128 -> 256 -> 512 -> 1024 -> 896 (= 784 padded).

    bf16 matmul operands on the MXU with f32 accumulation; bias-add and
    LeakyReLU(0.2) stay f32; tanh result stored as bf16 (lane-dense 896 wide).
    """
    def lrelu(v):
        return jnp.maximum(v, 0.2 * v)     # single mul+max (no cmp/select)

    h = jnp.dot(x_ref[...], w1_ref[...],
                preferred_element_type=jnp.float32) + b1_ref[...]
    h = lrelu(h)

    h = jnp.dot(h.astype(jnp.bfloat16), w2_ref[...],
                preferred_element_type=jnp.float32) + b2_ref[...]
    h = lrelu(h)

    h = jnp.dot(h.astype(jnp.bfloat16), w3_ref[...],
                preferred_element_type=jnp.float32) + b3_ref[...]
    h = lrelu(h)

    h = jnp.dot(h.astype(jnp.bfloat16), w4_ref[...],
                preferred_element_type=jnp.float32) + b4_ref[...]
    out_ref[...] = jnp.tanh(h).astype(out_ref.dtype)


def prepare_params(params):
    """One-time conversion of PyTorch-shaped params into kernel layout.

    Call ONCE (not per forward): transposes (out,in)->(in,out), zero-pads W1
    to K=128 (concat folded away), casts all weights to bf16, zero-pads layer
    4 to 896 lanes, and reshapes biases to (1, out) f32.
    """
    w1t = params["w1"].T.astype(jnp.float32)                      # (110, 256)
    w1 = jnp.pad(w1t, ((0, IN_PAD - IN_DIM), (0, 0)))             # (128, 256)
    return dict(
        embed=params["embed"].astype(jnp.float32),                # (10, 10)
        w1=w1.astype(jnp.bfloat16),
        b1=params["b1"].reshape(1, -1).astype(jnp.float32),
        w2=params["w2"].T.astype(jnp.bfloat16),                   # (256, 512)
        b2=params["b2"].reshape(1, -1).astype(jnp.float32),
        w3=params["w3"].T.astype(jnp.bfloat16),                   # (512, 1024)
        b3=params["b3"].reshape(1, -1).astype(jnp.float32),
        w4=jnp.pad(params["w4"].T,
                   ((0, 0), (0, OUT_PAD - OUT_DIM))).astype(jnp.bfloat16),
        b4=jnp.pad(params["b4"],
                   (0, OUT_PAD - OUT_DIM)).reshape(1, -1).astype(jnp.float32),
    )


def generator_forward(z, labels, dp):
    """Embedding lookup (plain JAX gather) + batch-tiled fused Pallas MLP."""
    B = z.shape[0]
    # TODO(synk): nn.Embedding row gather (10x10 table) stays in plain JAX; a
    # data-dependent in-kernel DMA gather is not worth it at this size.
    c = jnp.take(dp["embed"], labels, axis=0)                     # (B, 10)

    # Batch tiling: fit tiles to the batch (minimal padding); for B >= 16 use
    # an even tile count >= 2 so both v7x TensorCores get work.
    n_tiles = _cdiv(B, TB_MAX)
    if B >= 16:
        n_tiles = max(2, n_tiles)
        n_tiles += n_tiles % 2
    TB = _round_up(_cdiv(B, n_tiles), 8)
    B_pad = n_tiles * TB

    # Fold the concat into a single lane-aligned K=128 bf16 layer-1 operand.
    x = jnp.concatenate([z.astype(jnp.float32), c], axis=1)       # (B, 110)
    x = jnp.pad(x, ((0, B_pad - B), (0, IN_PAD - IN_DIM))).astype(jnp.bfloat16)

    def row_spec(feat):
        # Streamed / pipelined per-batch-tile block.
        return pl.BlockSpec((TB, feat), lambda i: (i, 0))

    def pinned_spec(shape):
        # Same block every grid step -> never re-DMA'd, stays VMEM resident.
        return pl.BlockSpec(shape, lambda i: (0, 0))

    flops_per_row = 2 * (IN_PAD * H1 + H1 * H2 + H2 * H3 + H3 * OUT_PAD)
    weight_bytes = (2 * (IN_PAD * H1 + H1 * H2 + H2 * H3 + H3 * OUT_PAD)
                    + 4 * (H1 + H2 + H3 + OUT_PAD))
    cost = pl.CostEstimate(
        flops=B_pad * flops_per_row,
        transcendentals=B_pad * OUT_PAD,
        bytes_accessed=B_pad * (IN_PAD + OUT_PAD) * 2 + weight_bytes,
    )

    out = pl.pallas_call(
        generator_kernel,
        out_shape=jax.ShapeDtypeStruct((B_pad, OUT_PAD), jnp.bfloat16),
        grid=(n_tiles,),
        in_specs=[
            row_spec(IN_PAD),                # x = [z | embed(labels)] padded
            pinned_spec((IN_PAD, H1)),       # w1 (110 -> 128 padded)
            pinned_spec((1, H1)),            # b1
            pinned_spec((H1, H2)),           # w2
            pinned_spec((1, H2)),            # b2
            pinned_spec((H2, H3)),           # w3
            pinned_spec((1, H3)),            # b3
            pinned_spec((H3, OUT_PAD)),      # w4 (784 -> 896 padded)
            pinned_spec((1, OUT_PAD)),       # b4 (784 -> 896 padded)
        ],
        out_specs=row_spec(OUT_PAD),
        compiler_params=pltpu.CompilerParams(
            dimension_semantics=("parallel",),
            vmem_limit_bytes=48 << 20,
        ),
        cost_estimate=cost,
    )(x, dp["w1"], dp["b1"], dp["w2"], dp["b2"],
      dp["w3"], dp["b3"], dp["w4"], dp["b4"])

    return out[:B, :OUT_DIM].astype(jnp.float32)


def init_params(key):
    """Deterministic parameter init matching the PyTorch module's shapes."""
    keys = jax.random.split(key, 9)

    def linear(kw, kb, out_f, in_f):
        bound = 1.0 / jnp.sqrt(in_f)
        w = jax.random.uniform(kw, (out_f, in_f), jnp.float32, -bound, bound)
        b = jax.random.uniform(kb, (out_f,), jnp.float32, -bound, bound)
        return w, b

    embed = jax.random.normal(keys[0], (10, 10), jnp.float32)    # Embedding(10,10)
    w1, b1 = linear(keys[1], keys[2], 256, 110)
    w2, b2 = linear(keys[3], keys[4], 512, 256)
    w3, b3 = linear(keys[5], keys[6], 1024, 512)
    w4, b4 = linear(keys[7], keys[8], 784, 1024)
    return dict(embed=embed, w1=w1, b1=b1, w2=w2, b2=b2,
                w3=w3, b3=b3, w4=w4, b4=b4)


def reference_forward(z, labels, params):
    """Pure-JAX f32 reference for a correctness check."""
    c = jnp.take(params["embed"], labels, axis=0)
    x = jnp.concatenate([z, c], axis=1)

    def lrelu(v):
        return jnp.where(v > 0, v, 0.2 * v)

    h = lrelu(x @ params["w1"].T + params["b1"])
    h = lrelu(h @ params["w2"].T + params["b2"])
    h = lrelu(h @ params["w3"].T + params["b3"])
    return jnp.tanh(h @ params["w4"].T + params["b4"])


if __name__ == "__main__":
    key = jax.random.PRNGKey(0)
    k_param, k_z, k_lbl = jax.random.split(key, 3)

    params = init_params(k_param)
    dev_params = prepare_params(params)          # one-time layout conversion

    fwd = jax.jit(generator_forward)

    # B=8: single-tile smoke test.  B=24: exercises the multi-tile grid
    # (2 tiles of 16 rows) plus batch padding (24 -> 32).
    for B in (8, 24):
        z = jax.random.normal(k_z, (B, Z_DIM), jnp.float32)
        labels = jax.random.randint(k_lbl, (B,), 0, C_DIM, jnp.int32)

        out = jax.block_until_ready(fwd(z, labels, dev_params))
        ref = reference_forward(z, labels, params)

        assert out.shape == (B, OUT_DIM), out.shape
        # bf16 weights + bf16 output store (f32 accumulation) -> relaxed
        # tolerance versus the pure-f32 reference.
        assert jnp.allclose(out, ref, atol=5e-2, rtol=5e-2), \
            f"mismatch vs reference at B={B}"

    print("KERNEL_OK")
</pallas_src>

<mosaic_0001>
module attributes {stable_mosaic.version = 11 : i64} {
  func.func @generator_kernel(%arg0: i32, %arg1: memref<8x128xbf16, #tpu.memory_space<vmem>>, %arg2: memref<128x256xbf16, #tpu.memory_space<vmem>>, %arg3: memref<1x256xf32, #tpu.memory_space<vmem>>, %arg4: memref<256x512xbf16, #tpu.memory_space<vmem>>, %arg5: memref<1x512xf32, #tpu.memory_space<vmem>>, %arg6: memref<512x1024xbf16, #tpu.memory_space<vmem>>, %arg7: memref<1x1024xf32, #tpu.memory_space<vmem>>, %arg8: memref<1024x896xbf16, #tpu.memory_space<vmem>>, %arg9: memref<1x896xf32, #tpu.memory_space<vmem>>, %arg10: memref<8x896xbf16, #tpu.memory_space<vmem>>) attributes {dimension_semantics = [#tpu.dimension_semantics<parallel>], iteration_bounds = array<i64: 1>, scalar_prefetch = 0 : i64, scratch_operands = 0 : i64, tpu.core_type = #tpu.core_type<tc>, window_params = [{transform_indices = @transform_0, window_bounds = array<i64: 8, 128>}, {pipeline_mode = #tpu.pipeline_mode<synchronous>, transform_indices = @transform_1, window_bounds = array<i64: 128, 256>}, {pipeline_mode = #tpu.pipeline_mode<synchronous>, transform_indices = @transform_2, window_bounds = array<i64: 1, 256>}, {pipeline_mode = #tpu.pipeline_mode<synchronous>, transform_indices = @transform_3, window_bounds = array<i64: 256, 512>}, {pipeline_mode = #tpu.pipeline_mode<synchronous>, transform_indices = @transform_4, window_bounds = array<i64: 1, 512>}, {pipeline_mode = #tpu.pipeline_mode<synchronous>, transform_indices = @transform_5, window_bounds = array<i64: 512, 1024>}, {pipeline_mode = #tpu.pipeline_mode<synchronous>, transform_indices = @transform_6, window_bounds = array<i64: 1, 1024>}, {pipeline_mode = #tpu.pipeline_mode<synchronous>, transform_indices = @transform_7, window_bounds = array<i64: 1024, 896>}, {pipeline_mode = #tpu.pipeline_mode<synchronous>, transform_indices = @transform_8, window_bounds = array<i64: 1, 896>}, {transform_indices = @transform_9, window_bounds = array<i64: 8, 896>}]} {
    %c0 = arith.constant 0 : index
    %c0_0 = arith.constant 0 : index
    %0 = vector.load %arg1[%c0, %c0_0] : memref<8x128xbf16, #tpu.memory_space<vmem>>, vector<8x128xbf16>
    %c0_1 = arith.constant 0 : index
    %c0_2 = arith.constant 0 : index
    %1 = vector.load %arg2[%c0_1, %c0_2] : memref<128x256xbf16, #tpu.memory_space<vmem>>, vector<128x256xbf16>
    %cst = arith.constant dense<0.000000e+00> : vector<8x256xf32>
    %2 = tpu.matmul %0, %1, %cst {dimension_numbers = #tpu.dot_dimension_numbers<[1], [0], [0], [1], [0, 0, 1, 1], [], []>} : vector<8x128xbf16>, vector<128x256xbf16>, vector<8x256xf32> -> vector<8x256xf32>
    %c0_3 = arith.constant 0 : index
    %c0_4 = arith.constant 0 : index
    %3 = vector.load %arg3[%c0_3, %c0_4] : memref<1x256xf32, #tpu.memory_space<vmem>>, vector<1x256xf32>
    %4 = vector.broadcast %3 : vector<1x256xf32> to vector<8x256xf32>
    %5 = arith.addf %2, %4 : vector<8x256xf32>
    %cst_5 = arith.constant 2.000000e-01 : f32
    %6 = vector.broadcast %cst_5 : f32 to vector<8x256xf32>
    %7 = arith.mulf %6, %5 : vector<8x256xf32>
    %8 = arith.maximumf %5, %7 : vector<8x256xf32>
    %9 = arith.truncf %8 : vector<8x256xf32> to vector<8x256xbf16>
    %c0_6 = arith.constant 0 : index
    %c0_7 = arith.constant 0 : index
    %10 = vector.load %arg4[%c0_6, %c0_7] : memref<256x512xbf16, #tpu.memory_space<vmem>>, vector<256x512xbf16>
    %cst_8 = arith.constant dense<0.000000e+00> : vector<8x512xf32>
    %11 = tpu.matmul %9, %10, %cst_8 {dimension_numbers = #tpu.dot_dimension_numbers<[1], [0], [0], [1], [0, 0, 1, 1], [], []>} : vector<8x256xbf16>, vector<256x512xbf16>, vector<8x512xf32> -> vector<8x512xf32>
    %c0_9 = arith.constant 0 : index
    %c0_10 = arith.constant 0 : index
    %12 = vector.load %arg5[%c0_9, %c0_10] : memref<1x512xf32, #tpu.memory_space<vmem>>, vector<1x512xf32>
    %13 = vector.broadcast %12 : vector<1x512xf32> to vector<8x512xf32>
    %14 = arith.addf %11, %13 : vector<8x512xf32>
    %cst_11 = arith.constant 2.000000e-01 : f32
    %15 = vector.broadcast %cst_11 : f32 to vector<8x512xf32>
    %16 = arith.mulf %15, %14 : vector<8x512xf32>
    %17 = arith.maximumf %14, %16 : vector<8x512xf32>
    %18 = arith.truncf %17 : vector<8x512xf32> to vector<8x512xbf16>
    %c0_12 = arith.constant 0 : index
    %c0_13 = arith.constant 0 : index
    %19 = vector.load %arg6[%c0_12, %c0_13] : memref<512x1024xbf16, #tpu.memory_space<vmem>>, vector<512x1024xbf16>
    %cst_14 = arith.constant dense<0.000000e+00> : vector<8x1024xf32>
    %20 = tpu.matmul %18, %19, %cst_14 {dimension_numbers = #tpu.dot_dimension_numbers<[1], [0], [0], [1], [0, 0, 1, 1], [], []>} : vector<8x512xbf16>, vector<512x1024xbf16>, vector<8x1024xf32> -> vector<8x1024xf32>
    %c0_15 = arith.constant 0 : index
    %c0_16 = arith.constant 0 : index
    %21 = vector.load %arg7[%c0_15, %c0_16] : memref<1x1024xf32, #tpu.memory_space<vmem>>, vector<1x1024xf32>
    %22 = vector.broadcast %21 : vector<1x1024xf32> to vector<8x1024xf32>
    %23 = arith.addf %20, %22 : vector<8x1024xf32>
    %cst_17 = arith.constant 2.000000e-01 : f32
    %24 = vector.broadcast %cst_17 : f32 to vector<8x1024xf32>
    %25 = arith.mulf %24, %23 : vector<8x1024xf32>
    %26 = arith.maximumf %23, %25 : vector<8x1024xf32>
    %27 = arith.truncf %26 : vector<8x1024xf32> to vector<8x1024xbf16>
    %c0_18 = arith.constant 0 : index
    %c0_19 = arith.constant 0 : index
    %28 = vector.load %arg8[%c0_18, %c0_19] : memref<1024x896xbf16, #tpu.memory_space<vmem>>, vector<1024x896xbf16>
    %cst_20 = arith.constant dense<0.000000e+00> : vector<8x896xf32>
    %29 = tpu.matmul %27, %28, %cst_20 {dimension_numbers = #tpu.dot_dimension_numbers<[1], [0], [0], [1], [0, 0, 1, 1], [], []>} : vector<8x1024xbf16>, vector<1024x896xbf16>, vector<8x896xf32> -> vector<8x896xf32>
    %c0_21 = arith.constant 0 : index
    %c0_22 = arith.constant 0 : index
    %30 = vector.load %arg9[%c0_21, %c0_22] : memref<1x896xf32, #tpu.memory_space<vmem>>, vector<1x896xf32>
    %31 = vector.broadcast %30 : vector<1x896xf32> to vector<8x896xf32>
    %32 = arith.addf %29, %31 : vector<8x896xf32>
    %33 = math.tanh %32 : vector<8x896xf32>
    %34 = arith.truncf %33 : vector<8x896xf32> to vector<8x896xbf16>
    %c0_23 = arith.constant 0 : index
    %c0_24 = arith.constant 0 : index
    %35 = vector.load %arg10[%c0_23, %c0_24] : memref<8x896xbf16, #tpu.memory_space<vmem>>, vector<8x896xbf16>
    tpu.vector_store %arg10[%c0_23, %c0_24], %34 {strides = array<i32>} : memref<8x896xbf16, #tpu.memory_space<vmem>>, vector<8x896xbf16>,
    return
  }
  func.func @transform_0(%arg0: i32) -> (i32, i32) {
    %c0_i32 = arith.constant 0 : i32
    %c0_i32_0 = arith.constant 0 : i32
    return %arg0, %c0_i32 : i32, i32
  }
  func.func @transform_1(%arg0: i32) -> (i32, i32) {
    %c0_i32 = arith.constant 0 : i32
    %c0_i32_0 = arith.constant 0 : i32
    %c0_i32_1 = arith.constant 0 : i32
    return %c0_i32, %c0_i32_0 : i32, i32
  }
  func.func @transform_2(%arg0: i32) -> (i32, i32) {
    %c0_i32 = arith.constant 0 : i32
    %c0_i32_0 = arith.constant 0 : i32
    %c0_i32_1 = arith.constant 0 : i32
    return %c0_i32, %c0_i32_0 : i32, i32
  }
  func.func @transform_3(%arg0: i32) -> (i32, i32) {
    %c0_i32 = arith.constant 0 : i32
    %c0_i32_0 = arith.constant 0 : i32
    %c0_i32_1 = arith.constant 0 : i32
    return %c0_i32, %c0_i32_0 : i32, i32
  }
  func.func @transform_4(%arg0: i32) -> (i32, i32) {
    %c0_i32 = arith.constant 0 : i32
    %c0_i32_0 = arith.constant 0 : i32
    %c0_i32_1 = arith.constant 0 : i32
    return %c0_i32, %c0_i32_0 : i32, i32
  }
  func.func @transform_5(%arg0: i32) -> (i32, i32) {
    %c0_i32 = arith.constant 0 : i32
    %c0_i32_0 = arith.constant 0 : i32
    %c0_i32_1 = arith.constant 0 : i32
    return %c0_i32, %c0_i32_0 : i32, i32
  }
  func.func @transform_6(%arg0: i32) -> (i32, i32) {
    %c0_i32 = arith.constant 0 : i32
    %c0_i32_0 = arith.constant 0 : i32
    %c0_i32_1 = arith.constant 0 : i32
    return %c0_i32, %c0_i32_0 : i32, i32
  }
  func.func @transform_7(%arg0: i32) -> (i32, i32) {
    %c0_i32 = arith.constant 0 : i32
    %c0_i32_0 = arith.constant 0 : i32
    %c0_i32_1 = arith.constant 0 : i32
    return %c0_i32, %c0_i32_0 : i32, i32
  }
  func.func @transform_8(%arg0: i32) -> (i32, i32) {
    %c0_i32 = arith.constant 0 : i32
    %c0_i32_0 = arith.constant 0 : i32
    %c0_i32_1 = arith.constant 0 : i32
    return %c0_i32, %c0_i32_0 : i32, i32
  }
  func.func @transform_9(%arg0: i32) -> (i32, i32) {
    %c0_i32 = arith.constant 0 : i32
    %c0_i32_0 = arith.constant 0 : i32
    return %arg0, %c0_i32 : i32, i32
  }
}

</mosaic_0001>

<bundles_post_ra>
// kernel: generator_forward.1
= control target key start
LH: loop header
LB: loop body
LE: loop exit
PB: predicated region body
PF: predicated region fallthrough
CT: control target
= control target key end

     0   :  { %14 = vsyncpa [#allocation3], 0  ;;  %s8555_s0 = inlined_call_operand.vmem [shape: bf16[8,128], index: 0, kind: input, shape index: {}]   ;;  %s8556_s1 = inlined_call_operand.hbm [shape: bf16[128,256], index: 1, kind: input, shape index: {}]   ;;  %s8557_s2 = inlined_call_operand.hbm [shape: f32[1,256], index: 2, kind: input, shape index: {}]   ;;  %s8558_s3 = inlined_call_operand.hbm [shape: bf16[256,512], index: 3, kind: input, shape index: {}]   ;;  %s8559_s4 = inlined_call_operand.hbm [shape: f32[1,512], index: 4, kind: input, shape index: {}]   ;;  %s8560_s5 = inlined_call_operand.hbm [shape: bf16[512,1024], index: 5, kind: input, shape index: {}]   ;;  %s8561_s6 = inlined_call_operand.hbm [shape: f32[1,1024], index: 6, kind: input, shape index: {}]   ;;  %s8562_s7 = inlined_call_operand.hbm [shape: bf16[1024,896], index: 7, kind: input, shape index: {}]   ;;  %s8563_s8 = inlined_call_operand.hbm [shape: f32[1,896], index: 8, kind: input, shape index: {}]   ;;  %s8564_s9 = inlined_call_operand.vmem [shape: bf16[8,896], index: 9, kind: output, shape index: {}]  }
   0x1   :  { %15 = vsyncpa [#allocation5], 0 }
   0x2   :  { %16 = vsyncpa [#allocation8], 0 }
   0x3   :  { %17 = vsyncpa [#allocation11], 0 }
   0x4   :  { %18 = vsyncpa [#allocation14], 0  ;;  %s8197_s30 = smov [#allocation4]   ;;  %s8198_s11 = smov [#allocation7]  }
   0x5   :  { %s39_s10 = sshll.u32 %s8197_s30, 4  ;;  %s61_s12 = sshll.u32 %s8198_s11, 4  ;;  %s40_s10 = int_to_ptr.vmem [resolvable:$true] %s39_s10  ;;  %s62_s12 = int_to_ptr.vmem [resolvable:$true] %s61_s12 }
   0x6   :  { %s8011_s15 = scalar_lea.hbm %s8557_s2, 32 }
   0x7   :  { %p8012_p0 = scmp.ne.s32.totalorder %s8557_s2, %s8011_s15  ;;  %p8015_p1 = scmp.lt.u32.totalorder %s8011_s15, %s8557_s2 }
   0x9   :  { %p8017_p2 = pnand %p8015_p1, %p8012_p0 }
   0xb   :  { %8020 = shalt.err (!%p8017_p2)
}
   0xc   :  { %s8021_s20 = scalar_lea.vmem %s40_s10, 32  ;;  %p8026_p4 = scmp.lt.s32.totalorder %s40_s10, %s40_s10 }
   0xd   :  { %p8022_p3 = scmp.ne.s32.totalorder %s40_s10, %s8021_s20  ;;  %p8027_p5 = scmp.lt.s32.totalorder %s8021_s20, %s8021_s20 }
   0xf   :  { %p8028_p6 = por %p8027_p5, %p8026_p4 }
  0x11   :  { %p8029_p7 = pnand %p8028_p6, %p8022_p3 }
  0x13   :  { %8032 = shalt.err (!%p8029_p7)
}
  0x14   :  { %42 = dma.hbm_to_vmem [thread:$0]  %s8557_s2, 32, %s40_s10, [#allocation5]  }
  0x15   :  { %s8033_s25 = scalar_lea.hbm %s8559_s4, 64 }
  0x16   :  { %p8034_p8 = scmp.ne.s32.totalorder %s8559_s4, %s8033_s25  ;;  %p8037_p9 = scmp.lt.u32.totalorder %s8033_s25, %s8559_s4 }
  0x18   :  { %p8039_p10 = pnand %p8037_p9, %p8034_p8 }
  0x1a   :  { %8042 = shalt.err (!%p8039_p10)
}
  0x1b   :  { %s8043_s30 = scalar_lea.vmem %s62_s12, 64  ;;  %p8048_p12 = scmp.lt.s32.totalorder %s62_s12, %s62_s12 }
  0x1c   :  { %p8044_p11 = scmp.ne.s32.totalorder %s62_s12, %s8043_s30  ;;  %p8049_p13 = scmp.lt.s32.totalorder %s8043_s30, %s8043_s30 }
  0x1e   :  { %p8050_p0 = por %p8049_p13, %p8048_p12 }
  0x20   :  { %p8051_p1 = pnand %p8050_p0, %p8044_p11 }
  0x22   :  { %8054 = shalt.err (!%p8051_p1)
}
  0x23   :  { %64 = dma.hbm_to_vmem [thread:$0]  %s8559_s4, 64, %s62_s12, [#allocation8]  }
  0x24   :  { %s8199_s11 = smov [#allocation10]   ;;  %s8200_s14 = smov [#allocation2]  }
  0x25   :  { %s83_s13 = sshll.u32 %s8199_s11, 4  ;;  %s26_s15 = sshll.u32 %s8200_s14, 4  ;;  %s84_s13 = int_to_ptr.vmem [resolvable:$true] %s83_s13  ;;  %s8288_s15 = int_to_ptr.vmem [resolvable:$true] %s26_s15 }
  0x26   :  { %s8055_s18 = scalar_lea.hbm %s8561_s6, 128 }
  0x27   :  { %p8056_p2 = scmp.ne.s32.totalorder %s8561_s6, %s8055_s18  ;;  %p8059_p3 = scmp.lt.u32.totalorder %s8055_s18, %s8561_s6 }
  0x29   :  { %p8061_p4 = pnand %p8059_p3, %p8056_p2 }
  0x2b   :  { %8064 = shalt.err (!%p8061_p4)
}
  0x2c   :  { %s8065_s4 = scalar_lea.vmem %s84_s13, 128  ;;  %p8070_p6 = scmp.lt.s32.totalorder %s84_s13, %s84_s13 }
  0x2d   :  { %p8066_p5 = scmp.ne.s32.totalorder %s84_s13, %s8065_s4  ;;  %p8071_p7 = scmp.lt.s32.totalorder %s8065_s4, %s8065_s4 }
  0x2f   :  { %p8072_p8 = por %p8071_p7, %p8070_p6 }
  0x31   :  { %p8073_p9 = pnand %p8072_p8, %p8066_p5 }
  0x33   :  { %8076 = shalt.err (!%p8073_p9)
}
  0x34   :  { %86 = dma.hbm_to_vmem [thread:$0]  %s8561_s6, 128, %s84_s13, [#allocation11]  }
  0x35   :  { %s8077_s26 = scalar_lea.hbm %s8556_s1, 2048 }
  0x36   :  { %p8078_p10 = scmp.ne.s32.totalorder %s8556_s1, %s8077_s26  ;;  %p8081_p11 = scmp.lt.u32.totalorder %s8077_s26, %s8556_s1 }
  0x38   :  { %p8083_p12 = pnand %p8081_p11, %p8078_p10 }
  0x3a   :  { %8086 = shalt.err (!%p8083_p12)
}
  0x3b   :  { %s8087_s2 = scalar_lea.vmem %s8288_s15, 2048  ;;  %p8092_p0 = scmp.lt.s32.totalorder %s8288_s15, %s8288_s15 }
  0x3c   :  { %p8088_p13 = scmp.ne.s32.totalorder %s8288_s15, %s8087_s2  ;;  %p8093_p1 = scmp.lt.s32.totalorder %s8087_s2, %s8087_s2 }
  0x3e   :  { %p8094_p2 = por %p8093_p1, %p8092_p0 }
  0x40   :  { %p8095_p3 = pnand %p8094_p2, %p8088_p13 }
  0x42   :  { %8098 = shalt.err (!%p8095_p3)
}
  0x43   :  { %s8201_s6 = smov 128   ;;  %s8202_s10 = smov 8  }
  0x44   :  { %32 = dma.hbm_to_vmem [thread:$0]  %s8556_s1, 2048, %s8288_s15, [#allocation3], %s8201_s6, %s8201_s6, %s8202_s10  }
  0x45   :  { %s8203_s14 = smov [#allocation6]   ;;  %s8099_s19 = scalar_lea.hbm %s8558_s3, 8192 }
  0x46   :  { %s48_s16 = sshll.u32 %s8203_s14, 4  ;;  %p8100_p4 = scmp.ne.s32.totalorder %s8558_s3, %s8099_s19  ;;  %s49_s16 = int_to_ptr.vmem [resolvable:$true] %s48_s16 }
  0x47   :  { %p8103_p5 = scmp.lt.u32.totalorder %s8099_s19, %s8558_s3 }
  0x49   :  { %p8105_p6 = pnand %p8103_p5, %p8100_p4 }
  0x4b   :  { %8108 = shalt.err (!%p8105_p6)
}
  0x4c   :  { %s8109_s12 = scalar_lea.vmem %s49_s16, 8192  ;;  %p8114_p8 = scmp.lt.s32.totalorder %s49_s16, %s49_s16 }
  0x4d   :  { %p8110_p7 = scmp.ne.s32.totalorder %s49_s16, %s8109_s12  ;;  %p8115_p9 = scmp.lt.s32.totalorder %s8109_s12, %s8109_s12 }
  0x4f   :  { %p8116_p10 = por %p8115_p9, %p8114_p8 }
  0x51   :  { %p8117_p11 = pnand %p8116_p10, %p8110_p7 }
  0x53   :  { %8120 = shalt.err (!%p8117_p11)
}
  0x54   :  { %s8204_s1 = smov 256   ;;  %s8205_s15 = smov 16  }
  0x55   :  { %54 = dma.hbm_to_vmem [thread:$0]  %s8558_s3, 8192, %s49_s16, [#allocation5], %s8204_s1, %s8204_s1, %s8205_s15  }
  0x56   :  { %s8206_s25 = smov [#allocation9]   ;;  %s8121_s29 = scalar_lea.hbm %s8560_s5, 32768 }
  0x57   :  { %s70_s26 = sshll.u32 %s8206_s25, 4  ;;  %p8122_p12 = scmp.ne.s32.totalorder %s8560_s5, %s8121_s29  ;;  %s71_s26 = int_to_ptr.vmem [resolvable:$true] %s70_s26 }
  0x58   :  { %p8125_p13 = scmp.lt.u32.totalorder %s8121_s29, %s8560_s5 }
  0x5a   :  { %p8127_p0 = pnand %p8125_p13, %p8122_p12 }
  0x5c   :  { %8130 = shalt.err (!%p8127_p0)
}
  0x5d   :  { %s8131_s11 = scalar_lea.vmem %s71_s26, 32768  ;;  %p8136_p2 = scmp.lt.s32.totalorder %s71_s26, %s71_s26 }
  0x5e   :  { %p8132_p1 = scmp.ne.s32.totalorder %s71_s26, %s8131_s11  ;;  %p8137_p3 = scmp.lt.s32.totalorder %s8131_s11, %s8131_s11 }
  0x60   :  { %p8138_p4 = por %p8137_p3, %p8136_p2 }
  0x62   :  { %p8139_p5 = pnand %p8138_p4, %p8132_p1 }
  0x64   :  { %8142 = shalt.err (!%p8139_p5)
}
  0x65   :  { %s8207_s3 = smov 512   ;;  %s8208_s13 = smov 32  }
  0x66   :  { %76 = dma.hbm_to_vmem [thread:$0]  %s8560_s5, 32768, %s71_s26, [#allocation8], %s8207_s3, %s8207_s3, %s8208_s13  }
  0x67   :  { %s8209_s17 = smov [#allocation12]   ;;  %s8143_s21 = scalar_lea.hbm %s8562_s7, 57344 }
  0x68   :  { %s92_s18 = sshll.u32 %s8209_s17, 4  ;;  %p8144_p6 = scmp.ne.s32.totalorder %s8562_s7, %s8143_s21  ;;  %s93_s18 = int_to_ptr.vmem [resolvable:$true] %s92_s18 }
  0x69   :  { %p8147_p7 = scmp.lt.u32.totalorder %s8143_s21, %s8562_s7 }
  0x6b   :  { %p8149_p8 = pnand %p8147_p7, %p8144_p6 }
  0x6d   :  { %8152 = shalt.err (!%p8149_p8)
}
  0x6e   :  { %s8153_s15 = scalar_lea.vmem %s93_s18, 57344  ;;  %p8158_p10 = scmp.lt.s32.totalorder %s93_s18, %s93_s18 }
  0x6f   :  { %p8154_p9 = scmp.ne.s32.totalorder %s93_s18, %s8153_s15  ;;  %p8159_p11 = scmp.lt.s32.totalorder %s8153_s15, %s8153_s15 }
  0x71   :  { %p8160_p12 = por %p8159_p11, %p8158_p10 }
  0x73   :  { %p8161_p13 = pnand %p8160_p12, %p8154_p9 }
  0x75   :  { %8164 = shalt.err (!%p8161_p13)
}
  0x76   :  { %s8210_s5 = smov 448   ;;  %s8211_s23 = smov 28  }
  0x77   :  { %98 = dma.hbm_to_vmem [thread:$0]  %s8562_s7, 57344, %s93_s18, [#allocation11], %s8210_s5, %s8210_s5, %s8211_s23  }
  0x78   :  { %s8212_s26 = smov [#allocation13]   ;;  %s8165_s30 = scalar_lea.hbm %s8563_s8, 112 }
  0x79   :  { %s105_s27 = sshll.u32 %s8212_s26, 4  ;;  %p8166_p0 = scmp.ne.s32.totalorder %s8563_s8, %s8165_s30  ;;  %s106_s27 = int_to_ptr.vmem [resolvable:$true] %s105_s27 }
  0x7a   :  { %p8169_p1 = scmp.lt.u32.totalorder %s8165_s30, %s8563_s8 }
  0x7c   :  { %p8171_p2 = pnand %p8169_p1, %p8166_p0 }
  0x7e   :  { %8174 = shalt.err (!%p8171_p2)
}
  0x7f   :  { %s8175_s3 = scalar_lea.vmem %s106_s27, 112  ;;  %s8179_s7 = scalar_lea.vmem %s106_s27, 128 }
  0x80   :  { %p8176_p3 = scmp.ne.s32.totalorder %s106_s27, %s8175_s3  ;;  %p8180_p4 = scmp.lt.s32.totalorder %s106_s27, %s106_s27 }
  0x81   :  { %p8181_p5 = scmp.lt.s32.totalorder %s8179_s7, %s8175_s3 }
  0x83   :  { %p8182_p6 = por %p8181_p5, %p8180_p4 }
  0x85   :  { %p8183_p7 = pnand %p8182_p6, %p8176_p3 }
  0x87   :  { %8186 = shalt.err (!%p8183_p7)
}
  0x88   :  { %108 = dma.hbm_to_vmem [thread:$0]  %s8563_s8, 112, %s106_s27, [#allocation14]  }
  0x89   :  { %8187 = dma.done.wait [#allocation3], 2048  }
  0x8a   :  { %8188 = vsyncadd [#allocation3], 4294965248 }
  0x8b   :  { %8189 = dma.done.wait [#allocation5], 8224  }
  0x8c   :  { %8190 = vsyncadd [#allocation5], 4294959072 }
  0x8d   :  { %8191 = dma.done.wait [#allocation8], 32832  }
  0x8e   :  { %8192 = vsyncadd [#allocation8], 4294934464 }
  0x8f   :  { %8193 = dma.done.wait [#allocation11], 57472  }
  0x90   :  { %8194 = vsyncadd [#allocation11], 4294909824 }
  0x91   :  { %8195 = dma.done.wait [#allocation14], 112  }
  0x92   :  { %8196 = vsyncadd [#allocation14], 4294967184  ;;  %v8213_v0 = vmov 0   ;;  %v7237_v1 = vld [vmem:[#allocation2 + $0x4] ss:$8 sps:$4 sm:$0xff]  }
  0x93   :  { %275 = vmatprep.mubr.bf16.mxu0 %v8213_v0  ;;  %v7239_v2 = vld [vmem:[#allocation2] ss:$8 sps:$4 sm:$0xff]   ;;  %243 = vmatprep.subr.bf16.mxu0 %v7237_v1  ;;  %v7240_v3 = vld [vmem:[#allocation2 + $0x14] ss:$8 sps:$4 sm:$0xff]   ;;  %v7242_v4 = vld [vmem:[#allocation2 + $0x10] ss:$8 sps:$4 sm:$0xff]  }
  0x94   :  { %244 = vmatpush1.bf16.msra.mxu0 %v7239_v2  ;;  %v7243_v5 = vld [vmem:[#allocation2 + $0x24] ss:$8 sps:$4 sm:$0xff]   ;;  %v7245_v6 = vld [vmem:[#allocation2 + $0x20] ss:$8 sps:$4 sm:$0xff]   ;;  %v7246_v7 = vld [vmem:[#allocation2 + $0x34] ss:$8 sps:$4 sm:$0xff]  }
  0x95   :  { %245 = vmatprep.subr.bf16.mxu0 %v7240_v3  ;;  %v7248_v8 = vld [vmem:[#allocation2 + $0x30] ss:$8 sps:$4 sm:$0xff]   ;;  %v7249_v9 = vld [vmem:[#allocation2 + $0x44] ss:$8 sps:$4 sm:$0xff]   ;;  %v7251_v10 = vld [vmem:[#allocation2 + $0x40] ss:$8 sps:$4 sm:$0xff]  }
  0x96   :  { %v7252_v11 = vld [vmem:[#allocation2 + $0x54] ss:$8 sps:$4 sm:$0xff]   ;;  %v7254_v12 = vld [vmem:[#allocation2 + $0x50] ss:$8 sps:$4 sm:$0xff]   ;;  %v7255_v13 = vld [vmem:[#allocation2 + $0x64] ss:$8 sps:$4 sm:$0xff]  }
  0x97   :  { %v7257_v14 = vld [vmem:[#allocation2 + $0x60] ss:$8 sps:$4 sm:$0xff]   ;;  %v7258_v15 = vld [vmem:[#allocation2 + $0x74] ss:$8 sps:$4 sm:$0xff]   ;;  %v7260_v16 = vld [vmem:[#allocation2 + $0x70] ss:$8 sps:$4 sm:$0xff]  }
  0x98   :  { %246 = vmatpush1.bf16.msra.mxu0 %v7242_v4  ;;  %v7263_v17 = vld [vmem:[#allocation6 + $0x4] ss:$16 sps:$4 sm:$0xff]   ;;  %v134_v18 = vld [vmem:[%s8555_s0] sm:$0xf] }
  0x99   :  { %247 = vmatprep.subr.bf16.mxu0 %v7243_v5  ;;  %v7261_v19 = vld [vmem:[#allocation6] ss:$16 sps:$4 sm:$0xff]   ;;  %v7266_v20 = vld [vmem:[#allocation6 + $0x24] ss:$16 sps:$4 sm:$0xff]   ;;  %v7311_v50 = vld [vmem:[#allocation6 + $0xc] ss:$16 sps:$4 sm:$0xff]  }
  0x9a   :  { %v7264_v21 = vld [vmem:[#allocation6 + $0x20] ss:$16 sps:$4 sm:$0xff]   ;;  %v7269_v22 = vld [vmem:[#allocation6 + $0x44] ss:$16 sps:$4 sm:$0xff]  }
  0x9b   :  { %v7267_v23 = vld [vmem:[#allocation6 + $0x40] ss:$16 sps:$4 sm:$0xff]   ;;  %v7272_v24 = vld [vmem:[#allocation6 + $0x64] ss:$16 sps:$4 sm:$0xff]  }
  0x9c   :  { %248 = vmatpush1.bf16.msra.mxu0 %v7245_v6  ;;  %v7270_v25 = vld [vmem:[#allocation6 + $0x60] ss:$16 sps:$4 sm:$0xff]   ;;  %v7275_v26 = vld [vmem:[#allocation6 + $0x84] ss:$16 sps:$4 sm:$0xff]  }
  0x9d   :  { %249 = vmatprep.subr.bf16.mxu0 %v7246_v7  ;;  %v7273_v27 = vld [vmem:[#allocation6 + $0x80] ss:$16 sps:$4 sm:$0xff]   ;;  %v7278_v28 = vld [vmem:[#allocation6 + $0xa4] ss:$16 sps:$4 sm:$0xff]  }
  0x9e   :  { %v7276_v29 = vld [vmem:[#allocation6 + $0xa0] ss:$16 sps:$4 sm:$0xff]   ;;  %v7281_v30 = vld [vmem:[#allocation6 + $0xc4] ss:$16 sps:$4 sm:$0xff]  }
  0x9f   :  { %v7279_v31 = vld [vmem:[#allocation6 + $0xc0] ss:$16 sps:$4 sm:$0xff]   ;;  %v7284_v32 = vld [vmem:[#allocation6 + $0xe4] ss:$16 sps:$4 sm:$0xff]  }
  0xa0   :  { %250 = vmatpush1.bf16.msra.mxu0 %v7248_v8  ;;  %v7282_v33 = vld [vmem:[#allocation6 + $0xe0] ss:$16 sps:$4 sm:$0xff]   ;;  %v7287_v34 = vld [vmem:[#allocation6 + $0x104] ss:$16 sps:$4 sm:$0xff]  }
  0xa1   :  { %251 = vmatprep.subr.bf16.mxu0 %v7249_v9  ;;  %v7285_v35 = vld [vmem:[#allocation6 + $0x100] ss:$16 sps:$4 sm:$0xff]   ;;  %v7290_v36 = vld [vmem:[#allocation6 + $0x124] ss:$16 sps:$4 sm:$0xff]  }
  0xa2   :  { %v7288_v37 = vld [vmem:[#allocation6 + $0x120] ss:$16 sps:$4 sm:$0xff]   ;;  %v7293_v38 = vld [vmem:[#allocation6 + $0x144] ss:$16 sps:$4 sm:$0xff]  }
  0xa3   :  { %v7291_v39 = vld [vmem:[#allocation6 + $0x140] ss:$16 sps:$4 sm:$0xff]   ;;  %v7296_v40 = vld [vmem:[#allocation6 + $0x164] ss:$16 sps:$4 sm:$0xff]  }
  0xa4   :  { %252 = vmatpush1.bf16.msra.mxu0 %v7251_v10  ;;  %v7294_v41 = vld [vmem:[#allocation6 + $0x160] ss:$16 sps:$4 sm:$0xff]   ;;  %v7299_v42 = vld [vmem:[#allocation6 + $0x184] ss:$16 sps:$4 sm:$0xff]  }
  0xa5   :  { %253 = vmatprep.subr.bf16.mxu0 %v7252_v11  ;;  %v7297_v43 = vld [vmem:[#allocation6 + $0x180] ss:$16 sps:$4 sm:$0xff]   ;;  %v7302_v44 = vld [vmem:[#allocation6 + $0x1a4] ss:$16 sps:$4 sm:$0xff]  }
  0xa6   :  { %v7300_v45 = vld [vmem:[#allocation6 + $0x1a0] ss:$16 sps:$4 sm:$0xff]   ;;  %v7305_v46 = vld [vmem:[#allocation6 + $0x1c4] ss:$16 sps:$4 sm:$0xff]  }
  0xa7   :  { %v7303_v47 = vld [vmem:[#allocation6 + $0x1c0] ss:$16 sps:$4 sm:$0xff]   ;;  %v7308_v48 = vld [vmem:[#allocation6 + $0x1e4] ss:$16 sps:$4 sm:$0xff]  }
  0xa8   :  { %254 = vmatpush1.bf16.msra.mxu0 %v7254_v12  ;;  %v7306_v49 = vld [vmem:[#allocation6 + $0x1e0] ss:$16 sps:$4 sm:$0xff]   ;;  %v790_v51 = vld [vmem:[#allocation9] sm:$0xff] }
  0xa9   :  { %255 = vmatprep.subr.bf16.mxu0 %v7255_v13  ;;  %v794_v52 = vld [vmem:[#allocation9 + $0x20] sm:$0xff] }
  0xaa   :  { %v6355_v53 = vcombine.high %v790_v51, %v794_v52  ;;  %v6354_v54 = vcombine.low %v790_v51, %v794_v52  ;;  %v798_v55 = vld [vmem:[#allocation9 + $0x40] sm:$0xff] }
  0xab   :  { %v802_v56 = vld [vmem:[#allocation9 + $0x60] sm:$0xff] }
  0xac   :  { %256 = vmatpush1.bf16.msra.mxu0 %v7257_v14  ;;  %v6363_v57 = vcombine.high %v798_v55, %v802_v56  ;;  %2368 = vmatprep.subr.bf16.mxu1 %v6355_v53  ;;  %v6362_v58 = vcombine.low %v798_v55, %v802_v56  ;;  %v806_v59 = vld [vmem:[#allocation9 + $0x80] sm:$0xff] }
  0xad   :  { %257 = vmatprep.subr.bf16.mxu0 %v7258_v15  ;;  %2369 = vmatpush1.bf16.msra.mxu1 %v6354_v54  ;;  %v810_v60 = vld [vmem:[#allocation9 + $0xa0] sm:$0xff] }
  0xae   :  { %2370 = vmatprep.subr.bf16.mxu1 %v6363_v57  ;;  %v6371_v61 = vcombine.high %v806_v59, %v810_v60  ;;  %v6370_v62 = vcombine.low %v806_v59, %v810_v60  ;;  %v814_v63 = vld [vmem:[#allocation9 + $0xc0] sm:$0xff] }
  0xaf   :  { %v818_v0 = vld [vmem:[#allocation9 + $0xe0] sm:$0xff] }
  0xb0   :  { %258 = vmatpush1.bf16.msra.mxu0 %v7260_v16  ;;  %v6379_v1 = vcombine.high %v814_v63, %v818_v0  ;;  %v6378_v2 = vcombine.low %v814_v63, %v818_v0  ;;  %v822_v3 = vld [vmem:[#allocation9 + $0x100] sm:$0xff]  ;;  %v7314_v63 = vld [vmem:[#allocation6 + $0x2c] ss:$16 sps:$4 sm:$0xff]  }
  0xb1   :  { %696 = vmatprep.subr.bf16.mxu0 %v7263_v17  ;;  %2371 = vmatpush1.bf16.msra.mxu1 %v6362_v58  ;;  %v826_v4 = vld [vmem:[#allocation9 + $0x120] sm:$0xff] }
  0xb2   :  { %2372 = vmatprep.subr.bf16.mxu1 %v6371_v61  ;;  %v6387_v5 = vcombine.high %v822_v3, %v826_v4  ;;  %v6386_v6 = vcombine.low %v822_v3, %v826_v4  ;;  %v830_v7 = vld [vmem:[#allocation9 + $0x140] sm:$0xff]  ;;  %v7320_v3 = vld [vmem:[#allocation6 + $0x6c] ss:$16 sps:$4 sm:$0xff]  }
  0xb3   :  { %276 = vmatmul.mubr.bf16.vlgmr.msra.gmra.mrb[0].mxu0 %v134_v18  ;;  %v834_v8 = vld [vmem:[#allocation9 + $0x160] sm:$0xff] }
  0xb4   :  { %697 = vmatpush1.bf16.msra.mxu0 %v7261_v19  ;;  %v6395_v9 = vcombine.high %v830_v7, %v834_v8  ;;  %v6394_v10 = vcombine.low %v830_v7, %v834_v8  ;;  %v838_v11 = vld [vmem:[#allocation9 + $0x180] sm:$0xff]  ;;  %v7326_v7 = vld [vmem:[#allocation6 + $0xac] ss:$16 sps:$4 sm:$0xff]  }
  0xb5   :  { %698 = vmatprep.subr.bf16.mxu0 %v7266_v20  ;;  %2373 = vmatpush1.bf16.msra.mxu1 %v6370_v62  ;;  %v842_v12 = vld [vmem:[#allocation9 + $0x1a0] sm:$0xff] }
  0xb6   :  { %2374 = vmatprep.subr.bf16.mxu1 %v6379_v1  ;;  %v6403_v13 = vcombine.high %v838_v11, %v842_v12  ;;  %v6402_v14 = vcombine.low %v838_v11, %v842_v12  ;;  %v846_v15 = vld [vmem:[#allocation9 + $0x1c0] sm:$0xff]  ;;  %v7317_v1 = vld [vmem:[#allocation6 + $0x4c] ss:$16 sps:$4 sm:$0xff]  }
  0xb7   :  { %v850_v16 = vld [vmem:[#allocation9 + $0x1e0] sm:$0xff]  ;;  %v7332_v11 = vld [vmem:[#allocation6 + $0xec] ss:$16 sps:$4 sm:$0xff]  }
  0xb8   :  { %699 = vmatpush1.bf16.msra.mxu0 %v7264_v21  ;;  %v6411_v17 = vcombine.high %v846_v15, %v850_v16  ;;  %v6410_v18 = vcombine.low %v846_v15, %v850_v16  ;;  %v854_v19 = vld [vmem:[#allocation9 + $0x200] sm:$0xff]  ;;  %v7338_v15 = vld [vmem:[#allocation6 + $0x12c] ss:$16 sps:$4 sm:$0xff]  }
  0xb9   :  { %700 = vmatprep.subr.bf16.mxu0 %v7269_v22  ;;  %2375 = vmatpush1.bf16.msra.mxu1 %v6378_v2  ;;  %v858_v20 = vld [vmem:[#allocation9 + $0x220] sm:$0xff] }
  0xba   :  { %2376 = vmatprep.subr.bf16.mxu1 %v6387_v5  ;;  %v6419_v21 = vcombine.high %v854_v19, %v858_v20  ;;  %v6418_v22 = vcombine.low %v854_v19, %v858_v20  ;;  %v7309_v61 = vld [vmem:[#allocation6 + $0x8] ss:$16 sps:$4 sm:$0xff]   ;;  %v7323_v5 = vld [vmem:[#allocation6 + $0x8c] ss:$16 sps:$4 sm:$0xff]  }
  0xbb   :  { %v7312_v0 = vld [vmem:[#allocation6 + $0x28] ss:$16 sps:$4 sm:$0xff]   ;;  %v7344_v19 = vld [vmem:[#allocation6 + $0x16c] ss:$16 sps:$4 sm:$0xff]  }
  0xbc   :  { %701 = vmatpush1.bf16.msra.mxu0 %v7267_v23  ;;  %v862_v23 = vld [vmem:[#allocation9 + $0x240] sm:$0xff] }
  0xbd   :  { %702 = vmatprep.subr.bf16.mxu0 %v7272_v24  ;;  %2377 = vmatpush1.bf16.msra.mxu1 %v6386_v6  ;;  %v866_v24 = vld [vmem:[#allocation9 + $0x260] sm:$0xff] }
  0xbe   :  { %2378 = vmatprep.subr.bf16.mxu1 %v6395_v9  ;;  %v7315_v2 = vld [vmem:[#allocation6 + $0x48] ss:$16 sps:$4 sm:$0xff]   ;;  %v7329_v9 = vld [vmem:[#allocation6 + $0xcc] ss:$16 sps:$4 sm:$0xff]  }
  0xbf   :  { %v7318_v4 = vld [vmem:[#allocation6 + $0x68] ss:$16 sps:$4 sm:$0xff]  }
  0xc0   :  { %703 = vmatpush1.bf16.msra.mxu0 %v7270_v25  ;;  %v6427_v25 = vcombine.high %v862_v23, %v866_v24  ;;  %v7321_v6 = vld [vmem:[#allocation6 + $0x88] ss:$16 sps:$4 sm:$0xff]  }
  0xc1   :  { %704 = vmatprep.subr.bf16.mxu0 %v7275_v26  ;;  %2379 = vmatpush1.bf16.msra.mxu1 %v6394_v10  ;;  %v6426_v26 = vcombine.low %v862_v23, %v866_v24  ;;  %v7324_v8 = vld [vmem:[#allocation6 + $0xa8] ss:$16 sps:$4 sm:$0xff]   ;;  %v7350_v23 = vld [vmem:[#allocation6 + $0x1ac] ss:$16 sps:$4 sm:$0xff]  }
  0xc2   :  { %2380 = vmatprep.subr.bf16.mxu1 %v6403_v13  ;;  %v7327_v10 = vld [vmem:[#allocation6 + $0xc8] ss:$16 sps:$4 sm:$0xff]   ;;  %v7335_v13 = vld [vmem:[#allocation6 + $0x10c] ss:$16 sps:$4 sm:$0xff]  }
  0xc3   :  { %v7330_v12 = vld [vmem:[#allocation6 + $0xe8] ss:$16 sps:$4 sm:$0xff]  }
  0xc4   :  { %705 = vmatpush1.bf16.msra.mxu0 %v7273_v27  ;;  %v870_v27 = vld [vmem:[#allocation9 + $0x280] sm:$0xff] }
  0xc5   :  { %706 = vmatprep.subr.bf16.mxu0 %v7278_v28  ;;  %2381 = vmatpush1.bf16.msra.mxu1 %v6402_v14  ;;  %v874_v28 = vld [vmem:[#allocation9 + $0x2a0] sm:$0xff] }
  0xc6   :  { %2382 = vmatprep.subr.bf16.mxu1 %v6411_v17  ;;  %v7333_v14 = vld [vmem:[#allocation6 + $0x108] ss:$16 sps:$4 sm:$0xff]   ;;  %v7341_v17 = vld [vmem:[#allocation6 + $0x14c] ss:$16 sps:$4 sm:$0xff]  }
  0xc7   :  { %v7336_v16 = vld [vmem:[#allocation6 + $0x128] ss:$16 sps:$4 sm:$0xff]  }
  0xc8   :  { %707 = vmatpush1.bf16.msra.mxu0 %v7276_v29  ;;  %v153_v29 = vlaneseq  ;;  %v7342_v20 = vld [vmem:[#allocation6 + $0x168] ss:$16 sps:$4 sm:$0xff]  }
  0xc9   :  { %708 = vmatprep.subr.bf16.mxu0 %v7281_v30  ;;  %2383 = vmatpush1.bf16.msra.mxu1 %v6410_v18  ;;  %v6435_v30 = vcombine.high %v870_v27, %v874_v28  ;;  %v7339_v18 = vld [vmem:[#allocation6 + $0x148] ss:$16 sps:$4 sm:$0xff]  }
  0xca   :  { %2384 = vmatprep.subr.bf16.mxu1 %v6419_v21  ;;  %v7347_v21 = vld [vmem:[#allocation6 + $0x18c] ss:$16 sps:$4 sm:$0xff]   ;;  %v7348_v24 = vld [vmem:[#allocation6 + $0x1a8] ss:$16 sps:$4 sm:$0xff]  }
  0xcc   :  { %709 = vmatpush1.bf16.msra.mxu0 %v7279_v31  ;;  %v6434_v31 = vcombine.low %v870_v27, %v874_v28  ;;  %v7356_v27 = vld [vmem:[#allocation6 + $0x1ec] ss:$16 sps:$4 sm:$0xff]  }
  0xcd   :  { %710 = vmatprep.subr.bf16.mxu0 %v7284_v32  ;;  %2385 = vmatpush1.bf16.msra.mxu1 %v6418_v22  ;;  %v878_v32 = vld [vmem:[#allocation9 + $0x2c0] sm:$0xff]  ;;  %v791_v28 = vld [vmem:[#allocation9 + $0x8] sm:$0xff] }
  0xce   :  { %2386 = vmatprep.subr.bf16.mxu1 %v6427_v25  ;;  %v7345_v22 = vld [vmem:[#allocation6 + $0x188] ss:$16 sps:$4 sm:$0xff]   ;;  %v7353_v25 = vld [vmem:[#allocation6 + $0x1cc] ss:$16 sps:$4 sm:$0xff]  }
  0xd0   :  { %711 = vmatpush1.bf16.msra.mxu0 %v7282_v33  ;;  %v882_v33 = vld [vmem:[#allocation9 + $0x2e0] sm:$0xff] }
  0xd1   :  { %712 = vmatprep.subr.bf16.mxu0 %v7287_v34  ;;  %2387 = vmatpush1.bf16.msra.mxu1 %v6426_v26  ;;  %v8370_v34 = vshrl.u32 %v153_v29, 7  ;;  %v7351_v26 = vld [vmem:[#allocation6 + $0x1c8] ss:$16 sps:$4 sm:$0xff]   ;;  %v795_v29 = vld [vmem:[#allocation9 + $0x28] sm:$0xff] }
  0xd2   :  { %2388 = vmatprep.subr.bf16.mxu1 %v6435_v30  ;;  %v7354_v30 = vld [vmem:[#allocation6 + $0x1e8] ss:$16 sps:$4 sm:$0xff]  }
  0xd4   :  { %713 = vmatpush1.bf16.msra.mxu0 %v7285_v35  ;;  %v6443_v35 = vcombine.high %v878_v32, %v882_v33 }
  0xd5   :  { %714 = vmatprep.subr.bf16.mxu0 %v7290_v36  ;;  %2389 = vmatpush1.bf16.msra.mxu1 %v6434_v31  ;;  %v6442_v36 = vcombine.low %v878_v32, %v882_v33  ;;  %v6357_v31 = vcombine.high %v791_v28, %v795_v29  ;;  %v799_v32 = vld [vmem:[#allocation9 + $0x48] sm:$0xff] }
  0xd6   :  { %2390 = vmatprep.subr.bf16.mxu1 %v6443_v35  ;;  %v803_v33 = vld [vmem:[#allocation9 + $0x68] sm:$0xff]  ;;  %v6356_v35 = vcombine.low %v791_v28, %v795_v29 }
  0xd8   :  { %715 = vmatpush1.bf16.msra.mxu0 %v7288_v37  ;;  %v886_v37 = vld [vmem:[#allocation9 + $0x300] sm:$0xff] }
  0xd9   :  { %716 = vmatprep.subr.bf16.mxu0 %v7293_v38  ;;  %v890_v38 = vld [vmem:[#allocation9 + $0x320] sm:$0xff]  ;;  %2391 = vmatpush1.bf16.msra.mxu1 %v6442_v36  ;;  %v6365_v36 = vcombine.high %v799_v32, %v803_v33 }
  0xdc   :  { %717 = vmatpush1.bf16.msra.mxu0 %v7291_v39  ;;  %v151_v39 = vld [vmem:[#allocation4] sm:$0x3] }
  0xdd   :  { %718 = vmatprep.subr.bf16.mxu0 %v7296_v40  ;;  %v8373_v40 = vsub.s32 0, %v8370_v34 }
  0xe0   :  { %719 = vmatpush1.bf16.msra.mxu0 %v7294_v41  ;;  %v6451_v41 = vcombine.high %v886_v37, %v890_v38 }
  0xe1   :  { %720 = vmatprep.subr.bf16.mxu0 %v7299_v42  ;;  %v8376_v42 = vsub.s32 1, %v8370_v34 }
  0xe2   :  { %2392 = vmatprep.subr.bf16.mxu1 %v6451_v41 }
  0xe4   :  { %721 = vmatpush1.bf16.msra.mxu0 %v7297_v43  ;;  %v6450_v43 = vcombine.low %v886_v37, %v890_v38  ;;  %v807_v37 = vld [vmem:[#allocation9 + $0x88] sm:$0xff] }
  0xe5   :  { %722 = vmatprep.subr.bf16.mxu0 %v7302_v44  ;;  %v894_v44 = vld [vmem:[#allocation9 + $0x340] sm:$0xff]  ;;  %v811_v38 = vld [vmem:[#allocation9 + $0xa8] sm:$0xff] }
  0xe6   :  { %2393 = vmatpush1.bf16.msra.mxu1 %v6450_v43  ;;  %v6373_v41 = vcombine.high %v807_v37, %v811_v38  ;;  %v815_v43 = vld [vmem:[#allocation9 + $0xc8] sm:$0xff] }
  0xe8   :  { %723 = vmatpush1.bf16.msra.mxu0 %v7300_v45  ;;  %v898_v45 = vld [vmem:[#allocation9 + $0x360] sm:$0xff] }
  0xe9   :  { %724 = vmatprep.subr.bf16.mxu0 %v7305_v46  ;;  %v156_v46 = vrot.slane %v151_v39, %v8373_v40 }
  0xec   :  { %725 = vmatpush1.bf16.msra.mxu0 %v7303_v47  ;;  %v6459_v47 = vcombine.high %v894_v44, %v898_v45 }
  0xed   :  { %726 = vmatprep.subr.bf16.mxu0 %v7308_v48  ;;  %v160_v48 = vrot.slane %v151_v39, %v8376_v42  ;;  %v6364_v39 = vcombine.low %v799_v32, %v803_v33 }
  0xee   :  { %2394 = vmatprep.subr.bf16.mxu1 %v6459_v47  ;;  %v823_v47 = vld [vmem:[#allocation9 + $0x108] sm:$0xff] }
  0xf0   :  { %727 = vmatpush1.bf16.msra.mxu0 %v7306_v49  ;;  %v6458_v49 = vcombine.low %v894_v44, %v898_v45  ;;  %v819_v44 = vld [vmem:[#allocation9 + $0xe8] sm:$0xff]  ;;  %v6372_v45 = vcombine.low %v807_v37, %v811_v38 }
  0xf1   :  { %737 = vmatprep.subr.bf16.mxu0 %v7311_v50 }
  0xf2   :  { %2395 = vmatpush1.bf16.msra.mxu1 %v6458_v49  ;;  %v6380_v49 = vcombine.low %v815_v43, %v819_v44 }
 0x186   :  { %v277_v50 = vpop.f32.mrb[0].mxu0 }
 0x187   :  { %v278_v51 = vadd.f32 %v277_v50, %v156_v46  ;;  %v279_v52 = vpop.f32.mrb[1].mxu0  ;;  %v6381_v46 = vcombine.high %v815_v43, %v819_v44 }
 0x188   :  { %v280_v53 = vadd.f32 %v279_v52, %v160_v48  ;;  %v281_v54 = vpop.f32.mrb[2].mxu0  ;;  %v827_v48 = vld [vmem:[#allocation9 + $0x128] sm:$0xff] }
 0x189   :  { %v284_v55 = vmul.f32 0.2, %v278_v51  ;;  %v282_v56 = vpop.f32.mrb[3].mxu0  ;;  %v6389_v50 = vcombine.high %v823_v47, %v827_v48  ;;  %v835_v52 = vld [vmem:[#allocation9 + $0x168] sm:$0xff] }
 0x18a   :  { %v285_v57 = vmul.f32 0.2, %v280_v53  ;;  %v843_v56 = vld [vmem:[#allocation9 + $0x1a8] sm:$0xff] }
 0x18b   :  { %v286_v58 = vmax.f32 %v278_v51, %v284_v55  ;;  %v831_v51 = vld [vmem:[#allocation9 + $0x148] sm:$0xff] }
 0x18c   :  { %v287_v59 = vmax.f32 %v280_v53, %v285_v57  ;;  %v6388_v53 = vcombine.low %v823_v47, %v827_v48  ;;  %v6397_v54 = vcombine.high %v831_v51, %v835_v52  ;;  %v839_v55 = vld [vmem:[#allocation9 + $0x188] sm:$0xff]  ;;  %v6396_v57 = vcombine.low %v831_v51, %v835_v52  ;;  %v8400_v51 = vld [vmem:[#allocation7] sm:$0xf] }
 0x18d   :  { %v8380_v62 = vpack.c.bf16 %v286_v58, %v286_v58  ;;  %v6405_v58 = vcombine.high %v839_v55, %v843_v56  ;;  %v359_v52 = vrot.slane %v8400_v51, %v8373_v40 }
 0x18e   :  { %v289_v60 = vpack.c.bf16 %v287_v59, %v287_v59  ;;  %v847_v59 = vld [vmem:[#allocation9 + $0x1c8] sm:$0xff] }
 0x190   :  { %728 = vmatprep.mubr.bf16.mxu0 %v289_v60 }
 0x191   :  { %729 = vmatmul.mubr.bf16.vlgmr.msra.gmra.mrb[4].mxu0 %v8380_v62 }
 0x192   :  { %738 = vmatpush1.bf16.msra.mxu0 %v7309_v61  ;;  %769 = vmatprep.mubr.bf16.mxu0 %v289_v60  ;;  %v851_v60 = vld [vmem:[#allocation9 + $0x1e8] sm:$0xff]  ;;  %v902_v61 = vld [vmem:[#allocation9 + $0x380] sm:$0xff] }
 0x193   :  { %739 = vmatprep.subr.bf16.mxu0 %v7314_v63 }
 0x196   :  { %740 = vmatpush1.bf16.msra.mxu0 %v7312_v0  ;;  %v6404_v0 = vcombine.low %v839_v55, %v843_v56 }
 0x197   :  { %741 = vmatprep.subr.bf16.mxu0 %v7317_v1 }
 0x19a   :  { %742 = vmatpush1.bf16.msra.mxu0 %v7315_v2  ;;  %v6413_v2 = vcombine.high %v847_v59, %v851_v60 }
 0x19b   :  { %743 = vmatprep.subr.bf16.mxu0 %v7320_v3  ;;  %v855_v3 = vld [vmem:[#allocation9 + $0x208] sm:$0xff] }
 0x19e   :  { %744 = vmatpush1.bf16.msra.mxu0 %v7318_v4  ;;  %v859_v4 = vld [vmem:[#allocation9 + $0x228] sm:$0xff] }
 0x19f   :  { %745 = vmatprep.subr.bf16.mxu0 %v7323_v5  ;;  %v910_v5 = vld [vmem:[#allocation9 + $0x3c0] sm:$0xff] }
 0x1a2   :  { %746 = vmatpush1.bf16.msra.mxu0 %v7321_v6  ;;  %v914_v6 = vld [vmem:[#allocation9 + $0x3e0] sm:$0xff] }
 0x1a3   :  { %747 = vmatprep.subr.bf16.mxu0 %v7326_v7  ;;  %v6475_v7 = vcombine.high %v910_v5, %v914_v6 }
 0x1a6   :  { %748 = vmatpush1.bf16.msra.mxu0 %v7324_v8  ;;  %v6412_v8 = vcombine.low %v847_v59, %v851_v60 }
 0x1a7   :  { %749 = vmatprep.subr.bf16.mxu0 %v7329_v9  ;;  %v6474_v9 = vcombine.low %v910_v5, %v914_v6 }
 0x1aa   :  { %750 = vmatpush1.bf16.msra.mxu0 %v7327_v10  ;;  %v6421_v10 = vcombine.high %v855_v3, %v859_v4 }
 0x1ab   :  { %751 = vmatprep.subr.bf16.mxu0 %v7332_v11  ;;  %v863_v11 = vld [vmem:[#allocation9 + $0x248] sm:$0xff] }
 0x1ae   :  { %752 = vmatpush1.bf16.msra.mxu0 %v7330_v12  ;;  %v867_v12 = vld [vmem:[#allocation9 + $0x268] sm:$0xff] }
 0x1af   :  { %753 = vmatprep.subr.bf16.mxu0 %v7335_v13  ;;  %v8384_v13 = vld [vmem:[#allocation9 + $0x400] sm:$0xff] }
 0x1b2   :  { %754 = vmatpush1.bf16.msra.mxu0 %v7333_v14  ;;  %v8386_v14 = vld [vmem:[#allocation9 + $0x420] sm:$0xff] }
 0x1b3   :  { %755 = vmatprep.subr.bf16.mxu0 %v7338_v15  ;;  %v8388_v15 = vld [vmem:[#allocation9 + $0x408] sm:$0xff] }
 0x1b6   :  { %756 = vmatpush1.bf16.msra.mxu0 %v7336_v16  ;;  %v6483_v16 = vcombine.high %v8384_v13, %v8386_v14 }
 0x1b7   :  { %757 = vmatprep.subr.bf16.mxu0 %v7341_v17  ;;  %v8392_v17 = vld [vmem:[#allocation9 + $0x428] sm:$0xff] }
 0x1ba   :  { %758 = vmatpush1.bf16.msra.mxu0 %v7339_v18  ;;  %v6420_v18 = vcombine.low %v855_v3, %v859_v4  ;;  %v931_v3 = vld [vmem:[#allocation9 + $0x468] sm:$0xff] }
 0x1bb   :  { %759 = vmatprep.subr.bf16.mxu0 %v7344_v19  ;;  %v6482_v19 = vcombine.low %v8384_v13, %v8386_v14 }
 0x1be   :  { %760 = vmatpush1.bf16.msra.mxu0 %v7342_v20  ;;  %v6484_v20 = vcombine.low %v8388_v15, %v8392_v17 }
 0x1bf   :  { %761 = vmatprep.subr.bf16.mxu0 %v7347_v21  ;;  %v6429_v21 = vcombine.high %v863_v11, %v867_v12 }
 0x1c2   :  { %762 = vmatpush1.bf16.msra.mxu0 %v7345_v22  ;;  %v871_v22 = vld [vmem:[#allocation9 + $0x288] sm:$0xff] }
 0x1c3   :  { %763 = vmatprep.subr.bf16.mxu0 %v7350_v23  ;;  %v875_v23 = vld [vmem:[#allocation9 + $0x2a8] sm:$0xff] }
 0x1c4   :  { %v6436_v28 = vcombine.low %v871_v22, %v875_v23 }
 0x1c6   :  { %764 = vmatpush1.bf16.msra.mxu0 %v7348_v24  ;;  %v6428_v24 = vcombine.low %v863_v11, %v867_v12  ;;  %v939_v11 = vld [vmem:[#allocation9 + $0x4a8] sm:$0xff] }
 0x1c7   :  { %765 = vmatprep.subr.bf16.mxu0 %v7353_v25  ;;  %v6437_v25 = vcombine.high %v871_v22, %v875_v23  ;;  %v942_v22 = vld [vmem:[#allocation9 + $0x4c0] sm:$0xff] }
 0x1c8   :  { %v946_v23 = vld [vmem:[#allocation9 + $0x4e0] sm:$0xff] }
 0x1c9   :  { %v6507_v13 = vcombine.high %v942_v22, %v946_v23 }
 0x1ca   :  { %766 = vmatpush1.bf16.msra.mxu0 %v7351_v26  ;;  %v879_v26 = vld [vmem:[#allocation9 + $0x2c8] sm:$0xff] }
 0x1cb   :  { %767 = vmatprep.subr.bf16.mxu0 %v7356_v27  ;;  %v883_v27 = vld [vmem:[#allocation9 + $0x2e8] sm:$0xff] }
 0x1cc   :  { %v6445_v29 = vcombine.high %v879_v26, %v883_v27  ;;  %v6444_v32 = vcombine.low %v879_v26, %v883_v27 }
 0x1ce   :  { %768 = vmatpush1.bf16.msra.mxu0 %v7354_v30  ;;  %v887_v30 = vld [vmem:[#allocation9 + $0x308] sm:$0xff] }
 0x1cf   :  { %2450 = vmatprep.subr.bf16.mxu0 %v6357_v31  ;;  %v891_v31 = vld [vmem:[#allocation9 + $0x328] sm:$0xff] }
 0x1d0   :  { %v6453_v33 = vcombine.high %v887_v30, %v891_v31  ;;  %v6452_v37 = vcombine.low %v887_v30, %v891_v31 }
 0x1d1   :  { %770 = vmatmul.mubr.bf16.vlgmr.msra.gmra.mrb[8].mxu0 %v8380_v62  ;;  %v906_v62 = vld [vmem:[#allocation9 + $0x3a0] sm:$0xff] }
 0x1d2   :  { %2451 = vmatpush1.bf16.msra.mxu0 %v6356_v35  ;;  %v6467_v63 = vcombine.high %v902_v61, %v906_v62  ;;  %v6466_v1 = vcombine.low %v902_v61, %v906_v62  ;;  %v895_v35 = vld [vmem:[#allocation9 + $0x348] sm:$0xff] }
 0x1d3   :  { %2452 = vmatprep.subr.bf16.mxu0 %v6365_v36  ;;  %v899_v36 = vld [vmem:[#allocation9 + $0x368] sm:$0xff] }
 0x1d4   :  { %2396 = vmatprep.subr.bf16.mxu1 %v6467_v63  ;;  %v6461_v38 = vcombine.high %v895_v35, %v899_v36  ;;  %v6460_v43 = vcombine.low %v895_v35, %v899_v36  ;;  %v926_v63 = vld [vmem:[#allocation9 + $0x440] sm:$0xff]  ;;  %v959_v35 = vld [vmem:[#allocation9 + $0x548] sm:$0xff] }
 0x1d5   :  { %2397 = vmatpush1.bf16.msra.mxu1 %v6466_v1  ;;  %v930_v1 = vld [vmem:[#allocation9 + $0x460] sm:$0xff]  ;;  %v963_v36 = vld [vmem:[#allocation9 + $0x568] sm:$0xff] }
 0x1d6   :  { %2453 = vmatpush1.bf16.msra.mxu0 %v6364_v39  ;;  %2398 = vmatprep.subr.bf16.mxu1 %v6475_v7  ;;  %v903_v39 = vld [vmem:[#allocation9 + $0x388] sm:$0xff]  ;;  %v6491_v6 = vcombine.high %v926_v63, %v930_v1  ;;  %v6490_v12 = vcombine.low %v926_v63, %v930_v1 }
 0x1d7   :  { %2454 = vmatprep.subr.bf16.mxu0 %v6373_v41  ;;  %v907_v41 = vld [vmem:[#allocation9 + $0x3a8] sm:$0xff] }
 0x1d8   :  { %v6469_v44 = vcombine.high %v903_v39, %v907_v41  ;;  %v6468_v47 = vcombine.low %v903_v39, %v907_v41  ;;  %v6525_v41 = vcombine.high %v959_v35, %v963_v36  ;;  %v987_v63 = vld [vmem:[#allocation9 + $0x628] sm:$0xff] }
 0x1d9   :  { %2399 = vmatpush1.bf16.msra.mxu1 %v6474_v9  ;;  %v938_v9 = vld [vmem:[#allocation9 + $0x4a0] sm:$0xff] }
 0x1da   :  { %2455 = vmatpush1.bf16.msra.mxu0 %v6372_v45  ;;  %2409 = vmatprep.subr.bf16.mxu1 %v6483_v16  ;;  %v911_v45 = vld [vmem:[#allocation9 + $0x3c8] sm:$0xff] }
 0x1db   :  { %2456 = vmatprep.subr.bf16.mxu0 %v6381_v46  ;;  %v915_v46 = vld [vmem:[#allocation9 + $0x3e8] sm:$0xff] }
 0x1dc   :  { %v6477_v48 = vcombine.high %v911_v45, %v915_v46 }
 0x1de   :  { %2457 = vmatpush1.bf16.msra.mxu0 %v6380_v49  ;;  %v6476_v49 = vcombine.low %v911_v45, %v915_v46  ;;  %v967_v45 = vld [vmem:[#allocation9 + $0x588] sm:$0xff] }
 0x1df   :  { %2458 = vmatprep.subr.bf16.mxu0 %v6389_v50  ;;  %v6485_v50 = vcombine.high %v8388_v15, %v8392_v17  ;;  %v950_v15 = vld [vmem:[#allocation9 + $0x500] sm:$0xff]  ;;  %v971_v46 = vld [vmem:[#allocation9 + $0x5a8] sm:$0xff] }
 0x1e0   :  { %v954_v17 = vld [vmem:[#allocation9 + $0x520] sm:$0xff] }
 0x1e1   :  { %v6515_v30 = vcombine.high %v950_v15, %v954_v17 }
 0x1e2   :  { %2459 = vmatpush1.bf16.msra.mxu0 %v6388_v53  ;;  %v363_v53 = vrot.slane %v8400_v51, %v8376_v42 }
 0x1e3   :  { %2460 = vmatprep.subr.bf16.mxu0 %v6397_v54 }
 0x1e6   :  { %2461 = vmatpush1.bf16.msra.mxu0 %v6396_v57 }
 0x1e7   :  { %2462 = vmatprep.subr.bf16.mxu0 %v6405_v58 }
 0x1ea   :  { %2463 = vmatpush1.bf16.msra.mxu0 %v6404_v0 }
 0x1eb   :  { %2464 = vmatprep.subr.bf16.mxu0 %v6413_v2  ;;  %v927_v2 = vld [vmem:[#allocation9 + $0x448] sm:$0xff] }
 0x1ec   :  { %v6493_v7 = vcombine.high %v927_v2, %v931_v3  ;;  %v6492_v16 = vcombine.low %v927_v2, %v931_v3 }
 0x1ee   :  { %2465 = vmatpush1.bf16.msra.mxu0 %v6412_v8  ;;  %v934_v8 = vld [vmem:[#allocation9 + $0x480] sm:$0xff] }
 0x1ef   :  { %2466 = vmatprep.subr.bf16.mxu0 %v6421_v10  ;;  %v935_v10 = vld [vmem:[#allocation9 + $0x488] sm:$0xff]  ;;  %v6498_v26 = vcombine.low %v934_v8, %v938_v9 }
 0x1f0   :  { %v6500_v27 = vcombine.low %v935_v10, %v939_v11 }
 0x1f2   :  { %2467 = vmatpush1.bf16.msra.mxu0 %v6420_v18  ;;  %v6499_v18 = vcombine.high %v934_v8, %v938_v9  ;;  %v991_v8 = vld [vmem:[#allocation9 + $0x648] sm:$0xff] }
 0x1f3   :  { %2468 = vmatprep.subr.bf16.mxu0 %v6429_v21  ;;  %v6501_v21 = vcombine.high %v935_v10, %v939_v11  ;;  %v995_v9 = vld [vmem:[#allocation9 + $0x668] sm:$0xff] }
 0x1f6   :  { %2469 = vmatpush1.bf16.msra.mxu0 %v6428_v24  ;;  %v943_v24 = vld [vmem:[#allocation9 + $0x4c8] sm:$0xff] }
 0x1f7   :  { %2470 = vmatprep.subr.bf16.mxu0 %v6437_v25  ;;  %v947_v25 = vld [vmem:[#allocation9 + $0x4e8] sm:$0xff] }
 0x1f8   :  { %v6509_v14 = vcombine.high %v943_v24, %v947_v25 }
 0x1fa   :  { %2471 = vmatpush1.bf16.msra.mxu0 %v6436_v28  ;;  %v6506_v28 = vcombine.low %v942_v22, %v946_v23  ;;  %v999_v22 = vld [vmem:[#allocation9 + $0x688] sm:$0xff] }
 0x1fb   :  { %2472 = vmatprep.subr.bf16.mxu0 %v6445_v29  ;;  %v6508_v29 = vcombine.low %v943_v24, %v947_v25  ;;  %v1003_v23 = vld [vmem:[#allocation9 + $0x6a8] sm:$0xff]  ;;  %v6556_v25 = vcombine.low %v991_v8, %v995_v9 }
 0x1fe   :  { %2473 = vmatpush1.bf16.msra.mxu0 %v6444_v32  ;;  %v958_v32 = vld [vmem:[#allocation9 + $0x540] sm:$0xff] }
 0x1ff   :  { %2474 = vmatprep.subr.bf16.mxu0 %v6453_v33  ;;  %v962_v33 = vld [vmem:[#allocation9 + $0x560] sm:$0xff] }
 0x200   :  { %v6523_v39 = vcombine.high %v958_v32, %v962_v33 }
 0x202   :  { %2475 = vmatpush1.bf16.msra.mxu0 %v6452_v37  ;;  %v6514_v37 = vcombine.low %v950_v15, %v954_v17  ;;  %v1007_v15 = vld [vmem:[#allocation9 + $0x6c8] sm:$0xff] }
 0x203   :  { %2476 = vmatprep.subr.bf16.mxu0 %v6461_v38  ;;  %v1011_v17 = vld [vmem:[#allocation9 + $0x6e8] sm:$0xff] }
 0x206   :  { %2477 = vmatpush1.bf16.msra.mxu0 %v6460_v43  ;;  %v966_v43 = vld [vmem:[#allocation9 + $0x580] sm:$0xff] }
 0x207   :  { %2478 = vmatprep.subr.bf16.mxu0 %v6469_v44  ;;  %v970_v44 = vld [vmem:[#allocation9 + $0x5a0] sm:$0xff] }
 0x20a   :  { %2479 = vmatpush1.bf16.msra.mxu0 %v6468_v47  ;;  %v6522_v47 = vcombine.low %v958_v32, %v962_v33  ;;  %v1015_v32 = vld [vmem:[#allocation9 + $0x708] sm:$0xff] }
 0x20b   :  { %2480 = vmatprep.subr.bf16.mxu0 %v6477_v48  ;;  %v6524_v48 = vcombine.low %v959_v35, %v963_v36  ;;  %v1019_v33 = vld [vmem:[#allocation9 + $0x728] sm:$0xff]  ;;  %v6572_v36 = vcombine.low %v1007_v15, %v1011_v17 }
 0x20e   :  { %2481 = vmatpush1.bf16.msra.mxu0 %v6476_v49  ;;  %v6531_v49 = vcombine.high %v966_v43, %v970_v44 }
 0x20f   :  { %2491 = vmatprep.subr.bf16.mxu0 %v6485_v50  ;;  %v6533_v50 = vcombine.high %v967_v45, %v971_v46 }
 0x264   :  { %v730_v54 = vpop.f32.mrb[4].mxu0 }
 0x265   :  { %v731_v55 = vadd.f32 %v730_v54, %v359_v52  ;;  %v732_v56 = vpop.f32.mrb[5].mxu0  ;;  %v974_v52 = vld [vmem:[#allocation9 + $0x5c0] sm:$0xff]  ;;  %v975_v54 = vld [vmem:[#allocation9 + $0x5c8] sm:$0xff] }
 0x266   :  { %v733_v57 = vadd.f32 %v732_v56, %v363_v53  ;;  %v734_v58 = vpop.f32.mrb[6].mxu0  ;;  %v978_v53 = vld [vmem:[#allocation9 + $0x5e0] sm:$0xff]  ;;  %v6530_v56 = vcombine.low %v966_v43, %v970_v44  ;;  %v1023_v43 = vld [vmem:[#allocation9 + $0x748] sm:$0xff] }
 0x267   :  { %v778_v59 = vmul.f32 0.2, %v731_v55  ;;  %v735_v60 = vpop.f32.mrb[7].mxu0  ;;  %v6539_v58 = vcombine.high %v974_v52, %v978_v53  ;;  %v1027_v44 = vld [vmem:[#allocation9 + $0x768] sm:$0xff] }
 0x268   :  { %v779_v61 = vmul.f32 0.2, %v733_v57  ;;  %v982_v60 = vld [vmem:[#allocation9 + $0x600] sm:$0xff] }
 0x269   :  { %v782_v62 = vmax.f32 %v731_v55, %v778_v59  ;;  %v979_v55 = vld [vmem:[#allocation9 + $0x5e8] sm:$0xff] }
 0x26a   :  { %v783_v0 = vmax.f32 %v733_v57, %v779_v61  ;;  %v6532_v57 = vcombine.low %v967_v45, %v971_v46  ;;  %v6541_v59 = vcombine.high %v975_v54, %v979_v55  ;;  %v986_v61 = vld [vmem:[#allocation9 + $0x620] sm:$0xff]  ;;  %v6540_v1 = vcombine.low %v975_v54, %v979_v55  ;;  %v1031_v54 = vld [vmem:[#allocation9 + $0x788] sm:$0xff] }
 0x26b   :  { %v8408_v5 = vpack.c.bf16 %v782_v62, %v782_v62  ;;  %v983_v62 = vld [vmem:[#allocation9 + $0x608] sm:$0xff]  ;;  %v6547_v2 = vcombine.high %v982_v60, %v986_v61  ;;  %v6546_v10 = vcombine.low %v982_v60, %v986_v61  ;;  %v6580_v46 = vcombine.low %v1015_v32, %v1019_v33  ;;  %v1038_v61 = vld [vmem:[#allocation9 + $0x7c0] sm:$0xff] }
 0x26c   :  { %v8406_v4 = vpack.c.bf16 %v783_v0, %v783_v0  ;;  %v6538_v0 = vcombine.low %v974_v52, %v978_v53  ;;  %v6549_v3 = vcombine.high %v983_v62, %v987_v63  ;;  %v6548_v11 = vcombine.low %v983_v62, %v987_v63  ;;  %v1034_v53 = vld [vmem:[#allocation9 + $0x7a0] sm:$0xff]  ;;  %v1035_v55 = vld [vmem:[#allocation9 + $0x7a8] sm:$0xff] }
 0x26d   :  { %v8424_v52 = vsub.s32 3, %v8370_v34  ;;  %v6597_v60 = vcombine.high %v1031_v54, %v1035_v55  ;;  %v1042_v63 = vld [vmem:[#allocation9 + $0x7e0] sm:$0xff] }
 0x26e   :  { %2400 = vmatprep.mubr.bf16.mxu1 %v8406_v4  ;;  %2482 = vmatprep.mubr.bf16.mxu0 %v8406_v4 }
 0x26f   :  { %2401 = vmatmul.mubr.bf16.vlgmr.msra.gmra.mrb[0].mxu1 %v8408_v5  ;;  %2483 = vmatmul.mubr.bf16.vlgmr.msra.gmra.mrb[12].mxu0 %v8408_v5  ;;  %v371_v62 = vrot.slane %v8400_v51, %v8424_v52 }
 0x270   :  { %2410 = vmatpush1.bf16.msra.mxu1 %v6482_v19  ;;  %2492 = vmatpush1.bf16.msra.mxu0 %v6484_v20  ;;  %v951_v19 = vld [vmem:[#allocation9 + $0x508] sm:$0xff] }
 0x271   :  { %2411 = vmatprep.subr.bf16.mxu1 %v6491_v6  ;;  %2493 = vmatprep.subr.bf16.mxu0 %v6493_v7  ;;  %v955_v20 = vld [vmem:[#allocation9 + $0x528] sm:$0xff]  ;;  %v990_v6 = vld [vmem:[#allocation9 + $0x640] sm:$0xff] }
 0x272   :  { %v6517_v31 = vcombine.high %v951_v19, %v955_v20  ;;  %v6516_v38 = vcombine.low %v951_v19, %v955_v20  ;;  %v994_v7 = vld [vmem:[#allocation9 + $0x660] sm:$0xff]  ;;  %v6564_v20 = vcombine.low %v999_v22, %v1003_v23 }
 0x273   :  { %v6554_v24 = vcombine.low %v990_v6, %v994_v7 }
 0x274   :  { %2412 = vmatpush1.bf16.msra.mxu1 %v6490_v12  ;;  %2494 = vmatpush1.bf16.msra.mxu0 %v6492_v16  ;;  %v6555_v12 = vcombine.high %v990_v6, %v994_v7  ;;  %v6557_v16 = vcombine.high %v991_v8, %v995_v9  ;;  %v6596_v6 = vcombine.low %v1031_v54, %v1035_v55 }
 0x275   :  { %2413 = vmatprep.subr.bf16.mxu1 %v6499_v18  ;;  %2495 = vmatprep.subr.bf16.mxu0 %v6501_v21  ;;  %v998_v18 = vld [vmem:[#allocation9 + $0x680] sm:$0xff]  ;;  %v6603_v9 = vcombine.high %v1038_v61, %v1042_v63 }
 0x276   :  { %v1002_v21 = vld [vmem:[#allocation9 + $0x6a0] sm:$0xff] }
 0x277   :  { %v6562_v19 = vcombine.low %v998_v18, %v1002_v21 }
 0x278   :  { %2414 = vmatpush1.bf16.msra.mxu1 %v6498_v26  ;;  %2496 = vmatpush1.bf16.msra.mxu0 %v6500_v27  ;;  %v6563_v26 = vcombine.high %v998_v18, %v1002_v21  ;;  %v6565_v27 = vcombine.high %v999_v22, %v1003_v23  ;;  %v796_v18 = vld [vmem:[#allocation9 + $0x30] sm:$0xff]  ;;  %v793_v21 = vld [vmem:[#allocation9 + $0x18] sm:$0xff] }
 0x279   :  { %2415 = vmatprep.subr.bf16.mxu1 %v6507_v13  ;;  %2497 = vmatprep.subr.bf16.mxu0 %v6509_v14  ;;  %v1006_v13 = vld [vmem:[#allocation9 + $0x6c0] sm:$0xff] }
 0x27a   :  { %v1010_v14 = vld [vmem:[#allocation9 + $0x6e0] sm:$0xff] }
 0x27b   :  { %v6570_v35 = vcombine.low %v1006_v13, %v1010_v14 }
 0x27c   :  { %2416 = vmatpush1.bf16.msra.mxu1 %v6506_v28  ;;  %2498 = vmatpush1.bf16.msra.mxu0 %v6508_v29  ;;  %v6571_v28 = vcombine.high %v1006_v13, %v1010_v14  ;;  %v6573_v29 = vcombine.high %v1007_v15, %v1011_v17  ;;  %v800_v17 = vld [vmem:[#allocation9 + $0x50] sm:$0xff] }
 0x27d   :  { %2417 = vmatprep.subr.bf16.mxu1 %v6515_v30  ;;  %2499 = vmatprep.subr.bf16.mxu0 %v6517_v31  ;;  %v1014_v30 = vld [vmem:[#allocation9 + $0x700] sm:$0xff] }
 0x27e   :  { %v1018_v31 = vld [vmem:[#allocation9 + $0x720] sm:$0xff] }
 0x27f   :  { %v6578_v45 = vcombine.low %v1014_v30, %v1018_v31 }
 0x280   :  { %2418 = vmatpush1.bf16.msra.mxu1 %v6514_v37  ;;  %2500 = vmatpush1.bf16.msra.mxu0 %v6516_v38  ;;  %v6579_v37 = vcombine.high %v1014_v30, %v1018_v31  ;;  %v6581_v38 = vcombine.high %v1015_v32, %v1019_v33 }
 0x281   :  { %2419 = vmatprep.subr.bf16.mxu1 %v6523_v39  ;;  %2501 = vmatprep.subr.bf16.mxu0 %v6525_v41  ;;  %v1022_v39 = vld [vmem:[#allocation9 + $0x740] sm:$0xff] }
 0x282   :  { %v1026_v41 = vld [vmem:[#allocation9 + $0x760] sm:$0xff] }
 0x284   :  { %2420 = vmatpush1.bf16.msra.mxu1 %v6522_v47  ;;  %2502 = vmatpush1.bf16.msra.mxu0 %v6524_v48  ;;  %v6587_v47 = vcombine.high %v1022_v39, %v1026_v41  ;;  %v6589_v48 = vcombine.high %v1023_v43, %v1027_v44 }
 0x285   :  { %2421 = vmatprep.subr.bf16.mxu1 %v6531_v49  ;;  %2503 = vmatprep.subr.bf16.mxu0 %v6533_v50  ;;  %v8421_v49 = vsub.s32 2, %v8370_v34  ;;  %v1030_v50 = vld [vmem:[#allocation9 + $0x780] sm:$0xff] }
 0x288   :  { %2422 = vmatpush1.bf16.msra.mxu1 %v6530_v56  ;;  %2504 = vmatpush1.bf16.msra.mxu0 %v6532_v57  ;;  %v6586_v56 = vcombine.low %v1022_v39, %v1026_v41  ;;  %v6588_v57 = vcombine.low %v1023_v43, %v1027_v44  ;;  %v813_v39 = vld [vmem:[#allocation9 + $0xb8] sm:$0xff] }
 0x289   :  { %2423 = vmatprep.subr.bf16.mxu1 %v6539_v58  ;;  %2505 = vmatprep.subr.bf16.mxu0 %v6541_v59  ;;  %v367_v58 = vrot.slane %v8400_v51, %v8421_v49  ;;  %v6595_v59 = vcombine.high %v1030_v50, %v1034_v53  ;;  %v797_v51 = vld [vmem:[#allocation9 + $0x38] sm:$0xff] }
 0x28a   :  { %v6361_v14 = vcombine.high %v793_v21, %v797_v51  ;;  %v6360_v32 = vcombine.low %v793_v21, %v797_v51 }
 0x28c   :  { %2424 = vmatpush1.bf16.msra.mxu1 %v6538_v0  ;;  %2506 = vmatpush1.bf16.msra.mxu0 %v6540_v1  ;;  %v1039_v0 = vld [vmem:[#allocation9 + $0x7c8] sm:$0xff] }
 0x28d   :  { %2425 = vmatprep.subr.bf16.mxu1 %v6547_v2  ;;  %2507 = vmatprep.subr.bf16.mxu0 %v6549_v3  ;;  %v1043_v1 = vld [vmem:[#allocation9 + $0x7e8] sm:$0xff]  ;;  %v6594_v3 = vcombine.low %v1030_v50, %v1034_v53  ;;  %v821_v50 = vld [vmem:[#allocation9 + $0xf8] sm:$0xff] }
 0x290   :  { %2426 = vmatpush1.bf16.msra.mxu1 %v6546_v10  ;;  %2508 = vmatpush1.bf16.msra.mxu0 %v6548_v11  ;;  %v6605_v10 = vcombine.high %v1039_v0, %v1043_v1  ;;  %v792_v11 = vld [vmem:[#allocation9 + $0x10] sm:$0xff] }
 0x291   :  { %2427 = vmatprep.subr.bf16.mxu1 %v6555_v12  ;;  %2509 = vmatprep.subr.bf16.mxu0 %v6557_v16  ;;  %v6359_v13 = vcombine.high %v792_v11, %v796_v18  ;;  %v6358_v30 = vcombine.low %v792_v11, %v796_v18  ;;  %v844_v11 = vld [vmem:[#allocation9 + $0x1b0] sm:$0xff] }
 0x294   :  { %2428 = vmatpush1.bf16.msra.mxu1 %v6554_v24  ;;  %2510 = vmatpush1.bf16.msra.mxu0 %v6556_v25  ;;  %v6602_v25 = vcombine.low %v1038_v61, %v1042_v63 }
 0x295   :  { %2429 = vmatprep.subr.bf16.mxu1 %v6563_v26  ;;  %2511 = vmatprep.subr.bf16.mxu0 %v6565_v27  ;;  %v6604_v26 = vcombine.low %v1039_v0, %v1043_v1  ;;  %v832_v0 = vld [vmem:[#allocation9 + $0x150] sm:$0xff] }
 0x296   :  { %v836_v1 = vld [vmem:[#allocation9 + $0x170] sm:$0xff] }
 0x297   :  { %v6398_v18 = vcombine.low %v832_v0, %v836_v1 }
 0x298   :  { %2430 = vmatpush1.bf16.msra.mxu1 %v6562_v19  ;;  %2512 = vmatpush1.bf16.msra.mxu0 %v6564_v20  ;;  %v804_v19 = vld [vmem:[#allocation9 + $0x70] sm:$0xff]  ;;  %v801_v20 = vld [vmem:[#allocation9 + $0x58] sm:$0xff] }
 0x299   :  { %2431 = vmatprep.subr.bf16.mxu1 %v6571_v28  ;;  %2513 = vmatprep.subr.bf16.mxu0 %v6573_v29  ;;  %v805_v28 = vld [vmem:[#allocation9 + $0x78] sm:$0xff]  ;;  %v6367_v33 = vcombine.high %v800_v17, %v804_v19  ;;  %v6366_v41 = vcombine.low %v800_v17, %v804_v19  ;;  %v856_v17 = vld [vmem:[#allocation9 + $0x210] sm:$0xff] }
 0x29a   :  { %v6368_v43 = vcombine.low %v801_v20, %v805_v28  ;;  %v860_v19 = vld [vmem:[#allocation9 + $0x230] sm:$0xff] }
 0x29c   :  { %2432 = vmatpush1.bf16.msra.mxu1 %v6570_v35  ;;  %2514 = vmatpush1.bf16.msra.mxu0 %v6572_v36  ;;  %v6369_v35 = vcombine.high %v801_v20, %v805_v28  ;;  %v808_v36 = vld [vmem:[#allocation9 + $0x90] sm:$0xff]  ;;  %v857_v20 = vld [vmem:[#allocation9 + $0x218] sm:$0xff] }
 0x29d   :  { %2433 = vmatprep.subr.bf16.mxu1 %v6579_v37  ;;  %2515 = vmatprep.subr.bf16.mxu0 %v6581_v38  ;;  %v812_v37 = vld [vmem:[#allocation9 + $0xb0] sm:$0xff]  ;;  %v809_v38 = vld [vmem:[#allocation9 + $0x98] sm:$0xff] }
 0x29e   :  { %v6375_v44 = vcombine.high %v808_v36, %v812_v37  ;;  %v6374_v53 = vcombine.low %v808_v36, %v812_v37  ;;  %v6376_v54 = vcombine.low %v809_v38, %v813_v39  ;;  %v861_v28 = vld [vmem:[#allocation9 + $0x238] sm:$0xff]  ;;  %v864_v36 = vld [vmem:[#allocation9 + $0x250] sm:$0xff] }
 0x29f   :  { %v868_v37 = vld [vmem:[#allocation9 + $0x270] sm:$0xff] }
 0x2a0   :  { %2434 = vmatpush1.bf16.msra.mxu1 %v6578_v45  ;;  %2516 = vmatpush1.bf16.msra.mxu0 %v6580_v46  ;;  %v6377_v45 = vcombine.high %v809_v38, %v813_v39  ;;  %v816_v46 = vld [vmem:[#allocation9 + $0xd0] sm:$0xff]  ;;  %v865_v38 = vld [vmem:[#allocation9 + $0x258] sm:$0xff] }
 0x2a1   :  { %2435 = vmatprep.subr.bf16.mxu1 %v6587_v47  ;;  %2517 = vmatprep.subr.bf16.mxu0 %v6589_v48  ;;  %v820_v47 = vld [vmem:[#allocation9 + $0xf0] sm:$0xff]  ;;  %v817_v48 = vld [vmem:[#allocation9 + $0xd8] sm:$0xff] }
 0x2a2   :  { %v6383_v55 = vcombine.high %v816_v46, %v820_v47  ;;  %v6384_v61 = vcombine.low %v817_v48, %v821_v50  ;;  %v869_v39 = vld [vmem:[#allocation9 + $0x278] sm:$0xff] }
 0x2a4   :  { %v771_v2 = vpop.f32.mrb[8].mxu0  ;;  %2436 = vmatpush1.bf16.msra.mxu1 %v6586_v56  ;;  %2518 = vmatpush1.bf16.msra.mxu0 %v6588_v57  ;;  %v6385_v56 = vcombine.high %v817_v48, %v821_v50  ;;  %v824_v57 = vld [vmem:[#allocation9 + $0x110] sm:$0xff]  ;;  %v873_v48 = vld [vmem:[#allocation9 + $0x298] sm:$0xff] }
 0x2a5   :  { %v772_v7 = vadd.f32 %v771_v2, %v367_v58  ;;  %v773_v8 = vpop.f32.mrb[9].mxu0  ;;  %2437 = vmatprep.subr.bf16.mxu1 %v6595_v59  ;;  %2519 = vmatprep.subr.bf16.mxu0 %v6597_v60  ;;  %v828_v58 = vld [vmem:[#allocation9 + $0x130] sm:$0xff]  ;;  %v829_v59 = vld [vmem:[#allocation9 + $0x138] sm:$0xff]  ;;  %v6382_v60 = vcombine.low %v816_v46, %v820_v47 }
 0x2a6   :  { %v774_v12 = vadd.f32 %v773_v8, %v371_v62  ;;  %v775_v16 = vpop.f32.mrb[10].mxu0  ;;  %v6391_v62 = vcombine.high %v824_v57, %v828_v58  ;;  %v833_v2 = vld [vmem:[#allocation9 + $0x158] sm:$0xff]  ;;  %v6399_v8 = vcombine.high %v832_v0, %v836_v1  ;;  %v872_v46 = vld [vmem:[#allocation9 + $0x290] sm:$0xff] }
 0x2a7   :  { %v780_v22 = vmul.f32 0.2, %v772_v7  ;;  %v776_v23 = vpop.f32.mrb[11].mxu0  ;;  %v845_v16 = vld [vmem:[#allocation9 + $0x1b8] sm:$0xff]  ;;  %v876_v47 = vld [vmem:[#allocation9 + $0x2b0] sm:$0xff] }
 0x2a8   :  { %v781_v24 = vmul.f32 0.2, %v774_v12  ;;  %2438 = vmatpush1.bf16.msra.mxu1 %v6594_v3  ;;  %2520 = vmatpush1.bf16.msra.mxu0 %v6596_v6  ;;  %v837_v3 = vld [vmem:[#allocation9 + $0x178] sm:$0xff]  ;;  %v6390_v6 = vcombine.low %v824_v57, %v828_v58  ;;  %v848_v23 = vld [vmem:[#allocation9 + $0x1d0] sm:$0xff] }
 0x2a9   :  { %v784_v27 = vmax.f32 %v772_v7, %v780_v22  ;;  %2439 = vmatprep.subr.bf16.mxu1 %v6603_v9  ;;  %2521 = vmatprep.subr.bf16.mxu0 %v6605_v10  ;;  %v6401_v9 = vcombine.high %v833_v2, %v837_v3  ;;  %v840_v10 = vld [vmem:[#allocation9 + $0x190] sm:$0xff]  ;;  %v6400_v21 = vcombine.low %v833_v2, %v837_v3  ;;  %v877_v50 = vld [vmem:[#allocation9 + $0x2b8] sm:$0xff] }
 0x2aa   :  { %v785_v15 = vmax.f32 %v774_v12, %v781_v24  ;;  %v841_v12 = vld [vmem:[#allocation9 + $0x198] sm:$0xff]  ;;  %v6407_v51 = vcombine.high %v840_v10, %v844_v11  ;;  %v852_v24 = vld [vmem:[#allocation9 + $0x1f0] sm:$0xff] }
 0x2ab   :  { %v8432_v31 = vpack.c.bf16 %v784_v27, %v784_v27  ;;  %v6409_v22 = vcombine.high %v841_v12, %v845_v16  ;;  %v6406_v27 = vcombine.low %v840_v10, %v844_v11  ;;  %v880_v57 = vld [vmem:[#allocation9 + $0x2d0] sm:$0xff]  ;;  %v889_v2 = vld [vmem:[#allocation9 + $0x318] sm:$0xff] }
 0x2ac   :  { %v8430_v29 = vpack.c.bf16 %v785_v15, %v785_v15  ;;  %2440 = vmatpush1.bf16.msra.mxu1 %v6602_v25  ;;  %2522 = vmatpush1.bf16.msra.mxu0 %v6604_v26  ;;  %v849_v25 = vld [vmem:[#allocation9 + $0x1d8] sm:$0xff]  ;;  %v884_v58 = vld [vmem:[#allocation9 + $0x2f0] sm:$0xff] }
 0x2ad   :  { %2532 = vmatprep.subr.bf16.mxu1 %v6359_v13  ;;  %2614 = vmatprep.subr.bf16.mxu0 %v6361_v14  ;;  %v853_v26 = vld [vmem:[#allocation9 + $0x1f8] sm:$0xff]  ;;  %v6408_v13 = vcombine.low %v841_v12, %v845_v16  ;;  %v6415_v14 = vcombine.high %v848_v23, %v852_v24  ;;  %v888_v0 = vld [vmem:[#allocation9 + $0x310] sm:$0xff] }
 0x2ae   :  { %2441 = vmatprep.mubr.bf16.mxu1 %v8430_v29  ;;  %2523 = vmatprep.mubr.bf16.mxu0 %v8430_v29  ;;  %v6417_v15 = vcombine.high %v849_v25, %v853_v26  ;;  %v892_v1 = vld [vmem:[#allocation9 + $0x330] sm:$0xff]  ;;  %v893_v3 = vld [vmem:[#allocation9 + $0x338] sm:$0xff] }
 0x2af   :  { %2442 = vmatmul.mubr.bf16.vlgmr.msra.gmra.mrb[0].mxu1 %v8432_v31  ;;  %2524 = vmatmul.mubr.bf16.vlgmr.msra.gmra.mrb[12].mxu0 %v8432_v31  ;;  %v896_v10 = vld [vmem:[#allocation9 + $0x350] sm:$0xff]  ;;  %v897_v12 = vld [vmem:[#allocation9 + $0x358] sm:$0xff] }
 0x2b0   :  { %2533 = vmatpush1.bf16.msra.mxu1 %v6358_v30  ;;  %2564 = vmatprep.mubr.bf16.mxu1 %v8406_v4  ;;  %v6414_v30 = vcombine.low %v848_v23, %v852_v24  ;;  %v900_v11 = vld [vmem:[#allocation9 + $0x370] sm:$0xff]  ;;  %v901_v16 = vld [vmem:[#allocation9 + $0x378] sm:$0xff] }
 0x2b1   :  { %2615 = vmatpush1.bf16.msra.mxu0 %v6360_v32  ;;  %2646 = vmatprep.mubr.bf16.mxu0 %v8406_v4  ;;  %v825_v4 = vld [vmem:[#allocation9 + $0x118] sm:$0xff]  ;;  %v6416_v32 = vcombine.low %v849_v25, %v853_v26  ;;  %v904_v23 = vld [vmem:[#allocation9 + $0x390] sm:$0xff] }
 0x2b2   :  { %2534 = vmatprep.subr.bf16.mxu1 %v6367_v33  ;;  %2616 = vmatprep.subr.bf16.mxu0 %v6369_v35  ;;  %v6393_v63 = vcombine.high %v825_v4, %v829_v59  ;;  %v6392_v7 = vcombine.low %v825_v4, %v829_v59  ;;  %v6423_v33 = vcombine.high %v856_v17, %v860_v19  ;;  %v881_v4 = vld [vmem:[#allocation9 + $0x2d8] sm:$0xff]  ;;  %v908_v24 = vld [vmem:[#allocation9 + $0x3b0] sm:$0xff] }
 0x2b3   :  { %v6425_v35 = vcombine.high %v857_v20, %v861_v28  ;;  %v885_v59 = vld [vmem:[#allocation9 + $0x2f8] sm:$0xff] }
 0x2b4   :  { %2535 = vmatpush1.bf16.msra.mxu1 %v6366_v41  ;;  %v6422_v41 = vcombine.low %v856_v17, %v860_v19  ;;  %v905_v25 = vld [vmem:[#allocation9 + $0x398] sm:$0xff]  ;;  %v912_v17 = vld [vmem:[#allocation9 + $0x3d0] sm:$0xff] }
 0x2b5   :  { %2617 = vmatpush1.bf16.msra.mxu0 %v6368_v43  ;;  %2536 = vmatprep.subr.bf16.mxu1 %v6375_v44  ;;  %v6424_v43 = vcombine.low %v857_v20, %v861_v28  ;;  %v6431_v44 = vcombine.high %v864_v36, %v868_v37  ;;  %v909_v26 = vld [vmem:[#allocation9 + $0x3b8] sm:$0xff]  ;;  %v916_v19 = vld [vmem:[#allocation9 + $0x3f0] sm:$0xff] }
 0x2b6   :  { %2618 = vmatprep.subr.bf16.mxu0 %v6377_v45  ;;  %v6433_v45 = vcombine.high %v865_v38, %v869_v39  ;;  %v913_v20 = vld [vmem:[#allocation9 + $0x3d8] sm:$0xff] }
 0x2b7   :  { %v917_v28 = vld [vmem:[#allocation9 + $0x3f8] sm:$0xff] }
 0x2b8   :  { %2537 = vmatpush1.bf16.msra.mxu1 %v6374_v53  ;;  %v6430_v53 = vcombine.low %v864_v36, %v868_v37  ;;  %v920_v36 = vld [vmem:[#allocation9 + $0x410] sm:$0xff] }
 0x2b9   :  { %2619 = vmatpush1.bf16.msra.mxu0 %v6376_v54  ;;  %2538 = vmatprep.subr.bf16.mxu1 %v6383_v55  ;;  %v6432_v54 = vcombine.low %v865_v38, %v869_v39  ;;  %v6439_v55 = vcombine.high %v872_v46, %v876_v47  ;;  %v924_v37 = vld [vmem:[#allocation9 + $0x430] sm:$0xff]  ;;  %v921_v38 = vld [vmem:[#allocation9 + $0x418] sm:$0xff] }
 0x2ba   :  { %2620 = vmatprep.subr.bf16.mxu0 %v6385_v56  ;;  %v6441_v56 = vcombine.high %v873_v48, %v877_v50  ;;  %v925_v39 = vld [vmem:[#allocation9 + $0x438] sm:$0xff] }
 0x2bc   :  { %2539 = vmatpush1.bf16.msra.mxu1 %v6382_v60  ;;  %v6438_v60 = vcombine.low %v872_v46, %v876_v47  ;;  %v928_v46 = vld [vmem:[#allocation9 + $0x450] sm:$0xff] }
 0x2bd   :  { %2621 = vmatpush1.bf16.msra.mxu0 %v6384_v61  ;;  %2540 = vmatprep.subr.bf16.mxu1 %v6391_v62  ;;  %v6440_v61 = vcombine.low %v873_v48, %v877_v50  ;;  %v6447_v62 = vcombine.high %v880_v57, %v884_v58  ;;  %v932_v47 = vld [vmem:[#allocation9 + $0x470] sm:$0xff]  ;;  %v6486_v48 = vcombine.low %v920_v36, %v924_v37  ;;  %v929_v50 = vld [vmem:[#allocation9 + $0x458] sm:$0xff] }
 0x2be   :  { %2622 = vmatprep.subr.bf16.mxu0 %v6393_v63  ;;  %v6449_v63 = vcombine.high %v881_v4, %v885_v59 }
 0x2c0   :  { %2541 = vmatpush1.bf16.msra.mxu1 %v6390_v6  ;;  %v6446_v6 = vcombine.low %v880_v57, %v884_v58  ;;  %v940_v57 = vld [vmem:[#allocation9 + $0x4b0] sm:$0xff] }
 0x2c1   :  { %2623 = vmatpush1.bf16.msra.mxu0 %v6392_v7  ;;  %2542 = vmatprep.subr.bf16.mxu1 %v6399_v8  ;;  %v6448_v7 = vcombine.low %v881_v4, %v885_v59  ;;  %v6455_v8 = vcombine.high %v888_v0, %v892_v1  ;;  %v937_v4 = vld [vmem:[#allocation9 + $0x498] sm:$0xff] }
 0x2c2   :  { %2624 = vmatprep.subr.bf16.mxu0 %v6401_v9  ;;  %v6457_v9 = vcombine.high %v889_v2, %v893_v3  ;;  %v941_v59 = vld [vmem:[#allocation9 + $0x4b8] sm:$0xff] }
 0x2c4   :  { %2543 = vmatpush1.bf16.msra.mxu1 %v6398_v18  ;;  %v6454_v18 = vcombine.low %v888_v0, %v892_v1  ;;  %v944_v0 = vld [vmem:[#allocation9 + $0x4d0] sm:$0xff] }
 0x2c5   :  { %2625 = vmatpush1.bf16.msra.mxu0 %v6400_v21  ;;  %2544 = vmatprep.subr.bf16.mxu1 %v6407_v51  ;;  %v6456_v21 = vcombine.low %v889_v2, %v893_v3  ;;  %v6463_v51 = vcombine.high %v896_v10, %v900_v11  ;;  %v948_v1 = vld [vmem:[#allocation9 + $0x4f0] sm:$0xff]  ;;  %v945_v2 = vld [vmem:[#allocation9 + $0x4d8] sm:$0xff] }
 0x2c6   :  { %2626 = vmatprep.subr.bf16.mxu0 %v6409_v22  ;;  %v6465_v22 = vcombine.high %v897_v12, %v901_v16  ;;  %v949_v3 = vld [vmem:[#allocation9 + $0x4f8] sm:$0xff] }
 0x2c8   :  { %2545 = vmatpush1.bf16.msra.mxu1 %v6406_v27  ;;  %v6462_v27 = vcombine.low %v896_v10, %v900_v11  ;;  %v956_v10 = vld [vmem:[#allocation9 + $0x530] sm:$0xff]  ;;  %v953_v11 = vld [vmem:[#allocation9 + $0x518] sm:$0xff] }
 0x2c9   :  { %2627 = vmatpush1.bf16.msra.mxu0 %v6408_v13  ;;  %2546 = vmatprep.subr.bf16.mxu1 %v6415_v14  ;;  %v6464_v13 = vcombine.low %v897_v12, %v901_v16  ;;  %v6471_v14 = vcombine.high %v904_v23, %v908_v24  ;;  %v957_v12 = vld [vmem:[#allocation9 + $0x538] sm:$0xff]  ;;  %v6512_v16 = vcombine.low %v945_v2, %v949_v3 }
 0x2ca   :  { %2628 = vmatprep.subr.bf16.mxu0 %v6417_v15  ;;  %v6473_v15 = vcombine.high %v905_v25, %v909_v26 }
 0x2cc   :  { %2547 = vmatpush1.bf16.msra.mxu1 %v6414_v30  ;;  %v6470_v30 = vcombine.low %v904_v23, %v908_v24  ;;  %v961_v23 = vld [vmem:[#allocation9 + $0x558] sm:$0xff] }
 0x2cd   :  { %2629 = vmatpush1.bf16.msra.mxu0 %v6416_v32  ;;  %2548 = vmatprep.subr.bf16.mxu1 %v6423_v33  ;;  %v6472_v32 = vcombine.low %v905_v25, %v909_v26  ;;  %v6479_v33 = vcombine.high %v912_v17, %v916_v19  ;;  %v965_v24 = vld [vmem:[#allocation9 + $0x578] sm:$0xff]  ;;  %v6520_v26 = vcombine.low %v953_v11, %v957_v12 }
 0x2ce   :  { %2630 = vmatprep.subr.bf16.mxu0 %v6425_v35  ;;  %v6481_v35 = vcombine.high %v913_v20, %v917_v28 }
 0x2d0   :  { %2549 = vmatpush1.bf16.msra.mxu1 %v6422_v41  ;;  %v6478_v41 = vcombine.low %v912_v17, %v916_v19  ;;  %v969_v17 = vld [vmem:[#allocation9 + $0x598] sm:$0xff] }
 0x2d1   :  { %2631 = vmatpush1.bf16.msra.mxu0 %v6424_v43  ;;  %2550 = vmatprep.subr.bf16.mxu1 %v6431_v44  ;;  %v6480_v43 = vcombine.low %v913_v20, %v917_v28  ;;  %v6487_v44 = vcombine.high %v920_v36, %v924_v37  ;;  %v973_v19 = vld [vmem:[#allocation9 + $0x5b8] sm:$0xff]  ;;  %v6528_v28 = vcombine.low %v961_v23, %v965_v24 }
 0x2d2   :  { %2632 = vmatprep.subr.bf16.mxu0 %v6433_v45  ;;  %v6489_v45 = vcombine.high %v921_v38, %v925_v39  ;;  %v977_v36 = vld [vmem:[#allocation9 + $0x5d8] sm:$0xff] }
 0x2d3   :  { %v981_v37 = vld [vmem:[#allocation9 + $0x5f8] sm:$0xff] }
 0x2d4   :  { %2551 = vmatpush1.bf16.msra.mxu1 %v6430_v53  ;;  %v933_v53 = vld [vmem:[#allocation9 + $0x478] sm:$0xff] }
 0x2d5   :  { %2633 = vmatpush1.bf16.msra.mxu0 %v6432_v54  ;;  %2552 = vmatprep.subr.bf16.mxu1 %v6439_v55  ;;  %v6488_v54 = vcombine.low %v921_v38, %v925_v39  ;;  %v6495_v55 = vcombine.high %v928_v46, %v932_v47  ;;  %v6497_v58 = vcombine.high %v929_v50, %v933_v53 }
 0x2d6   :  { %2634 = vmatprep.subr.bf16.mxu0 %v6441_v56  ;;  %v936_v56 = vld [vmem:[#allocation9 + $0x490] sm:$0xff]  ;;  %v6536_v39 = vcombine.low %v969_v17, %v973_v19 }
 0x2d8   :  { %2553 = vmatpush1.bf16.msra.mxu1 %v6438_v60  ;;  %v6494_v60 = vcombine.low %v928_v46, %v932_v47  ;;  %v985_v46 = vld [vmem:[#allocation9 + $0x618] sm:$0xff] }
 0x2d9   :  { %2635 = vmatpush1.bf16.msra.mxu0 %v6440_v61  ;;  %2554 = vmatprep.subr.bf16.mxu1 %v6447_v62  ;;  %v6496_v61 = vcombine.low %v929_v50, %v933_v53  ;;  %v6503_v62 = vcombine.high %v936_v56, %v940_v57  ;;  %v989_v47 = vld [vmem:[#allocation9 + $0x638] sm:$0xff]  ;;  %v6544_v50 = vcombine.low %v977_v36, %v981_v37 }
 0x2da   :  { %2636 = vmatprep.subr.bf16.mxu0 %v6449_v63  ;;  %v6505_v63 = vcombine.high %v937_v4, %v941_v59 }
 0x2dc   :  { %2555 = vmatpush1.bf16.msra.mxu1 %v6446_v6  ;;  %v6502_v6 = vcombine.low %v936_v56, %v940_v57  ;;  %v996_v56 = vld [vmem:[#allocation9 + $0x670] sm:$0xff]  ;;  %v993_v57 = vld [vmem:[#allocation9 + $0x658] sm:$0xff] }
 0x2dd   :  { %2637 = vmatpush1.bf16.msra.mxu0 %v6448_v7  ;;  %2556 = vmatprep.subr.bf16.mxu1 %v6455_v8  ;;  %v6511_v7 = vcombine.high %v944_v0, %v948_v1  ;;  %v6513_v8 = vcombine.high %v945_v2, %v949_v3 }
 0x2de   :  { %2638 = vmatprep.subr.bf16.mxu0 %v6457_v9  ;;  %v952_v9 = vld [vmem:[#allocation9 + $0x510] sm:$0xff] }
 0x2df   :  { %v6518_v25 = vcombine.low %v952_v9, %v956_v10 }
 0x2e0   :  { %2557 = vmatpush1.bf16.msra.mxu1 %v6454_v18  ;;  %v6519_v18 = vcombine.high %v952_v9, %v956_v10  ;;  %v1009_v9 = vld [vmem:[#allocation9 + $0x6d8] sm:$0xff] }
 0x2e1   :  { %2639 = vmatpush1.bf16.msra.mxu0 %v6456_v21  ;;  %2558 = vmatprep.subr.bf16.mxu1 %v6463_v51  ;;  %v6521_v21 = vcombine.high %v953_v11, %v957_v12  ;;  %v960_v51 = vld [vmem:[#allocation9 + $0x550] sm:$0xff]  ;;  %v1013_v10 = vld [vmem:[#allocation9 + $0x6f8] sm:$0xff] }
 0x2e2   :  { %2640 = vmatprep.subr.bf16.mxu0 %v6465_v22  ;;  %v964_v22 = vld [vmem:[#allocation9 + $0x570] sm:$0xff] }
 0x2e3   :  { %v6526_v20 = vcombine.low %v960_v51, %v964_v22 }
 0x2e4   :  { %2559 = vmatpush1.bf16.msra.mxu1 %v6462_v27  ;;  %v6527_v27 = vcombine.high %v960_v51, %v964_v22  ;;  %v1017_v51 = vld [vmem:[#allocation9 + $0x718] sm:$0xff] }
 0x2e5   :  { %2641 = vmatpush1.bf16.msra.mxu0 %v6464_v13  ;;  %2560 = vmatprep.subr.bf16.mxu1 %v6471_v14  ;;  %v6529_v13 = vcombine.high %v961_v23, %v965_v24  ;;  %v968_v14 = vld [vmem:[#allocation9 + $0x590] sm:$0xff]  ;;  %v1021_v22 = vld [vmem:[#allocation9 + $0x738] sm:$0xff]  ;;  %v6576_v24 = vcombine.low %v1009_v9, %v1013_v10 }
 0x2e6   :  { %2642 = vmatprep.subr.bf16.mxu0 %v6473_v15  ;;  %v972_v15 = vld [vmem:[#allocation9 + $0x5b0] sm:$0xff] }
 0x2e7   :  { %v6534_v38 = vcombine.low %v968_v14, %v972_v15 }
 0x2e8   :  { %2561 = vmatpush1.bf16.msra.mxu1 %v6470_v30  ;;  %v6535_v30 = vcombine.high %v968_v14, %v972_v15  ;;  %v1025_v14 = vld [vmem:[#allocation9 + $0x758] sm:$0xff] }
 0x2e9   :  { %2643 = vmatpush1.bf16.msra.mxu0 %v6472_v32  ;;  %2562 = vmatprep.subr.bf16.mxu1 %v6479_v33  ;;  %v6537_v32 = vcombine.high %v969_v17, %v973_v19  ;;  %v976_v33 = vld [vmem:[#allocation9 + $0x5d0] sm:$0xff]  ;;  %v1029_v15 = vld [vmem:[#allocation9 + $0x778] sm:$0xff]  ;;  %v6584_v19 = vcombine.low %v1017_v51, %v1021_v22 }
 0x2ea   :  { %2644 = vmatprep.subr.bf16.mxu0 %v6481_v35  ;;  %v980_v35 = vld [vmem:[#allocation9 + $0x5f0] sm:$0xff] }
 0x2ec   :  { %2563 = vmatpush1.bf16.msra.mxu1 %v6478_v41  ;;  %v6543_v41 = vcombine.high %v976_v33, %v980_v35 }
 0x2ed   :  { %2645 = vmatpush1.bf16.msra.mxu0 %v6480_v43  ;;  %2573 = vmatprep.subr.bf16.mxu1 %v6487_v44  ;;  %v6545_v43 = vcombine.high %v977_v36, %v981_v37  ;;  %v984_v44 = vld [vmem:[#allocation9 + $0x610] sm:$0xff]  ;;  %v6592_v37 = vcombine.low %v1025_v14, %v1029_v15 }
 0x2ee   :  { %2655 = vmatprep.subr.bf16.mxu0 %v6489_v45  ;;  %v988_v45 = vld [vmem:[#allocation9 + $0x630] sm:$0xff] }
 0x2ef   :  { %2565 = vmatmul.mubr.bf16.vlgmr.msra.gmra.mrb[4].mxu1 %v8408_v5  ;;  %v6551_v53 = vcombine.high %v984_v44, %v988_v45 }
 0x2f0   :  { %2647 = vmatmul.mubr.bf16.vlgmr.msra.gmra.mrb[16].mxu0 %v8408_v5  ;;  %2574 = vmatpush1.bf16.msra.mxu1 %v6486_v48  ;;  %v6504_v5 = vcombine.low %v937_v4, %v941_v59  ;;  %v6542_v48 = vcombine.low %v976_v33, %v980_v35  ;;  %v6550_v4 = vcombine.low %v984_v44, %v988_v45  ;;  %v1033_v33 = vld [vmem:[#allocation9 + $0x798] sm:$0xff] }
 0x2f1   :  { %2605 = vmatprep.mubr.bf16.mxu1 %v8430_v29  ;;  %2656 = vmatpush1.bf16.msra.mxu0 %v6488_v54  ;;  %v6553_v54 = vcombine.high %v985_v46, %v989_v47  ;;  %v6552_v59 = vcombine.low %v985_v46, %v989_v47  ;;  %v1037_v35 = vld [vmem:[#allocation9 + $0x7b8] sm:$0xff] }
 0x2f2   :  { %2687 = vmatprep.mubr.bf16.mxu0 %v8430_v29  ;;  %2575 = vmatprep.subr.bf16.mxu1 %v6495_v55  ;;  %v6510_v29 = vcombine.low %v944_v0, %v948_v1  ;;  %v992_v55 = vld [vmem:[#allocation9 + $0x650] sm:$0xff]  ;;  %v1001_v0 = vld [vmem:[#allocation9 + $0x698] sm:$0xff]  ;;  %v6600_v47 = vcombine.low %v1033_v33, %v1037_v35 }
 0x2f3   :  { %2657 = vmatprep.subr.bf16.mxu0 %v6497_v58  ;;  %v997_v58 = vld [vmem:[#allocation9 + $0x678] sm:$0xff]  ;;  %v6558_v2 = vcombine.low %v992_v55, %v996_v56 }
 0x2f4   :  { %2576 = vmatpush1.bf16.msra.mxu1 %v6494_v60  ;;  %v6559_v60 = vcombine.high %v992_v55, %v996_v56  ;;  %v1005_v1 = vld [vmem:[#allocation9 + $0x6b8] sm:$0xff]  ;;  %v6560_v3 = vcombine.low %v993_v57, %v997_v58  ;;  %v7359_v55 = vld [vmem:[#allocation12 + $0x4] ss:$28 sps:$4 sm:$0xff]   ;;  %v7362_v56 = vld [vmem:[#allocation12 + $0xc] ss:$28 sps:$4 sm:$0xff]  }
 0x2f5   :  { %2658 = vmatpush1.bf16.msra.mxu0 %v6496_v61  ;;  %2577 = vmatprep.subr.bf16.mxu1 %v6503_v62  ;;  %v6561_v61 = vcombine.high %v993_v57, %v997_v58  ;;  %v1000_v62 = vld [vmem:[#allocation9 + $0x690] sm:$0xff]  ;;  %v6568_v12 = vcombine.low %v1001_v0, %v1005_v1  ;;  %v1041_v44 = vld [vmem:[#allocation9 + $0x7d8] sm:$0xff]  ;;  %v7357_v57 = vld [vmem:[#allocation12] ss:$28 sps:$4 sm:$0xff]  }
 0x2f6   :  { %2659 = vmatprep.subr.bf16.mxu0 %v6505_v63  ;;  %v1004_v63 = vld [vmem:[#allocation9 + $0x6b0] sm:$0xff]  ;;  %v1045_v45 = vld [vmem:[#allocation9 + $0x7f8] sm:$0xff] }
 0x2f7   :  { %v6566_v11 = vcombine.low %v1000_v62, %v1004_v63  ;;  %v7360_v58 = vld [vmem:[#allocation12 + $0x8] ss:$28 sps:$4 sm:$0xff]  }
 0x2f8   :  { %2578 = vmatpush1.bf16.msra.mxu1 %v6502_v6  ;;  %v6567_v6 = vcombine.high %v1000_v62, %v1004_v63  ;;  %v7371_v62 = vld [vmem:[#allocation12 + $0x74] ss:$28 sps:$4 sm:$0xff]   ;;  %v7374_v63 = vld [vmem:[#allocation12 + $0x7c] ss:$28 sps:$4 sm:$0xff]  }
 0x2f9   :  { %2660 = vmatpush1.bf16.msra.mxu0 %v6504_v5  ;;  %2579 = vmatprep.subr.bf16.mxu1 %v6511_v7  ;;  %v6569_v5 = vcombine.high %v1001_v0, %v1005_v1  ;;  %v1008_v7 = vld [vmem:[#allocation9 + $0x6d0] sm:$0xff]  ;;  %v7372_v1 = vld [vmem:[#allocation12 + $0x78] ss:$28 sps:$4 sm:$0xff]  }
 0x2fa   :  { %2661 = vmatprep.subr.bf16.mxu0 %v6513_v8  ;;  %v1012_v8 = vld [vmem:[#allocation9 + $0x6f0] sm:$0xff] }
 0x2fb   :  { %v6574_v23 = vcombine.low %v1008_v7, %v1012_v8  ;;  %v7369_v0 = vld [vmem:[#allocation12 + $0x70] ss:$28 sps:$4 sm:$0xff]  }
 0x2fc   :  { %2580 = vmatpush1.bf16.msra.mxu1 %v6510_v29  ;;  %v6575_v29 = vcombine.high %v1008_v7, %v1012_v8  ;;  %v7386_v7 = vld [vmem:[#allocation12 + $0xec] ss:$28 sps:$4 sm:$0xff]   ;;  %v7381_v8 = vld [vmem:[#allocation12 + $0xe0] ss:$28 sps:$4 sm:$0xff]  }
 0x2fd   :  { %2662 = vmatpush1.bf16.msra.mxu0 %v6512_v16  ;;  %2581 = vmatprep.subr.bf16.mxu1 %v6519_v18  ;;  %v6577_v16 = vcombine.high %v1009_v9, %v1013_v10  ;;  %v1016_v18 = vld [vmem:[#allocation9 + $0x710] sm:$0xff]  ;;  %v7389_v10 = vld [vmem:[#allocation12 + $0x11c] ss:$28 sps:$4 sm:$0xff]  }
 0x2fe   :  { %2663 = vmatprep.subr.bf16.mxu0 %v6521_v21  ;;  %v1020_v21 = vld [vmem:[#allocation9 + $0x730] sm:$0xff] }
 0x2ff   :  { %v6582_v17 = vcombine.low %v1016_v18, %v1020_v21  ;;  %v7384_v9 = vld [vmem:[#allocation12 + $0xe8] ss:$28 sps:$4 sm:$0xff]  }
 0x300   :  { %2582 = vmatpush1.bf16.msra.mxu1 %v6518_v25  ;;  %v6583_v25 = vcombine.high %v1016_v18, %v1020_v21  ;;  %v7398_v18 = vld [vmem:[#allocation12 + $0x15c] ss:$28 sps:$4 sm:$0xff]   ;;  %v7393_v21 = vld [vmem:[#allocation12 + $0x150] ss:$28 sps:$4 sm:$0xff]  }
 0x301   :  { %2664 = vmatpush1.bf16.msra.mxu0 %v6520_v26  ;;  %2583 = vmatprep.subr.bf16.mxu1 %v6527_v27  ;;  %v6585_v26 = vcombine.high %v1017_v51, %v1021_v22  ;;  %v1024_v27 = vld [vmem:[#allocation9 + $0x750] sm:$0xff]  ;;  %v7396_v51 = vld [vmem:[#allocation12 + $0x158] ss:$28 sps:$4 sm:$0xff]  }
 0x302   :  { %2665 = vmatprep.subr.bf16.mxu0 %v6529_v13  ;;  %v1028_v13 = vld [vmem:[#allocation9 + $0x770] sm:$0xff] }
 0x303   :  { %v6590_v36 = vcombine.low %v1024_v27, %v1028_v13  ;;  %v7401_v22 = vld [vmem:[#allocation12 + $0x18c] ss:$28 sps:$4 sm:$0xff]  }
 0x304   :  { %2584 = vmatpush1.bf16.msra.mxu1 %v6526_v20  ;;  %v6591_v20 = vcombine.high %v1024_v27, %v1028_v13  ;;  %v7410_v27 = vld [vmem:[#allocation12 + $0x1cc] ss:$28 sps:$4 sm:$0xff]   ;;  %v7405_v13 = vld [vmem:[#allocation12 + $0x1c0] ss:$28 sps:$4 sm:$0xff]  }
 0x305   :  { %2666 = vmatpush1.bf16.msra.mxu0 %v6528_v28  ;;  %2585 = vmatprep.subr.bf16.mxu1 %v6535_v30  ;;  %v6593_v28 = vcombine.high %v1025_v14, %v1029_v15  ;;  %v1032_v30 = vld [vmem:[#allocation9 + $0x790] sm:$0xff]  ;;  %v7413_v15 = vld [vmem:[#allocation12 + $0x1fc] ss:$28 sps:$4 sm:$0xff]  }
 0x306   :  { %2667 = vmatprep.subr.bf16.mxu0 %v6537_v32  ;;  %v1036_v32 = vld [vmem:[#allocation9 + $0x7b0] sm:$0xff] }
 0x307   :  { %v6598_v46 = vcombine.low %v1032_v30, %v1036_v32  ;;  %v7408_v14 = vld [vmem:[#allocation12 + $0x1c8] ss:$28 sps:$4 sm:$0xff]  }
 0x308   :  { %2586 = vmatpush1.bf16.msra.mxu1 %v6534_v38  ;;  %v6599_v38 = vcombine.high %v1032_v30, %v1036_v32  ;;  %v7422_v30 = vld [vmem:[#allocation12 + $0x23c] ss:$28 sps:$4 sm:$0xff]   ;;  %v7417_v32 = vld [vmem:[#allocation12 + $0x230] ss:$28 sps:$4 sm:$0xff]  }
 0x309   :  { %2668 = vmatpush1.bf16.msra.mxu0 %v6536_v39  ;;  %2587 = vmatprep.subr.bf16.mxu1 %v6543_v41  ;;  %v6601_v39 = vcombine.high %v1033_v33, %v1037_v35  ;;  %v1040_v41 = vld [vmem:[#allocation9 + $0x7d0] sm:$0xff]  ;;  %v7420_v33 = vld [vmem:[#allocation12 + $0x238] ss:$28 sps:$4 sm:$0xff]  }
 0x30a   :  { %2669 = vmatprep.subr.bf16.mxu0 %v6545_v43  ;;  %v1044_v43 = vld [vmem:[#allocation9 + $0x7f0] sm:$0xff] }
 0x30b   :  { %v7425_v35 = vld [vmem:[#allocation12 + $0x26c] ss:$28 sps:$4 sm:$0xff]  }
 0x30c   :  { %2588 = vmatpush1.bf16.msra.mxu1 %v6542_v48  ;;  %v6607_v48 = vcombine.high %v1040_v41, %v1044_v43 }
 0x30d   :  { %2670 = vmatpush1.bf16.msra.mxu0 %v6544_v50  ;;  %2589 = vmatprep.subr.bf16.mxu1 %v6551_v53  ;;  %v6609_v50 = vcombine.high %v1041_v44, %v1045_v45  ;;  %v6606_v53 = vcombine.low %v1040_v41, %v1044_v43  ;;  %v7434_v41 = vld [vmem:[#allocation12 + $0x2ac] ss:$28 sps:$4 sm:$0xff]   ;;  %v7429_v43 = vld [vmem:[#allocation12 + $0x2a0] ss:$28 sps:$4 sm:$0xff]  }
 0x30e   :  { %2671 = vmatprep.subr.bf16.mxu0 %v6553_v54  ;;  %v6608_v54 = vcombine.low %v1041_v44, %v1045_v45  ;;  %v7432_v44 = vld [vmem:[#allocation12 + $0x2a8] ss:$28 sps:$4 sm:$0xff]   ;;  %v7437_v45 = vld [vmem:[#allocation12 + $0x2dc] ss:$28 sps:$4 sm:$0xff]  }
 0x310   :  { %2590 = vmatpush1.bf16.msra.mxu1 %v6550_v4  ;;  %v7365_v4 = vld [vmem:[#allocation12 + $0x3c] ss:$28 sps:$4 sm:$0xff]  }
 0x311   :  { %2672 = vmatpush1.bf16.msra.mxu0 %v6552_v59  ;;  %2591 = vmatprep.subr.bf16.mxu1 %v6559_v60  ;;  %v7368_v59 = vld [vmem:[#allocation12 + $0x44] ss:$28 sps:$4 sm:$0xff]   ;;  %v7363_v60 = vld [vmem:[#allocation12 + $0x38] ss:$28 sps:$4 sm:$0xff]  }
 0x312   :  { %2673 = vmatprep.subr.bf16.mxu0 %v6561_v61  ;;  %v7366_v61 = vld [vmem:[#allocation12 + $0x40] ss:$28 sps:$4 sm:$0xff]  }
 0x314   :  { %2592 = vmatpush1.bf16.msra.mxu1 %v6558_v2  ;;  %v7377_v2 = vld [vmem:[#allocation12 + $0xac] ss:$28 sps:$4 sm:$0xff]  }
 0x315   :  { %2674 = vmatpush1.bf16.msra.mxu0 %v6560_v3  ;;  %2593 = vmatprep.subr.bf16.mxu1 %v6567_v6  ;;  %v7380_v3 = vld [vmem:[#allocation12 + $0xb4] ss:$28 sps:$4 sm:$0xff]   ;;  %v7375_v6 = vld [vmem:[#allocation12 + $0xa8] ss:$28 sps:$4 sm:$0xff]  }
 0x316   :  { %2675 = vmatprep.subr.bf16.mxu0 %v6569_v5  ;;  %v7383_v5 = vld [vmem:[#allocation12 + $0xe4] ss:$28 sps:$4 sm:$0xff]  }
 0x318   :  { %2594 = vmatpush1.bf16.msra.mxu1 %v6566_v11  ;;  %v7392_v11 = vld [vmem:[#allocation12 + $0x124] ss:$28 sps:$4 sm:$0xff]  }
 0x319   :  { %2676 = vmatpush1.bf16.msra.mxu0 %v6568_v12  ;;  %2595 = vmatprep.subr.bf16.mxu1 %v6575_v29  ;;  %v7387_v12 = vld [vmem:[#allocation12 + $0x118] ss:$28 sps:$4 sm:$0xff]   ;;  %v7390_v29 = vld [vmem:[#allocation12 + $0x120] ss:$28 sps:$4 sm:$0xff]  }
 0x31a   :  { %2677 = vmatprep.subr.bf16.mxu0 %v6577_v16  ;;  %v7395_v16 = vld [vmem:[#allocation12 + $0x154] ss:$28 sps:$4 sm:$0xff]  }
 0x31c   :  { %2596 = vmatpush1.bf16.msra.mxu1 %v6574_v23  ;;  %v7404_v23 = vld [vmem:[#allocation12 + $0x194] ss:$28 sps:$4 sm:$0xff]  }
 0x31d   :  { %2678 = vmatpush1.bf16.msra.mxu0 %v6576_v24  ;;  %2597 = vmatprep.subr.bf16.mxu1 %v6583_v25  ;;  %v7399_v24 = vld [vmem:[#allocation12 + $0x188] ss:$28 sps:$4 sm:$0xff]   ;;  %v7402_v25 = vld [vmem:[#allocation12 + $0x190] ss:$28 sps:$4 sm:$0xff]  }
 0x31e   :  { %2679 = vmatprep.subr.bf16.mxu0 %v6585_v26  ;;  %v7407_v26 = vld [vmem:[#allocation12 + $0x1c4] ss:$28 sps:$4 sm:$0xff]  }
 0x320   :  { %2598 = vmatpush1.bf16.msra.mxu1 %v6582_v17  ;;  %v7416_v17 = vld [vmem:[#allocation12 + $0x204] ss:$28 sps:$4 sm:$0xff]  }
 0x321   :  { %2680 = vmatpush1.bf16.msra.mxu0 %v6584_v19  ;;  %2599 = vmatprep.subr.bf16.mxu1 %v6591_v20  ;;  %v7411_v19 = vld [vmem:[#allocation12 + $0x1f8] ss:$28 sps:$4 sm:$0xff]   ;;  %v7414_v20 = vld [vmem:[#allocation12 + $0x200] ss:$28 sps:$4 sm:$0xff]  }
 0x322   :  { %2681 = vmatprep.subr.bf16.mxu0 %v6593_v28  ;;  %v7419_v28 = vld [vmem:[#allocation12 + $0x234] ss:$28 sps:$4 sm:$0xff]  }
 0x324   :  { %2600 = vmatpush1.bf16.msra.mxu1 %v6590_v36  ;;  %v7428_v36 = vld [vmem:[#allocation12 + $0x274] ss:$28 sps:$4 sm:$0xff]  }
 0x325   :  { %2682 = vmatpush1.bf16.msra.mxu0 %v6592_v37  ;;  %2601 = vmatprep.subr.bf16.mxu1 %v6599_v38  ;;  %v7423_v37 = vld [vmem:[#allocation12 + $0x268] ss:$28 sps:$4 sm:$0xff]   ;;  %v7426_v38 = vld [vmem:[#allocation12 + $0x270] ss:$28 sps:$4 sm:$0xff]  }
 0x326   :  { %2683 = vmatprep.subr.bf16.mxu0 %v6601_v39  ;;  %v7431_v39 = vld [vmem:[#allocation12 + $0x2a4] ss:$28 sps:$4 sm:$0xff]  }
 0x328   :  { %2602 = vmatpush1.bf16.msra.mxu1 %v6598_v46  ;;  %v7440_v46 = vld [vmem:[#allocation12 + $0x2e4] ss:$28 sps:$4 sm:$0xff]  }
 0x329   :  { %2684 = vmatpush1.bf16.msra.mxu0 %v6600_v47  ;;  %2603 = vmatprep.subr.bf16.mxu1 %v6607_v48  ;;  %v7435_v47 = vld [vmem:[#allocation12 + $0x2d8] ss:$28 sps:$4 sm:$0xff]   ;;  %v7438_v48 = vld [vmem:[#allocation12 + $0x2e0] ss:$28 sps:$4 sm:$0xff]  }
 0x32a   :  { %2685 = vmatprep.subr.bf16.mxu0 %v6609_v50  ;;  %v7443_v50 = vld [vmem:[#allocation12 + $0x314] ss:$28 sps:$4 sm:$0xff]  }
 0x32c   :  { %2604 = vmatpush1.bf16.msra.mxu1 %v6606_v53  ;;  %v7446_v53 = vld [vmem:[#allocation12 + $0x31c] ss:$28 sps:$4 sm:$0xff]  }
 0x32d   :  { %2686 = vmatpush1.bf16.msra.mxu0 %v6608_v54  ;;  %5573 = vmatprep.subr.bf16.mxu1 %v7359_v55  ;;  %v7441_v54 = vld [vmem:[#allocation12 + $0x310] ss:$28 sps:$4 sm:$0xff]   ;;  %v7444_v55 = vld [vmem:[#allocation12 + $0x318] ss:$28 sps:$4 sm:$0xff]  }
 0x32e   :  { %5737 = vmatprep.subr.bf16.mxu0 %v7362_v56  ;;  %v7449_v56 = vld [vmem:[#allocation12 + $0x34c] ss:$28 sps:$4 sm:$0xff]  }
 0x32f   :  { %2606 = vmatmul.mubr.bf16.vlgmr.msra.gmra.mrb[4].mxu1 %v8432_v31 }
 0x330   :  { %2688 = vmatmul.mubr.bf16.vlgmr.msra.gmra.mrb[16].mxu0 %v8432_v31  ;;  %5574 = vmatpush1.bf16.msra.mxu1 %v7357_v57  ;;  %v7378_v31 = vld [vmem:[#allocation12 + $0xb0] ss:$28 sps:$4 sm:$0xff]  }
 0x331   :  { %5738 = vmatpush1.bf16.msra.mxu0 %v7360_v58  ;;  %5575 = vmatprep.subr.bf16.mxu1 %v7365_v4  ;;  %v7452_v57 = vld [vmem:[#allocation12 + $0x354] ss:$28 sps:$4 sm:$0xff]   ;;  %v7447_v58 = vld [vmem:[#allocation12 + $0x348] ss:$28 sps:$4 sm:$0xff]  }
 0x332   :  { %5739 = vmatprep.subr.bf16.mxu0 %v7368_v59  ;;  %v7450_v4 = vld [vmem:[#allocation12 + $0x350] ss:$28 sps:$4 sm:$0xff]   ;;  %v7455_v59 = vld [vmem:[#allocation12 + $0x384] ss:$28 sps:$4 sm:$0xff]  }
 0x334   :  { %5576 = vmatpush1.bf16.msra.mxu1 %v7363_v60  ;;  %v7458_v60 = vld [vmem:[#allocation12 + $0x38c] ss:$28 sps:$4 sm:$0xff]  }
 0x335   :  { %5740 = vmatpush1.bf16.msra.mxu0 %v7366_v61  ;;  %5577 = vmatprep.subr.bf16.mxu1 %v7371_v62  ;;  %v8446_v61 = vld [vmem:[#allocation10] sm:$0xff] }
 0x336   :  { %5741 = vmatprep.subr.bf16.mxu0 %v7374_v63  ;;  %v1051_v62 = vrot.slane %v8446_v61, %v8373_v40  ;;  %v1055_v63 = vrot.slane %v8446_v61, %v8376_v42 }
 0x338   :  { %5578 = vmatpush1.bf16.msra.mxu1 %v7369_v0  ;;  %v1063_v0 = vrot.slane %v8446_v61, %v8424_v52 }
 0x339   :  { %5742 = vmatpush1.bf16.msra.mxu0 %v7372_v1  ;;  %5579 = vmatprep.subr.bf16.mxu1 %v7377_v2 }
 0x33a   :  { %5743 = vmatprep.subr.bf16.mxu0 %v7380_v3 }
 0x33c   :  { %5580 = vmatpush1.bf16.msra.mxu1 %v7375_v6 }
 0x33d   :  { %5744 = vmatpush1.bf16.msra.mxu0 %v7378_v31  ;;  %5581 = vmatprep.subr.bf16.mxu1 %v7383_v5 }
 0x33e   :  { %5745 = vmatprep.subr.bf16.mxu0 %v7386_v7 }
 0x340   :  { %5582 = vmatpush1.bf16.msra.mxu1 %v7381_v8 }
 0x341   :  { %5746 = vmatpush1.bf16.msra.mxu0 %v7384_v9  ;;  %5583 = vmatprep.subr.bf16.mxu1 %v7389_v10 }
 0x342   :  { %5747 = vmatprep.subr.bf16.mxu0 %v7392_v11 }
 0x344   :  { %5584 = vmatpush1.bf16.msra.mxu1 %v7387_v12 }
 0x345   :  { %5748 = vmatpush1.bf16.msra.mxu0 %v7390_v29  ;;  %5585 = vmatprep.subr.bf16.mxu1 %v7395_v16 }
 0x346   :  { %5749 = vmatprep.subr.bf16.mxu0 %v7398_v18 }
 0x348   :  { %5586 = vmatpush1.bf16.msra.mxu1 %v7393_v21 }
 0x349   :  { %5750 = vmatpush1.bf16.msra.mxu0 %v7396_v51  ;;  %5587 = vmatprep.subr.bf16.mxu1 %v7401_v22 }
 0x34a   :  { %5751 = vmatprep.subr.bf16.mxu0 %v7404_v23  ;;  %v7453_v23 = vld [vmem:[#allocation12 + $0x380] ss:$28 sps:$4 sm:$0xff]  }
 0x34c   :  { %5588 = vmatpush1.bf16.msra.mxu1 %v7399_v24  ;;  %v7456_v24 = vld [vmem:[#allocation12 + $0x388] ss:$28 sps:$4 sm:$0xff]  }
 0x34d   :  { %5752 = vmatpush1.bf16.msra.mxu0 %v7402_v25  ;;  %5589 = vmatprep.subr.bf16.mxu1 %v7407_v26  ;;  %v7461_v26 = vld [vmem:[#allocation12 + $0x3bc] ss:$28 sps:$4 sm:$0xff]  }
 0x34e   :  { %5753 = vmatprep.subr.bf16.mxu0 %v7410_v27  ;;  %v7464_v27 = vld [vmem:[#allocation12 + $0x3c4] ss:$28 sps:$4 sm:$0xff]  }
 0x350   :  { %5590 = vmatpush1.bf16.msra.mxu1 %v7405_v13 }
 0x351   :  { %5754 = vmatpush1.bf16.msra.mxu0 %v7408_v14  ;;  %5591 = vmatprep.subr.bf16.mxu1 %v7413_v15  ;;  %v7459_v14 = vld [vmem:[#allocation12 + $0x3b8] ss:$28 sps:$4 sm:$0xff]   ;;  %v7462_v15 = vld [vmem:[#allocation12 + $0x3c0] ss:$28 sps:$4 sm:$0xff]  }
 0x352   :  { %5755 = vmatprep.subr.bf16.mxu0 %v7416_v17  ;;  %v7467_v17 = vld [vmem:[#allocation12 + $0x3f4] ss:$28 sps:$4 sm:$0xff]  }
 0x354   :  { %5592 = vmatpush1.bf16.msra.mxu1 %v7411_v19  ;;  %v7470_v19 = vld [vmem:[#allocation12 + $0x3fc] ss:$28 sps:$4 sm:$0xff]  }
 0x355   :  { %5756 = vmatpush1.bf16.msra.mxu0 %v7414_v20  ;;  %5593 = vmatprep.subr.bf16.mxu1 %v7419_v28  ;;  %v7465_v20 = vld [vmem:[#allocation12 + $0x3f0] ss:$28 sps:$4 sm:$0xff]   ;;  %v7468_v28 = vld [vmem:[#allocation12 + $0x3f8] ss:$28 sps:$4 sm:$0xff]  }
 0x356   :  { %5757 = vmatprep.subr.bf16.mxu0 %v7422_v30  ;;  %v7473_v30 = vld [vmem:[#allocation12 + $0x42c] ss:$28 sps:$4 sm:$0xff]  }
 0x358   :  { %5594 = vmatpush1.bf16.msra.mxu1 %v7417_v32  ;;  %v7476_v32 = vld [vmem:[#allocation12 + $0x434] ss:$28 sps:$4 sm:$0xff]  }
 0x359   :  { %5758 = vmatpush1.bf16.msra.mxu0 %v7420_v33  ;;  %5595 = vmatprep.subr.bf16.mxu1 %v7425_v35  ;;  %v7471_v33 = vld [vmem:[#allocation12 + $0x428] ss:$28 sps:$4 sm:$0xff]   ;;  %v7474_v35 = vld [vmem:[#allocation12 + $0x430] ss:$28 sps:$4 sm:$0xff]  }
 0x35a   :  { %5759 = vmatprep.subr.bf16.mxu0 %v7428_v36  ;;  %v7479_v36 = vld [vmem:[#allocation12 + $0x464] ss:$28 sps:$4 sm:$0xff]  }
 0x35c   :  { %5596 = vmatpush1.bf16.msra.mxu1 %v7423_v37  ;;  %v7482_v37 = vld [vmem:[#allocation12 + $0x46c] ss:$28 sps:$4 sm:$0xff]  }
 0x35d   :  { %5760 = vmatpush1.bf16.msra.mxu0 %v7426_v38  ;;  %5597 = vmatprep.subr.bf16.mxu1 %v7431_v39  ;;  %v7477_v38 = vld [vmem:[#allocation12 + $0x460] ss:$28 sps:$4 sm:$0xff]   ;;  %v7480_v39 = vld [vmem:[#allocation12 + $0x468] ss:$28 sps:$4 sm:$0xff]  }
 0x35e   :  { %5761 = vmatprep.subr.bf16.mxu0 %v7434_v41  ;;  %v7485_v41 = vld [vmem:[#allocation12 + $0x49c] ss:$28 sps:$4 sm:$0xff]  }
 0x360   :  { %5598 = vmatpush1.bf16.msra.mxu1 %v7429_v43  ;;  %v7488_v43 = vld [vmem:[#allocation12 + $0x4a4] ss:$28 sps:$4 sm:$0xff]  }
 0x361   :  { %5762 = vmatpush1.bf16.msra.mxu0 %v7432_v44  ;;  %5599 = vmatprep.subr.bf16.mxu1 %v7437_v45  ;;  %v7483_v44 = vld [vmem:[#allocation12 + $0x498] ss:$28 sps:$4 sm:$0xff]   ;;  %v7486_v45 = vld [vmem:[#allocation12 + $0x4a0] ss:$28 sps:$4 sm:$0xff]  }
 0x362   :  { %5763 = vmatprep.subr.bf16.mxu0 %v7440_v46  ;;  %v7491_v46 = vld [vmem:[#allocation12 + $0x4d4] ss:$28 sps:$4 sm:$0xff]  }
 0x364   :  { %5600 = vmatpush1.bf16.msra.mxu1 %v7435_v47  ;;  %v7494_v47 = vld [vmem:[#allocation12 + $0x4dc] ss:$28 sps:$4 sm:$0xff]  }
 0x365   :  { %5764 = vmatpush1.bf16.msra.mxu0 %v7438_v48  ;;  %5601 = vmatprep.subr.bf16.mxu1 %v7443_v50  ;;  %v7489_v48 = vld [vmem:[#allocation12 + $0x4d0] ss:$28 sps:$4 sm:$0xff]   ;;  %v7492_v50 = vld [vmem:[#allocation12 + $0x4d8] ss:$28 sps:$4 sm:$0xff]  }
 0x366   :  { %5765 = vmatprep.subr.bf16.mxu0 %v7446_v53  ;;  %v7497_v53 = vld [vmem:[#allocation12 + $0x50c] ss:$28 sps:$4 sm:$0xff]  }
 0x368   :  { %5602 = vmatpush1.bf16.msra.mxu1 %v7441_v54  ;;  %v7500_v54 = vld [vmem:[#allocation12 + $0x514] ss:$28 sps:$4 sm:$0xff]  }
 0x369   :  { %5766 = vmatpush1.bf16.msra.mxu0 %v7444_v55  ;;  %5603 = vmatprep.subr.bf16.mxu1 %v7449_v56  ;;  %v7495_v55 = vld [vmem:[#allocation12 + $0x508] ss:$28 sps:$4 sm:$0xff]   ;;  %v7498_v56 = vld [vmem:[#allocation12 + $0x510] ss:$28 sps:$4 sm:$0xff]  }
 0x36a   :  { %5767 = vmatprep.subr.bf16.mxu0 %v7452_v57  ;;  %v7503_v57 = vld [vmem:[#allocation12 + $0x544] ss:$28 sps:$4 sm:$0xff]  }
 0x36c   :  { %5604 = vmatpush1.bf16.msra.mxu1 %v7447_v58  ;;  %v7506_v58 = vld [vmem:[#allocation12 + $0x54c] ss:$28 sps:$4 sm:$0xff]  }
 0x36d   :  { %5768 = vmatpush1.bf16.msra.mxu0 %v7450_v4  ;;  %5614 = vmatprep.subr.bf16.mxu1 %v7455_v59  ;;  %v7501_v4 = vld [vmem:[#allocation12 + $0x540] ss:$28 sps:$4 sm:$0xff]   ;;  %v7504_v59 = vld [vmem:[#allocation12 + $0x548] ss:$28 sps:$4 sm:$0xff]  }
 0x36e   :  { %5778 = vmatprep.subr.bf16.mxu0 %v7458_v60  ;;  %v7509_v60 = vld [vmem:[#allocation12 + $0x57c] ss:$28 sps:$4 sm:$0xff]  }
 0x382   :  { %v2443_v1 = vpop.f32.mrb[0].mxu1  ;;  %v8454_v2 = vpop.f32.mrb[12].mxu0 }
 0x383   :  { %v7154_v3 = vadd.f32 %v2443_v1, %v1051_v62  ;;  %v2445_v6 = vpop.f32.mrb[1].mxu1  ;;  %v2527_v31 = vpop.f32.mrb[13].mxu0  ;;  %v7512_v62 = vld [vmem:[#allocation12 + $0x584] ss:$28 sps:$4 sm:$0xff]   ;;  %v7515_v1 = vld [vmem:[#allocation12 + $0x5b4] ss:$28 sps:$4 sm:$0xff]  }
 0x384   :  { %v7155_v5 = vadd.f32 %v2445_v6, %v1055_v63  ;;  %v7157_v7 = vadd.f32 %v2527_v31, %v1063_v0  ;;  %v2447_v8 = vpop.f32.mrb[2].mxu1  ;;  %v2529_v9 = vpop.f32.mrb[14].mxu0  ;;  %v7507_v63 = vld [vmem:[#allocation12 + $0x578] ss:$28 sps:$4 sm:$0xff]   ;;  %v7510_v0 = vld [vmem:[#allocation12 + $0x580] ss:$28 sps:$4 sm:$0xff]  }
 0x385   :  { %v2696_v10 = vmul.f32 0.2, %v7154_v3  ;;  %v2448_v11 = vpop.f32.mrb[3].mxu1  ;;  %v2530_v12 = vpop.f32.mrb[15].mxu0  ;;  %v7513_v6 = vld [vmem:[#allocation12 + $0x5b0] ss:$28 sps:$4 sm:$0xff]  }
 0x386   :  { %v2697_v29 = vmul.f32 0.2, %v7155_v5  ;;  %v2699_v16 = vmul.f32 0.2, %v7157_v7  ;;  %v7516_v31 = vld [vmem:[#allocation12 + $0x5b8] ss:$28 sps:$4 sm:$0xff]  }
 0x387   :  { %v2704_v18 = vmax.f32 %v7154_v3, %v2696_v10  ;;  %v7518_v3 = vld [vmem:[#allocation12 + $0x5bc] ss:$28 sps:$4 sm:$0xff]   ;;  %v7519_v8 = vld [vmem:[#allocation12 + $0x5e8] ss:$28 sps:$4 sm:$0xff]   ;;  %v7522_v9 = vld [vmem:[#allocation12 + $0x5f0] ss:$28 sps:$4 sm:$0xff]  }
 0x388   :  { %v2705_v21 = vmax.f32 %v7155_v5, %v2697_v29  ;;  %v2707_v51 = vmax.f32 %v7157_v7, %v2699_v16  ;;  %v7521_v5 = vld [vmem:[#allocation12 + $0x5ec] ss:$28 sps:$4 sm:$0xff]   ;;  %v7524_v7 = vld [vmem:[#allocation12 + $0x5f4] ss:$28 sps:$4 sm:$0xff]   ;;  %v7527_v10 = vld [vmem:[#allocation12 + $0x624] ss:$28 sps:$4 sm:$0xff]   ;;  %v1059_v16 = vrot.slane %v8446_v61, %v8421_v49 }
 0x389   :  { %v8458_v25 = vpack.c.bf16 %v2704_v18, %v2704_v18  ;;  %v7530_v11 = vld [vmem:[#allocation12 + $0x62c] ss:$28 sps:$4 sm:$0xff]   ;;  %v7525_v12 = vld [vmem:[#allocation12 + $0x620] ss:$28 sps:$4 sm:$0xff]  }
 0x38a   :  { %v8456_v22 = vpack.c.bf16 %v2705_v21, %v2705_v21  ;;  %v8462_v13 = vpack.c.bf16 %v2707_v51, %v2707_v51  ;;  %v7528_v29 = vld [vmem:[#allocation12 + $0x628] ss:$28 sps:$4 sm:$0xff]   ;;  %v7533_v18 = vld [vmem:[#allocation12 + $0x65c] ss:$28 sps:$4 sm:$0xff]  }
 0x38b   :  { %v7536_v21 = vld [vmem:[#allocation12 + $0x664] ss:$28 sps:$4 sm:$0xff]   ;;  %v7531_v51 = vld [vmem:[#allocation12 + $0x658] ss:$28 sps:$4 sm:$0xff]  }
 0x38c   :  { %5605 = vmatprep.mubr.bf16.mxu1 %v8456_v22  ;;  %5769 = vmatprep.mubr.bf16.mxu0 %v8456_v22 }
 0x38d   :  { %5606 = vmatmul.mubr.bf16.vlgmr.msra.gmra.mrb[8].mxu1 %v8458_v25  ;;  %5770 = vmatmul.mubr.bf16.vlgmr.msra.gmra.mrb[20].mxu0 %v8458_v25 }
 0x38e   :  { %5615 = vmatpush1.bf16.msra.mxu1 %v7453_v23  ;;  %5779 = vmatpush1.bf16.msra.mxu0 %v7456_v24  ;;  %v7534_v23 = vld [vmem:[#allocation12 + $0x660] ss:$28 sps:$4 sm:$0xff]   ;;  %v7156_v24 = vadd.f32 %v8454_v2, %v1059_v16  ;;  %v7603_v16 = vld [vmem:[#allocation12 + $0x8f8] ss:$28 sps:$4 sm:$0xff]  }
 0x38f   :  { %5646 = vmatprep.mubr.bf16.mxu1 %v8462_v13  ;;  %5810 = vmatprep.mubr.bf16.mxu0 %v8462_v13  ;;  %v7551_v2 = vld [vmem:[#allocation12 + $0x704] ss:$28 sps:$4 sm:$0xff]  }
 0x390   :  { %5616 = vmatprep.subr.bf16.mxu1 %v7461_v26  ;;  %5780 = vmatprep.subr.bf16.mxu0 %v7464_v27  ;;  %v7539_v26 = vld [vmem:[#allocation12 + $0x694] ss:$28 sps:$4 sm:$0xff]   ;;  %v7542_v27 = vld [vmem:[#allocation12 + $0x69c] ss:$28 sps:$4 sm:$0xff]  }
 0x392   :  { %5617 = vmatpush1.bf16.msra.mxu1 %v7459_v14  ;;  %5781 = vmatpush1.bf16.msra.mxu0 %v7462_v15  ;;  %v7537_v14 = vld [vmem:[#allocation12 + $0x690] ss:$28 sps:$4 sm:$0xff]   ;;  %v7540_v15 = vld [vmem:[#allocation12 + $0x698] ss:$28 sps:$4 sm:$0xff]  }
 0x393   :  { %5618 = vmatprep.subr.bf16.mxu1 %v7467_v17  ;;  %5782 = vmatprep.subr.bf16.mxu0 %v7470_v19  ;;  %v2698_v17 = vmul.f32 0.2, %v7156_v24  ;;  %v7545_v19 = vld [vmem:[#allocation12 + $0x6cc] ss:$28 sps:$4 sm:$0xff]  }
 0x396   :  { %5619 = vmatpush1.bf16.msra.mxu1 %v7465_v20  ;;  %5783 = vmatpush1.bf16.msra.mxu0 %v7468_v28  ;;  %v7548_v20 = vld [vmem:[#allocation12 + $0x6d4] ss:$28 sps:$4 sm:$0xff]   ;;  %v7543_v28 = vld [vmem:[#allocation12 + $0x6c8] ss:$28 sps:$4 sm:$0xff]  }
 0x397   :  { %5620 = vmatprep.subr.bf16.mxu1 %v7473_v30  ;;  %5784 = vmatprep.subr.bf16.mxu0 %v7476_v32  ;;  %v7546_v30 = vld [vmem:[#allocation12 + $0x6d0] ss:$28 sps:$4 sm:$0xff]   ;;  %v2706_v32 = vmax.f32 %v7156_v24, %v2698_v17  ;;  %v7612_v24 = vld [vmem:[#allocation12 + $0x938] ss:$28 sps:$4 sm:$0xff]   ;;  %v7623_v17 = vld [vmem:[#allocation12 + $0x9a4] ss:$28 sps:$4 sm:$0xff]  }
 0x39a   :  { %5621 = vmatpush1.bf16.msra.mxu1 %v7471_v33  ;;  %5785 = vmatpush1.bf16.msra.mxu0 %v7474_v35  ;;  %v7554_v33 = vld [vmem:[#allocation12 + $0x70c] ss:$28 sps:$4 sm:$0xff]   ;;  %v7549_v35 = vld [vmem:[#allocation12 + $0x700] ss:$28 sps:$4 sm:$0xff]  }
 0x39b   :  { %5622 = vmatprep.subr.bf16.mxu1 %v7479_v36  ;;  %5786 = vmatprep.subr.bf16.mxu0 %v7482_v37  ;;  %v7552_v36 = vld [vmem:[#allocation12 + $0x708] ss:$28 sps:$4 sm:$0xff]   ;;  %v8471_v37 = vpack.c.bf16 %v2706_v32, %v2706_v32 }
 0x39c   :  { %v7632_v32 = vld [vmem:[#allocation12 + $0x9e4] ss:$28 sps:$4 sm:$0xff]  }
 0x39e   :  { %5623 = vmatpush1.bf16.msra.mxu1 %v7477_v38  ;;  %5787 = vmatpush1.bf16.msra.mxu0 %v7480_v39  ;;  %v7557_v38 = vld [vmem:[#allocation12 + $0x73c] ss:$28 sps:$4 sm:$0xff]   ;;  %v7560_v39 = vld [vmem:[#allocation12 + $0x744] ss:$28 sps:$4 sm:$0xff]  }
 0x39f   :  { %5624 = vmatprep.subr.bf16.mxu1 %v7485_v41  ;;  %5788 = vmatprep.subr.bf16.mxu0 %v7488_v43  ;;  %v7555_v41 = vld [vmem:[#allocation12 + $0x738] ss:$28 sps:$4 sm:$0xff]   ;;  %v7558_v43 = vld [vmem:[#allocation12 + $0x740] ss:$28 sps:$4 sm:$0xff]  }
 0x3a2   :  { %5625 = vmatpush1.bf16.msra.mxu1 %v7483_v44  ;;  %5789 = vmatpush1.bf16.msra.mxu0 %v7486_v45  ;;  %v7563_v44 = vld [vmem:[#allocation12 + $0x774] ss:$28 sps:$4 sm:$0xff]   ;;  %v7566_v45 = vld [vmem:[#allocation12 + $0x77c] ss:$28 sps:$4 sm:$0xff]  }
 0x3a3   :  { %5626 = vmatprep.subr.bf16.mxu1 %v7491_v46  ;;  %5790 = vmatprep.subr.bf16.mxu0 %v7494_v47  ;;  %v7561_v46 = vld [vmem:[#allocation12 + $0x770] ss:$28 sps:$4 sm:$0xff]   ;;  %v7564_v47 = vld [vmem:[#allocation12 + $0x778] ss:$28 sps:$4 sm:$0xff]  }
 0x3a6   :  { %5627 = vmatpush1.bf16.msra.mxu1 %v7489_v48  ;;  %5791 = vmatpush1.bf16.msra.mxu0 %v7492_v50  ;;  %v7569_v48 = vld [vmem:[#allocation12 + $0x7ac] ss:$28 sps:$4 sm:$0xff]   ;;  %v7572_v50 = vld [vmem:[#allocation12 + $0x7b4] ss:$28 sps:$4 sm:$0xff]  }
 0x3a7   :  { %5628 = vmatprep.subr.bf16.mxu1 %v7497_v53  ;;  %5792 = vmatprep.subr.bf16.mxu0 %v7500_v54  ;;  %v7567_v53 = vld [vmem:[#allocation12 + $0x7a8] ss:$28 sps:$4 sm:$0xff]   ;;  %v7570_v54 = vld [vmem:[#allocation12 + $0x7b0] ss:$28 sps:$4 sm:$0xff]  }
 0x3aa   :  { %5629 = vmatpush1.bf16.msra.mxu1 %v7495_v55  ;;  %5793 = vmatpush1.bf16.msra.mxu0 %v7498_v56  ;;  %v7575_v55 = vld [vmem:[#allocation12 + $0x7e4] ss:$28 sps:$4 sm:$0xff]   ;;  %v7578_v56 = vld [vmem:[#allocation12 + $0x7ec] ss:$28 sps:$4 sm:$0xff]  }
 0x3ab   :  { %5630 = vmatprep.subr.bf16.mxu1 %v7503_v57  ;;  %5794 = vmatprep.subr.bf16.mxu0 %v7506_v58  ;;  %v7573_v57 = vld [vmem:[#allocation12 + $0x7e0] ss:$28 sps:$4 sm:$0xff]   ;;  %v7576_v58 = vld [vmem:[#allocation12 + $0x7e8] ss:$28 sps:$4 sm:$0xff]  }
 0x3ae   :  { %5631 = vmatpush1.bf16.msra.mxu1 %v7501_v4  ;;  %5795 = vmatpush1.bf16.msra.mxu0 %v7504_v59  ;;  %v7581_v4 = vld [vmem:[#allocation12 + $0x81c] ss:$28 sps:$4 sm:$0xff]   ;;  %v7584_v59 = vld [vmem:[#allocation12 + $0x824] ss:$28 sps:$4 sm:$0xff]  }
 0x3af   :  { %5632 = vmatprep.subr.bf16.mxu1 %v7509_v60  ;;  %5796 = vmatprep.subr.bf16.mxu0 %v7512_v62  ;;  %v7579_v60 = vld [vmem:[#allocation12 + $0x818] ss:$28 sps:$4 sm:$0xff]   ;;  %v7582_v62 = vld [vmem:[#allocation12 + $0x820] ss:$28 sps:$4 sm:$0xff]  }
 0x3b2   :  { %5633 = vmatpush1.bf16.msra.mxu1 %v7507_v63  ;;  %5797 = vmatpush1.bf16.msra.mxu0 %v7510_v0  ;;  %v7587_v63 = vld [vmem:[#allocation12 + $0x854] ss:$28 sps:$4 sm:$0xff]   ;;  %v7590_v0 = vld [vmem:[#allocation12 + $0x85c] ss:$28 sps:$4 sm:$0xff]  }
 0x3b3   :  { %5634 = vmatprep.subr.bf16.mxu1 %v7515_v1  ;;  %5798 = vmatprep.subr.bf16.mxu0 %v7518_v3  ;;  %v7585_v1 = vld [vmem:[#allocation12 + $0x850] ss:$28 sps:$4 sm:$0xff]   ;;  %v7588_v3 = vld [vmem:[#allocation12 + $0x858] ss:$28 sps:$4 sm:$0xff]  }
 0x3b6   :  { %5635 = vmatpush1.bf16.msra.mxu1 %v7513_v6  ;;  %5799 = vmatpush1.bf16.msra.mxu0 %v7516_v31  ;;  %v7593_v6 = vld [vmem:[#allocation12 + $0x88c] ss:$28 sps:$4 sm:$0xff]   ;;  %v7596_v31 = vld [vmem:[#allocation12 + $0x894] ss:$28 sps:$4 sm:$0xff]  }
 0x3b7   :  { %5636 = vmatprep.subr.bf16.mxu1 %v7521_v5  ;;  %5800 = vmatprep.subr.bf16.mxu0 %v7524_v7  ;;  %v7591_v5 = vld [vmem:[#allocation12 + $0x888] ss:$28 sps:$4 sm:$0xff]   ;;  %v7594_v7 = vld [vmem:[#allocation12 + $0x890] ss:$28 sps:$4 sm:$0xff]  }
 0x3ba   :  { %5637 = vmatpush1.bf16.msra.mxu1 %v7519_v8  ;;  %5801 = vmatpush1.bf16.msra.mxu0 %v7522_v9  ;;  %v7599_v8 = vld [vmem:[#allocation12 + $0x8c4] ss:$28 sps:$4 sm:$0xff]   ;;  %v7602_v9 = vld [vmem:[#allocation12 + $0x8cc] ss:$28 sps:$4 sm:$0xff]  }
 0x3bb   :  { %5638 = vmatprep.subr.bf16.mxu1 %v7527_v10  ;;  %5802 = vmatprep.subr.bf16.mxu0 %v7530_v11  ;;  %v7597_v10 = vld [vmem:[#allocation12 + $0x8c0] ss:$28 sps:$4 sm:$0xff]   ;;  %v7600_v11 = vld [vmem:[#allocation12 + $0x8c8] ss:$28 sps:$4 sm:$0xff]  }
 0x3be   :  { %5639 = vmatpush1.bf16.msra.mxu1 %v7525_v12  ;;  %5803 = vmatpush1.bf16.msra.mxu0 %v7528_v29  ;;  %v7605_v12 = vld [vmem:[#allocation12 + $0x8fc] ss:$28 sps:$4 sm:$0xff]   ;;  %v7608_v29 = vld [vmem:[#allocation12 + $0x904] ss:$28 sps:$4 sm:$0xff]  }
 0x3bf   :  { %5640 = vmatprep.subr.bf16.mxu1 %v7533_v18  ;;  %5804 = vmatprep.subr.bf16.mxu0 %v7536_v21  ;;  %v7606_v18 = vld [vmem:[#allocation12 + $0x900] ss:$28 sps:$4 sm:$0xff]   ;;  %v7611_v21 = vld [vmem:[#allocation12 + $0x934] ss:$28 sps:$4 sm:$0xff]  }
 0x3c2   :  { %5641 = vmatpush1.bf16.msra.mxu1 %v7531_v51  ;;  %5805 = vmatpush1.bf16.msra.mxu0 %v7534_v23  ;;  %v7614_v51 = vld [vmem:[#allocation12 + $0x93c] ss:$28 sps:$4 sm:$0xff]   ;;  %v7609_v23 = vld [vmem:[#allocation12 + $0x930] ss:$28 sps:$4 sm:$0xff]  }
 0x3c3   :  { %5642 = vmatprep.subr.bf16.mxu1 %v7539_v26  ;;  %5806 = vmatprep.subr.bf16.mxu0 %v7542_v27  ;;  %v7617_v26 = vld [vmem:[#allocation12 + $0x96c] ss:$28 sps:$4 sm:$0xff]   ;;  %v7620_v27 = vld [vmem:[#allocation12 + $0x974] ss:$28 sps:$4 sm:$0xff]  }
 0x3c6   :  { %5643 = vmatpush1.bf16.msra.mxu1 %v7537_v14  ;;  %5807 = vmatpush1.bf16.msra.mxu0 %v7540_v15  ;;  %v7615_v14 = vld [vmem:[#allocation12 + $0x968] ss:$28 sps:$4 sm:$0xff]   ;;  %v7618_v15 = vld [vmem:[#allocation12 + $0x970] ss:$28 sps:$4 sm:$0xff]  }
 0x3c7   :  { %5644 = vmatprep.subr.bf16.mxu1 %v7545_v19  ;;  %5808 = vmatprep.subr.bf16.mxu0 %v7548_v20  ;;  %v7626_v19 = vld [vmem:[#allocation12 + $0x9ac] ss:$28 sps:$4 sm:$0xff]   ;;  %v7621_v20 = vld [vmem:[#allocation12 + $0x9a0] ss:$28 sps:$4 sm:$0xff]  }
 0x3ca   :  { %5645 = vmatpush1.bf16.msra.mxu1 %v7543_v28  ;;  %5809 = vmatpush1.bf16.msra.mxu0 %v7546_v30  ;;  %v7624_v28 = vld [vmem:[#allocation12 + $0x9a8] ss:$28 sps:$4 sm:$0xff]   ;;  %v7629_v30 = vld [vmem:[#allocation12 + $0x9dc] ss:$28 sps:$4 sm:$0xff]  }
 0x3cb   :  { %5655 = vmatprep.subr.bf16.mxu1 %v7551_v2  ;;  %5819 = vmatprep.subr.bf16.mxu0 %v7554_v33  ;;  %v1066_v2 = vsub.s32 4, %v8370_v34  ;;  %v1070_v33 = vsub.s32 5, %v8370_v34 }
 0x3cd   :  { %5647 = vmatmul.mubr.bf16.vlgmr.msra.gmra.mrb[8].mxu1 %v8471_v37  ;;  %5811 = vmatmul.mubr.bf16.vlgmr.msra.gmra.mrb[20].mxu0 %v8471_v37 }
 0x3ce   :  { %5656 = vmatpush1.bf16.msra.mxu1 %v7549_v35  ;;  %5820 = vmatpush1.bf16.msra.mxu0 %v7552_v36  ;;  %v1078_v35 = vsub.s32 7, %v8370_v34  ;;  %v7627_v36 = vld [vmem:[#allocation12 + $0x9d8] ss:$28 sps:$4 sm:$0xff]  }
 0x3cf   :  { %5657 = vmatprep.subr.bf16.mxu1 %v7557_v38  ;;  %5821 = vmatprep.subr.bf16.mxu0 %v7560_v39  ;;  %v7630_v38 = vld [vmem:[#allocation12 + $0x9e0] ss:$28 sps:$4 sm:$0xff]   ;;  %v1067_v39 = vrot.slane %v8446_v61, %v1066_v2 }
 0x3d2   :  { %5658 = vmatpush1.bf16.msra.mxu1 %v7555_v41  ;;  %5822 = vmatpush1.bf16.msra.mxu0 %v7558_v43  ;;  %v7635_v41 = vld [vmem:[#allocation12 + $0xa14] ss:$28 sps:$4 sm:$0xff]   ;;  %v7638_v43 = vld [vmem:[#allocation12 + $0xa1c] ss:$28 sps:$4 sm:$0xff]  }
 0x3d3   :  { %5659 = vmatprep.subr.bf16.mxu1 %v7563_v44  ;;  %5823 = vmatprep.subr.bf16.mxu0 %v7566_v45  ;;  %v1071_v44 = vrot.slane %v8446_v61, %v1070_v33  ;;  %v1079_v45 = vrot.slane %v8446_v61, %v1078_v35  ;;  %v7669_v35 = vld [vmem:[#allocation12 + $0xb60] ss:$28 sps:$4 sm:$0xff]  }
 0x3d6   :  { %5660 = vmatpush1.bf16.msra.mxu1 %v7561_v46  ;;  %5824 = vmatpush1.bf16.msra.mxu0 %v7564_v47  ;;  %v7633_v47 = vld [vmem:[#allocation12 + $0xa10] ss:$28 sps:$4 sm:$0xff]  }
 0x3d7   :  { %5661 = vmatprep.subr.bf16.mxu1 %v7569_v48  ;;  %5825 = vmatprep.subr.bf16.mxu0 %v7572_v50  ;;  %v7636_v48 = vld [vmem:[#allocation12 + $0xa18] ss:$28 sps:$4 sm:$0xff]  }
 0x3da   :  { %5662 = vmatpush1.bf16.msra.mxu1 %v7567_v53  ;;  %5826 = vmatpush1.bf16.msra.mxu0 %v7570_v54 }
 0x3db   :  { %5663 = vmatprep.subr.bf16.mxu1 %v7575_v55  ;;  %5827 = vmatprep.subr.bf16.mxu0 %v7578_v56  ;;  %v7641_v55 = vld [vmem:[#allocation12 + $0xa4c] ss:$28 sps:$4 sm:$0xff]   ;;  %v7644_v56 = vld [vmem:[#allocation12 + $0xa54] ss:$28 sps:$4 sm:$0xff]  }
 0x3de   :  { %5664 = vmatpush1.bf16.msra.mxu1 %v7573_v57  ;;  %5828 = vmatpush1.bf16.msra.mxu0 %v7576_v58 }
 0x3df   :  { %5665 = vmatprep.subr.bf16.mxu1 %v7581_v4  ;;  %5829 = vmatprep.subr.bf16.mxu0 %v7584_v59 }
 0x3e2   :  { %5666 = vmatpush1.bf16.msra.mxu1 %v7579_v60  ;;  %5830 = vmatpush1.bf16.msra.mxu0 %v7582_v62 }
 0x3e3   :  { %5667 = vmatprep.subr.bf16.mxu1 %v7587_v63  ;;  %5831 = vmatprep.subr.bf16.mxu0 %v7590_v0  ;;  %v7639_v0 = vld [vmem:[#allocation12 + $0xa48] ss:$28 sps:$4 sm:$0xff]  }
 0x3e6   :  { %5668 = vmatpush1.bf16.msra.mxu1 %v7585_v1  ;;  %5832 = vmatpush1.bf16.msra.mxu0 %v7588_v3 }
 0x3e7   :  { %5669 = vmatprep.subr.bf16.mxu1 %v7593_v6  ;;  %5833 = vmatprep.subr.bf16.mxu0 %v7596_v31  ;;  %v7642_v6 = vld [vmem:[#allocation12 + $0xa50] ss:$28 sps:$4 sm:$0xff]  }
 0x3ea   :  { %5670 = vmatpush1.bf16.msra.mxu1 %v7591_v5  ;;  %5834 = vmatpush1.bf16.msra.mxu0 %v7594_v7  ;;  %v7647_v7 = vld [vmem:[#allocation12 + $0xa84] ss:$28 sps:$4 sm:$0xff]  }
 0x3eb   :  { %5671 = vmatprep.subr.bf16.mxu1 %v7599_v8  ;;  %5835 = vmatprep.subr.bf16.mxu0 %v7602_v9  ;;  %v7650_v8 = vld [vmem:[#allocation12 + $0xa8c] ss:$28 sps:$4 sm:$0xff]  }
 0x3ee   :  { %5672 = vmatpush1.bf16.msra.mxu1 %v7597_v10  ;;  %5836 = vmatpush1.bf16.msra.mxu0 %v7600_v11 }
 0x3ef   :  { %5673 = vmatprep.subr.bf16.mxu1 %v7605_v12  ;;  %5837 = vmatprep.subr.bf16.mxu0 %v7608_v29  ;;  %v7645_v12 = vld [vmem:[#allocation12 + $0xa80] ss:$28 sps:$4 sm:$0xff]   ;;  %v7648_v29 = vld [vmem:[#allocation12 + $0xa88] ss:$28 sps:$4 sm:$0xff]  }
 0x3f2   :  { %5674 = vmatpush1.bf16.msra.mxu1 %v7603_v16  ;;  %5838 = vmatpush1.bf16.msra.mxu0 %v7606_v18  ;;  %v7653_v18 = vld [vmem:[#allocation12 + $0xabc] ss:$28 sps:$4 sm:$0xff]  }
 0x3f3   :  { %5675 = vmatprep.subr.bf16.mxu1 %v7611_v21  ;;  %5839 = vmatprep.subr.bf16.mxu0 %v7614_v51  ;;  %v7656_v21 = vld [vmem:[#allocation12 + $0xac4] ss:$28 sps:$4 sm:$0xff]  }
 0x3f6   :  { %5676 = vmatpush1.bf16.msra.mxu1 %v7609_v23  ;;  %5840 = vmatpush1.bf16.msra.mxu0 %v7612_v24  ;;  %v7651_v23 = vld [vmem:[#allocation12 + $0xab8] ss:$28 sps:$4 sm:$0xff]   ;;  %v7654_v24 = vld [vmem:[#allocation12 + $0xac0] ss:$28 sps:$4 sm:$0xff]  }
 0x3f7   :  { %5677 = vmatprep.subr.bf16.mxu1 %v7617_v26  ;;  %5841 = vmatprep.subr.bf16.mxu0 %v7620_v27  ;;  %v7659_v26 = vld [vmem:[#allocation12 + $0xaf4] ss:$28 sps:$4 sm:$0xff]   ;;  %v7662_v27 = vld [vmem:[#allocation12 + $0xafc] ss:$28 sps:$4 sm:$0xff]  }
 0x3fa   :  { %5678 = vmatpush1.bf16.msra.mxu1 %v7615_v14  ;;  %5842 = vmatpush1.bf16.msra.mxu0 %v7618_v15  ;;  %v7657_v14 = vld [vmem:[#allocation12 + $0xaf0] ss:$28 sps:$4 sm:$0xff]   ;;  %v7660_v15 = vld [vmem:[#allocation12 + $0xaf8] ss:$28 sps:$4 sm:$0xff]  }
 0x3fb   :  { %5679 = vmatprep.subr.bf16.mxu1 %v7623_v17  ;;  %5843 = vmatprep.subr.bf16.mxu0 %v7626_v19  ;;  %v7665_v17 = vld [vmem:[#allocation12 + $0xb2c] ss:$28 sps:$4 sm:$0xff]   ;;  %v7668_v19 = vld [vmem:[#allocation12 + $0xb34] ss:$28 sps:$4 sm:$0xff]  }
 0x3fe   :  { %5680 = vmatpush1.bf16.msra.mxu1 %v7621_v20  ;;  %5844 = vmatpush1.bf16.msra.mxu0 %v7624_v28  ;;  %v7663_v20 = vld [vmem:[#allocation12 + $0xb28] ss:$28 sps:$4 sm:$0xff]   ;;  %v7666_v28 = vld [vmem:[#allocation12 + $0xb30] ss:$28 sps:$4 sm:$0xff]  }
 0x3ff   :  { %5681 = vmatprep.subr.bf16.mxu1 %v7629_v30  ;;  %5845 = vmatprep.subr.bf16.mxu0 %v7632_v32  ;;  %v7671_v30 = vld [vmem:[#allocation12 + $0xb64] ss:$28 sps:$4 sm:$0xff]   ;;  %v7674_v32 = vld [vmem:[#allocation12 + $0xb6c] ss:$28 sps:$4 sm:$0xff]  }
 0x402   :  { %5682 = vmatpush1.bf16.msra.mxu1 %v7627_v36  ;;  %5846 = vmatpush1.bf16.msra.mxu0 %v7630_v38  ;;  %v2607_v46 = vpop.f32.mrb[4].mxu1  ;;  %v7672_v36 = vld [vmem:[#allocation12 + $0xb68] ss:$28 sps:$4 sm:$0xff]   ;;  %v7677_v38 = vld [vmem:[#allocation12 + $0xb9c] ss:$28 sps:$4 sm:$0xff]  }
 0x403   :  { %v7158_v50 = vadd.f32 %v2607_v46, %v1067_v39  ;;  %v8485_v53 = vpop.f32.mrb[16].mxu0  ;;  %v2609_v54 = vpop.f32.mrb[5].mxu1  ;;  %5683 = vmatprep.subr.bf16.mxu1 %v7635_v41  ;;  %5847 = vmatprep.subr.bf16.mxu0 %v7638_v43  ;;  %v7680_v39 = vld [vmem:[#allocation12 + $0xba4] ss:$28 sps:$4 sm:$0xff]   ;;  %v7675_v41 = vld [vmem:[#allocation12 + $0xb98] ss:$28 sps:$4 sm:$0xff]  }
 0x404   :  { %v7159_v57 = vadd.f32 %v2609_v54, %v1071_v44  ;;  %v2691_v58 = vpop.f32.mrb[17].mxu0  ;;  %v2611_v4 = vpop.f32.mrb[6].mxu1  ;;  %v7678_v43 = vld [vmem:[#allocation12 + $0xba0] ss:$28 sps:$4 sm:$0xff]   ;;  %v7683_v44 = vld [vmem:[#allocation12 + $0xbd4] ss:$28 sps:$4 sm:$0xff]  }
 0x405   :  { %v2700_v59 = vmul.f32 0.2, %v7158_v50  ;;  %v7161_v60 = vadd.f32 %v2691_v58, %v1079_v45  ;;  %v2693_v62 = vpop.f32.mrb[18].mxu0  ;;  %v2612_v63 = vpop.f32.mrb[7].mxu1  ;;  %v7686_v45 = vld [vmem:[#allocation12 + $0xbdc] ss:$28 sps:$4 sm:$0xff]  }
 0x406   :  { %v2701_v1 = vmul.f32 0.2, %v7159_v57  ;;  %v2694_v3 = vpop.f32.mrb[19].mxu0  ;;  %5684 = vmatpush1.bf16.msra.mxu1 %v7633_v47  ;;  %5848 = vmatpush1.bf16.msra.mxu0 %v7636_v48  ;;  %v7681_v46 = vld [vmem:[#allocation12 + $0xbd0] ss:$28 sps:$4 sm:$0xff]  }
 0x407   :  { %v2708_v31 = vmax.f32 %v7158_v50, %v2700_v59  ;;  %v2703_v5 = vmul.f32 0.2, %v7161_v60  ;;  %5685 = vmatprep.subr.bf16.mxu1 %v7641_v55  ;;  %5849 = vmatprep.subr.bf16.mxu0 %v7644_v56  ;;  %v7684_v47 = vld [vmem:[#allocation12 + $0xbd8] ss:$28 sps:$4 sm:$0xff]   ;;  %v7689_v48 = vld [vmem:[#allocation12 + $0xc0c] ss:$28 sps:$4 sm:$0xff]  }
 0x408   :  { %v2709_v9 = vmax.f32 %v7159_v57, %v2701_v1  ;;  %v7692_v50 = vld [vmem:[#allocation12 + $0xc14] ss:$28 sps:$4 sm:$0xff]   ;;  %v7687_v54 = vld [vmem:[#allocation12 + $0xc08] ss:$28 sps:$4 sm:$0xff]   ;;  %v7693_v58 = vld [vmem:[#allocation12 + $0xc40] ss:$28 sps:$4 sm:$0xff]  }
 0x409   :  { %v2711_v10 = vmax.f32 %v7161_v60, %v2703_v5  ;;  %v8489_v16 = vpack.c.bf16 %v2708_v31, %v2708_v31  ;;  %v7690_v55 = vld [vmem:[#allocation12 + $0xc10] ss:$28 sps:$4 sm:$0xff]   ;;  %v7695_v56 = vld [vmem:[#allocation12 + $0xc44] ss:$28 sps:$4 sm:$0xff]   ;;  %v7701_v59 = vld [vmem:[#allocation12 + $0xc7c] ss:$28 sps:$4 sm:$0xff]  }
 0x40a   :  { %v8487_v11 = vpack.c.bf16 %v2709_v9, %v2709_v9  ;;  %5686 = vmatpush1.bf16.msra.mxu1 %v7639_v0  ;;  %5850 = vmatpush1.bf16.msra.mxu0 %v7642_v6  ;;  %v7698_v57 = vld [vmem:[#allocation12 + $0xc4c] ss:$28 sps:$4 sm:$0xff]   ;;  %v7704_v60 = vld [vmem:[#allocation12 + $0xc84] ss:$28 sps:$4 sm:$0xff]   ;;  %v7699_v62 = vld [vmem:[#allocation12 + $0xc78] ss:$28 sps:$4 sm:$0xff]  }
 0x40b   :  { %5696 = vmatprep.subr.bf16.mxu1 %v7647_v7  ;;  %5860 = vmatprep.subr.bf16.mxu0 %v7650_v8  ;;  %v8493_v51 = vpack.c.bf16 %v2711_v10, %v2711_v10  ;;  %v7696_v4 = vld [vmem:[#allocation12 + $0xc48] ss:$28 sps:$4 sm:$0xff]   ;;  %v7702_v63 = vld [vmem:[#allocation12 + $0xc80] ss:$28 sps:$4 sm:$0xff]   ;;  %v7707_v0 = vld [vmem:[#allocation12 + $0xcb4] ss:$28 sps:$4 sm:$0xff]  }
 0x40c   :  { %5687 = vmatprep.mubr.bf16.mxu1 %v8487_v11  ;;  %5851 = vmatprep.mubr.bf16.mxu0 %v8487_v11  ;;  %v7710_v1 = vld [vmem:[#allocation12 + $0xcbc] ss:$28 sps:$4 sm:$0xff]   ;;  %v7705_v3 = vld [vmem:[#allocation12 + $0xcb0] ss:$28 sps:$4 sm:$0xff]   ;;  %v7711_v7 = vld [vmem:[#allocation12 + $0xce8] ss:$28 sps:$4 sm:$0xff]  }
 0x40d   :  { %5688 = vmatmul.mubr.bf16.vlgmr.msra.gmra.mrb[8].mxu1 %v8489_v16  ;;  %5852 = vmatmul.mubr.bf16.vlgmr.msra.gmra.mrb[20].mxu0 %v8489_v16  ;;  %v7708_v6 = vld [vmem:[#allocation12 + $0xcb8] ss:$28 sps:$4 sm:$0xff]   ;;  %v7713_v31 = vld [vmem:[#allocation12 + $0xcec] ss:$28 sps:$4 sm:$0xff]   ;;  %v1074_v9 = vsub.s32 6, %v8370_v34 }
 0x40e   :  { %5697 = vmatpush1.bf16.msra.mxu1 %v7645_v12  ;;  %5861 = vmatpush1.bf16.msra.mxu0 %v7648_v29  ;;  %v7716_v5 = vld [vmem:[#allocation12 + $0xcf4] ss:$28 sps:$4 sm:$0xff]   ;;  %v7719_v10 = vld [vmem:[#allocation12 + $0xd24] ss:$28 sps:$4 sm:$0xff]   ;;  %v7722_v12 = vld [vmem:[#allocation12 + $0xd2c] ss:$28 sps:$4 sm:$0xff]  }
 0x40f   :  { %5728 = vmatprep.mubr.bf16.mxu1 %v8493_v51  ;;  %5892 = vmatprep.mubr.bf16.mxu0 %v8493_v51  ;;  %v7714_v8 = vld [vmem:[#allocation12 + $0xcf0] ss:$28 sps:$4 sm:$0xff]   ;;  %v7717_v29 = vld [vmem:[#allocation12 + $0xd20] ss:$28 sps:$4 sm:$0xff]  }
 0x410   :  { %5698 = vmatprep.subr.bf16.mxu1 %v7653_v18  ;;  %5862 = vmatprep.subr.bf16.mxu0 %v7656_v21  ;;  %v7720_v18 = vld [vmem:[#allocation12 + $0xd28] ss:$28 sps:$4 sm:$0xff]   ;;  %v1075_v21 = vrot.slane %v8446_v61, %v1074_v9 }
 0x411   :  { %v7737_v61 = vld [vmem:[#allocation12 + $0xdcc] ss:$28 sps:$4 sm:$0xff]  }
 0x412   :  { %5699 = vmatpush1.bf16.msra.mxu1 %v7651_v23  ;;  %5863 = vmatpush1.bf16.msra.mxu0 %v7654_v24  ;;  %v7725_v23 = vld [vmem:[#allocation12 + $0xd5c] ss:$28 sps:$4 sm:$0xff]   ;;  %v7728_v24 = vld [vmem:[#allocation12 + $0xd64] ss:$28 sps:$4 sm:$0xff]  }
 0x413   :  { %5700 = vmatprep.subr.bf16.mxu1 %v7659_v26  ;;  %5864 = vmatprep.subr.bf16.mxu0 %v7662_v27  ;;  %v7723_v26 = vld [vmem:[#allocation12 + $0xd58] ss:$28 sps:$4 sm:$0xff]   ;;  %v7726_v27 = vld [vmem:[#allocation12 + $0xd60] ss:$28 sps:$4 sm:$0xff]  }
 0x416   :  { %5701 = vmatpush1.bf16.msra.mxu1 %v7657_v14  ;;  %5865 = vmatpush1.bf16.msra.mxu0 %v7660_v15  ;;  %v7160_v14 = vadd.f32 %v8485_v53, %v1075_v21  ;;  %v7731_v15 = vld [vmem:[#allocation12 + $0xd94] ss:$28 sps:$4 sm:$0xff]  }
 0x417   :  { %5702 = vmatprep.subr.bf16.mxu1 %v7665_v17  ;;  %5866 = vmatprep.subr.bf16.mxu0 %v7668_v19  ;;  %v7734_v17 = vld [vmem:[#allocation12 + $0xd9c] ss:$28 sps:$4 sm:$0xff]   ;;  %v7729_v19 = vld [vmem:[#allocation12 + $0xd90] ss:$28 sps:$4 sm:$0xff]  }
 0x418   :  { %v7743_v53 = vld [vmem:[#allocation12 + $0x14] ss:$28 sps:$4 sm:$0xff]  }
 0x419   :  { %v7784_v21 = vld [vmem:[#allocation12 + $0x558] ss:$28 sps:$4 sm:$0xff]  }
 0x41a   :  { %5703 = vmatpush1.bf16.msra.mxu1 %v7663_v20  ;;  %5867 = vmatpush1.bf16.msra.mxu0 %v7666_v28  ;;  %v7732_v20 = vld [vmem:[#allocation12 + $0xd98] ss:$28 sps:$4 sm:$0xff]   ;;  %v2702_v28 = vmul.f32 0.2, %v7160_v14 }
 0x41b   :  { %5704 = vmatprep.subr.bf16.mxu1 %v7671_v30  ;;  %5868 = vmatprep.subr.bf16.mxu0 %v7674_v32  ;;  %v7740_v30 = vld [vmem:[#allocation12 + $0xdd4] ss:$28 sps:$4 sm:$0xff]   ;;  %v7735_v32 = vld [vmem:[#allocation12 + $0xdc8] ss:$28 sps:$4 sm:$0xff]  }
 0x41e   :  { %5705 = vmatpush1.bf16.msra.mxu1 %v7669_v35  ;;  %5869 = vmatpush1.bf16.msra.mxu0 %v7672_v36  ;;  %v7738_v35 = vld [vmem:[#allocation12 + $0xdd0] ss:$28 sps:$4 sm:$0xff]   ;;  %v2710_v36 = vmax.f32 %v7160_v14, %v2702_v28  ;;  %v7786_v14 = vld [vmem:[#allocation12 + $0x208] ss:$28 sps:$4 sm:$0xff]  }
 0x41f   :  { %5706 = vmatprep.subr.bf16.mxu1 %v7677_v38  ;;  %5870 = vmatprep.subr.bf16.mxu0 %v7680_v39  ;;  %v7744_v38 = vld [vmem:[#allocation12 + $0x1d8] ss:$28 sps:$4 sm:$0xff]   ;;  %v7741_v39 = vld [vmem:[#allocation12 + $0x10] ss:$28 sps:$4 sm:$0xff]   ;;  %v7795_v28 = vld [vmem:[#allocation12 + $0x408] ss:$28 sps:$4 sm:$0xff]  }
 0x422   :  { %5707 = vmatpush1.bf16.msra.mxu1 %v7675_v41  ;;  %5871 = vmatpush1.bf16.msra.mxu0 %v7678_v43  ;;  %v8504_v41 = vpack.c.bf16 %v2710_v36, %v2710_v36  ;;  %v7745_v43 = vld [vmem:[#allocation12 + $0x18] ss:$28 sps:$4 sm:$0xff]  }
 0x423   :  { %5708 = vmatprep.subr.bf16.mxu1 %v7683_v44  ;;  %5872 = vmatprep.subr.bf16.mxu0 %v7686_v45  ;;  %v7748_v44 = vld [vmem:[#allocation12 + $0x4c] ss:$28 sps:$4 sm:$0xff]   ;;  %v7803_v36 = vld [vmem:[#allocation12 + $0x2b4] ss:$28 sps:$4 sm:$0xff]  }
 0x424   :  { %v7749_v45 = vld [vmem:[#allocation12 + $0x210] ss:$28 sps:$4 sm:$0xff]  }
 0x426   :  { %5709 = vmatpush1.bf16.msra.mxu1 %v7681_v46  ;;  %5873 = vmatpush1.bf16.msra.mxu0 %v7684_v47  ;;  %v7746_v46 = vld [vmem:[#allocation12 + $0x48] ss:$28 sps:$4 sm:$0xff]   ;;  %v7750_v47 = vld [vmem:[#allocation12 + $0x50] ss:$28 sps:$4 sm:$0xff]  }
 0x427   :  { %5710 = vmatprep.subr.bf16.mxu1 %v7689_v48  ;;  %5874 = vmatprep.subr.bf16.mxu0 %v7692_v50  ;;  %v7753_v48 = vld [vmem:[#allocation12 + $0x84] ss:$28 sps:$4 sm:$0xff]  }
 0x428   :  { %v7754_v50 = vld [vmem:[#allocation12 + $0x248] ss:$28 sps:$4 sm:$0xff]  }
 0x42a   :  { %5711 = vmatpush1.bf16.msra.mxu1 %v7687_v54  ;;  %5875 = vmatpush1.bf16.msra.mxu0 %v7690_v55  ;;  %v7751_v54 = vld [vmem:[#allocation12 + $0x80] ss:$28 sps:$4 sm:$0xff]   ;;  %v7755_v55 = vld [vmem:[#allocation12 + $0x88] ss:$28 sps:$4 sm:$0xff]  }
 0x42b   :  { %5712 = vmatprep.subr.bf16.mxu1 %v7695_v56  ;;  %5876 = vmatprep.subr.bf16.mxu0 %v7698_v57  ;;  %v7758_v56 = vld [vmem:[#allocation12 + $0xbc] ss:$28 sps:$4 sm:$0xff]  }
 0x42c   :  { %v7759_v57 = vld [vmem:[#allocation12 + $0x280] ss:$28 sps:$4 sm:$0xff]  }
 0x42e   :  { %5713 = vmatpush1.bf16.msra.mxu1 %v7693_v58  ;;  %5877 = vmatpush1.bf16.msra.mxu0 %v7696_v4  ;;  %v7756_v58 = vld [vmem:[#allocation12 + $0xb8] ss:$28 sps:$4 sm:$0xff]   ;;  %v7760_v4 = vld [vmem:[#allocation12 + $0xc0] ss:$28 sps:$4 sm:$0xff]  }
 0x42f   :  { %5714 = vmatprep.subr.bf16.mxu1 %v7701_v59  ;;  %5878 = vmatprep.subr.bf16.mxu0 %v7704_v60  ;;  %v7763_v59 = vld [vmem:[#allocation12 + $0xf4] ss:$28 sps:$4 sm:$0xff]  }
 0x430   :  { %v7761_v60 = vld [vmem:[#allocation12 + $0xf0] ss:$28 sps:$4 sm:$0xff]  }
 0x432   :  { %5715 = vmatpush1.bf16.msra.mxu1 %v7699_v62  ;;  %5879 = vmatpush1.bf16.msra.mxu0 %v7702_v63  ;;  %v7765_v62 = vld [vmem:[#allocation12 + $0xf8] ss:$28 sps:$4 sm:$0xff]   ;;  %v7768_v63 = vld [vmem:[#allocation12 + $0x12c] ss:$28 sps:$4 sm:$0xff]  }
 0x433   :  { %5716 = vmatprep.subr.bf16.mxu1 %v7707_v0  ;;  %5880 = vmatprep.subr.bf16.mxu0 %v7710_v1  ;;  %v7769_v0 = vld [vmem:[#allocation12 + $0x2f0] ss:$28 sps:$4 sm:$0xff]   ;;  %v7766_v1 = vld [vmem:[#allocation12 + $0x128] ss:$28 sps:$4 sm:$0xff]  }
 0x436   :  { %5717 = vmatpush1.bf16.msra.mxu1 %v7705_v3  ;;  %5881 = vmatpush1.bf16.msra.mxu0 %v7708_v6  ;;  %v7770_v3 = vld [vmem:[#allocation12 + $0x130] ss:$28 sps:$4 sm:$0xff]   ;;  %v7773_v6 = vld [vmem:[#allocation12 + $0x164] ss:$28 sps:$4 sm:$0xff]  }
 0x437   :  { %5718 = vmatprep.subr.bf16.mxu1 %v7713_v31  ;;  %5882 = vmatprep.subr.bf16.mxu0 %v7716_v5  ;;  %v7774_v31 = vld [vmem:[#allocation12 + $0x328] ss:$28 sps:$4 sm:$0xff]   ;;  %v7771_v5 = vld [vmem:[#allocation12 + $0x160] ss:$28 sps:$4 sm:$0xff]  }
 0x43a   :  { %5719 = vmatpush1.bf16.msra.mxu1 %v7711_v7  ;;  %5883 = vmatpush1.bf16.msra.mxu0 %v7714_v8  ;;  %v7775_v7 = vld [vmem:[#allocation12 + $0x168] ss:$28 sps:$4 sm:$0xff]   ;;  %v7778_v8 = vld [vmem:[#allocation12 + $0x19c] ss:$28 sps:$4 sm:$0xff]  }
 0x43b   :  { %5720 = vmatprep.subr.bf16.mxu1 %v7719_v10  ;;  %5884 = vmatprep.subr.bf16.mxu0 %v7722_v12  ;;  %v7779_v10 = vld [vmem:[#allocation12 + $0x360] ss:$28 sps:$4 sm:$0xff]   ;;  %v7776_v12 = vld [vmem:[#allocation12 + $0x198] ss:$28 sps:$4 sm:$0xff]  }
 0x43e   :  { %5721 = vmatpush1.bf16.msra.mxu1 %v7717_v29  ;;  %5885 = vmatpush1.bf16.msra.mxu0 %v7720_v18  ;;  %v7780_v29 = vld [vmem:[#allocation12 + $0x1a0] ss:$28 sps:$4 sm:$0xff]   ;;  %v7783_v18 = vld [vmem:[#allocation12 + $0x1d4] ss:$28 sps:$4 sm:$0xff]  }
 0x43f   :  { %5722 = vmatprep.subr.bf16.mxu1 %v7725_v23  ;;  %5886 = vmatprep.subr.bf16.mxu0 %v7728_v24  ;;  %v7781_v23 = vld [vmem:[#allocation12 + $0x1d0] ss:$28 sps:$4 sm:$0xff]   ;;  %v7785_v24 = vld [vmem:[#allocation12 + $0x398] ss:$28 sps:$4 sm:$0xff]  }
 0x442   :  { %5723 = vmatpush1.bf16.msra.mxu1 %v7723_v26  ;;  %5887 = vmatpush1.bf16.msra.mxu0 %v7726_v27  ;;  %v7788_v26 = vld [vmem:[#allocation12 + $0x20c] ss:$28 sps:$4 sm:$0xff]  }
 0x443   :  { %5724 = vmatprep.subr.bf16.mxu1 %v7731_v15  ;;  %5888 = vmatprep.subr.bf16.mxu0 %v7734_v17  ;;  %v7789_v27 = vld [vmem:[#allocation12 + $0x590] ss:$28 sps:$4 sm:$0xff]   ;;  %v7793_v17 = vld [vmem:[#allocation12 + $0x244] ss:$28 sps:$4 sm:$0xff]  }
 0x444   :  { %v7790_v15 = vld [vmem:[#allocation12 + $0x3d0] ss:$28 sps:$4 sm:$0xff]  }
 0x446   :  { %5725 = vmatpush1.bf16.msra.mxu1 %v7729_v19  ;;  %5889 = vmatpush1.bf16.msra.mxu0 %v7732_v20  ;;  %v7794_v19 = vld [vmem:[#allocation12 + $0x5c8] ss:$28 sps:$4 sm:$0xff]   ;;  %v7791_v20 = vld [vmem:[#allocation12 + $0x240] ss:$28 sps:$4 sm:$0xff]  }
 0x447   :  { %5726 = vmatprep.subr.bf16.mxu1 %v7737_v61  ;;  %5890 = vmatprep.subr.bf16.mxu0 %v7740_v30  ;;  %v7798_v61 = vld [vmem:[#allocation12 + $0x27c] ss:$28 sps:$4 sm:$0xff]  }
 0x448   :  { %v7799_v30 = vld [vmem:[#allocation12 + $0x600] ss:$28 sps:$4 sm:$0xff]  }
 0x44a   :  { %5727 = vmatpush1.bf16.msra.mxu1 %v7735_v32  ;;  %5891 = vmatpush1.bf16.msra.mxu0 %v7738_v35  ;;  %v7796_v32 = vld [vmem:[#allocation12 + $0x278] ss:$28 sps:$4 sm:$0xff]   ;;  %v7800_v35 = vld [vmem:[#allocation12 + $0x440] ss:$28 sps:$4 sm:$0xff]  }
 0x44b   :  { %5901 = vmatprep.subr.bf16.mxu1 %v7743_v53  ;;  %7066 = vmatprep.subr.bf16.mxu0 %v7744_v38  ;;  %v7804_v53 = vld [vmem:[#allocation12 + $0x638] ss:$28 sps:$4 sm:$0xff]   ;;  %v7801_v38 = vld [vmem:[#allocation12 + $0x2b0] ss:$28 sps:$4 sm:$0xff]  }
 0x44d   :  { %5729 = vmatmul.mubr.bf16.vlgmr.msra.gmra.mrb[8].mxu1 %v8504_v41  ;;  %5893 = vmatmul.mubr.bf16.vlgmr.msra.gmra.mrb[20].mxu0 %v8504_v41 }
 0x44e   :  { %5902 = vmatpush1.bf16.msra.mxu1 %v7741_v39  ;;  %5933 = vmatprep.mubr.bf16.mxu1 %v8456_v22  ;;  %v7805_v39 = vld [vmem:[#allocation12 + $0x478] ss:$28 sps:$4 sm:$0xff]  }
 0x44f   :  { %7067 = vmatpush3.bf16.msra.mxu0 %v7745_v43  ;;  %6097 = vmatprep.mubr.bf16.mxu0 %v8456_v22  ;;  %v7764_v22 = vld [vmem:[#allocation12 + $0x2b8] ss:$28 sps:$4 sm:$0xff]   ;;  %v7808_v43 = vld [vmem:[#allocation12 + $0x2ec] ss:$28 sps:$4 sm:$0xff]  }
 0x450   :  { %5903 = vmatprep.subr.bf16.mxu1 %v7748_v44  ;;  %7068 = vmatprep.subr.bf16.mxu0 %v7749_v45  ;;  %v7809_v44 = vld [vmem:[#allocation12 + $0x670] ss:$28 sps:$4 sm:$0xff]   ;;  %v7806_v45 = vld [vmem:[#allocation12 + $0x2e8] ss:$28 sps:$4 sm:$0xff]  }
 0x452   :  { %5904 = vmatpush1.bf16.msra.mxu1 %v7746_v46  ;;  %v7810_v46 = vld [vmem:[#allocation12 + $0x4b0] ss:$28 sps:$4 sm:$0xff]  }
 0x453   :  { %7069 = vmatpush3.bf16.msra.mxu0 %v7750_v47  ;;  %5905 = vmatprep.subr.bf16.mxu1 %v7753_v48  ;;  %v7813_v47 = vld [vmem:[#allocation12 + $0x324] ss:$28 sps:$4 sm:$0xff]  }
 0x454   :  { %7070 = vmatprep.subr.bf16.mxu0 %v7754_v50  ;;  %v7814_v48 = vld [vmem:[#allocation12 + $0x6a8] ss:$28 sps:$4 sm:$0xff]   ;;  %v7811_v50 = vld [vmem:[#allocation12 + $0x320] ss:$28 sps:$4 sm:$0xff]  }
 0x456   :  { %5906 = vmatpush1.bf16.msra.mxu1 %v7751_v54  ;;  %v7815_v54 = vld [vmem:[#allocation12 + $0x4e8] ss:$28 sps:$4 sm:$0xff]  }
 0x457   :  { %7071 = vmatpush3.bf16.msra.mxu0 %v7755_v55  ;;  %5907 = vmatprep.subr.bf16.mxu1 %v7758_v56  ;;  %v7818_v55 = vld [vmem:[#allocation12 + $0x35c] ss:$28 sps:$4 sm:$0xff]  }
 0x458   :  { %7072 = vmatprep.subr.bf16.mxu0 %v7759_v57  ;;  %v7819_v56 = vld [vmem:[#allocation12 + $0x6e0] ss:$28 sps:$4 sm:$0xff]   ;;  %v7816_v57 = vld [vmem:[#allocation12 + $0x358] ss:$28 sps:$4 sm:$0xff]  }
 0x45a   :  { %5908 = vmatpush1.bf16.msra.mxu1 %v7756_v58  ;;  %v7820_v58 = vld [vmem:[#allocation12 + $0x520] ss:$28 sps:$4 sm:$0xff]  }
 0x45b   :  { %7073 = vmatpush3.bf16.msra.mxu0 %v7760_v4  ;;  %5909 = vmatprep.subr.bf16.mxu1 %v7763_v59  ;;  %v7823_v4 = vld [vmem:[#allocation12 + $0x394] ss:$28 sps:$4 sm:$0xff]  }
 0x45c   :  { %7074 = vmatprep.subr.bf16.mxu0 %v7764_v22  ;;  %v7824_v59 = vld [vmem:[#allocation12 + $0x8d8] ss:$28 sps:$4 sm:$0xff]   ;;  %v7821_v22 = vld [vmem:[#allocation12 + $0x390] ss:$28 sps:$4 sm:$0xff]  }
 0x45e   :  { %5910 = vmatpush1.bf16.msra.mxu1 %v7761_v60  ;;  %v7825_v60 = vld [vmem:[#allocation12 + $0x718] ss:$28 sps:$4 sm:$0xff]  }
 0x45f   :  { %7075 = vmatpush3.bf16.msra.mxu0 %v7765_v62  ;;  %5911 = vmatprep.subr.bf16.mxu1 %v7768_v63  ;;  %v7828_v62 = vld [vmem:[#allocation12 + $0x3cc] ss:$28 sps:$4 sm:$0xff]  }
 0x460   :  { %7076 = vmatprep.subr.bf16.mxu0 %v7769_v0  ;;  %v7829_v63 = vld [vmem:[#allocation12 + $0x910] ss:$28 sps:$4 sm:$0xff]   ;;  %v7826_v0 = vld [vmem:[#allocation12 + $0x3c8] ss:$28 sps:$4 sm:$0xff]  }
 0x462   :  { %5912 = vmatpush1.bf16.msra.mxu1 %v7766_v1  ;;  %v7830_v1 = vld [vmem:[#allocation12 + $0x750] ss:$28 sps:$4 sm:$0xff]  }
 0x463   :  { %7077 = vmatpush3.bf16.msra.mxu0 %v7770_v3  ;;  %5913 = vmatprep.subr.bf16.mxu1 %v7773_v6  ;;  %v7833_v3 = vld [vmem:[#allocation12 + $0x404] ss:$28 sps:$4 sm:$0xff]  }
 0x464   :  { %7078 = vmatprep.subr.bf16.mxu0 %v7774_v31  ;;  %v7834_v6 = vld [vmem:[#allocation12 + $0x948] ss:$28 sps:$4 sm:$0xff]   ;;  %v7831_v31 = vld [vmem:[#allocation12 + $0x400] ss:$28 sps:$4 sm:$0xff]  }
 0x466   :  { %5914 = vmatpush1.bf16.msra.mxu1 %v7771_v5  ;;  %v7838_v5 = vld [vmem:[#allocation12 + $0x43c] ss:$28 sps:$4 sm:$0xff]  }
 0x467   :  { %7079 = vmatpush3.bf16.msra.mxu0 %v7775_v7  ;;  %5915 = vmatprep.subr.bf16.mxu1 %v7778_v8  ;;  %v7839_v7 = vld [vmem:[#allocation12 + $0x980] ss:$28 sps:$4 sm:$0xff]   ;;  %v7836_v8 = vld [vmem:[#allocation12 + $0x438] ss:$28 sps:$4 sm:$0xff]  }
 0x468   :  { %7080 = vmatprep.subr.bf16.mxu0 %v7779_v10  ;;  %v7843_v10 = vld [vmem:[#allocation12 + $0x474] ss:$28 sps:$4 sm:$0xff]  }
 0x46a   :  { %5916 = vmatpush1.bf16.msra.mxu1 %v7776_v12  ;;  %v7844_v12 = vld [vmem:[#allocation12 + $0x9b8] ss:$28 sps:$4 sm:$0xff]  }
 0x46b   :  { %7081 = vmatpush3.bf16.msra.mxu0 %v7780_v29  ;;  %5917 = vmatprep.subr.bf16.mxu1 %v7783_v18  ;;  %v7841_v29 = vld [vmem:[#allocation12 + $0x470] ss:$28 sps:$4 sm:$0xff]   ;;  %v7845_v18 = vld [vmem:[#allocation12 + $0x7f8] ss:$28 sps:$4 sm:$0xff]  }
 0x46c   :  { %7088 = vmatprep.subr.bf16.mxu0 %v7784_v21  ;;  %v7848_v21 = vld [vmem:[#allocation12 + $0x4ac] ss:$28 sps:$4 sm:$0xff]  }
 0x46e   :  { %6098 = vmatmul.mubr.bf16.vlgmr.msra.gmra.mrb[24].mxu0 %v8458_v25  ;;  %5918 = vmatpush1.bf16.msra.mxu1 %v7781_v23  ;;  %v7849_v23 = vld [vmem:[#allocation12 + $0x9f0] ss:$28 sps:$4 sm:$0xff]  }
 0x46f   :  { %7089 = vmatpush3.bf16.msra.mxu0 %v7785_v24  ;;  %6137 = vmatprep.mubr.bf16.mxu0 %v8462_v13  ;;  %v7846_v24 = vld [vmem:[#allocation12 + $0x4a8] ss:$28 sps:$4 sm:$0xff]  }
 0x470   :  { %5919 = vmatprep.subr.bf16.mxu1 %v7788_v26  ;;  %7090 = vmatprep.subr.bf16.mxu0 %v7789_v27  ;;  %v7850_v26 = vld [vmem:[#allocation12 + $0x830] ss:$28 sps:$4 sm:$0xff]   ;;  %v7853_v27 = vld [vmem:[#allocation12 + $0x4e4] ss:$28 sps:$4 sm:$0xff]  }
 0x472   :  { %5920 = vmatpush1.bf16.msra.mxu1 %v7786_v14  ;;  %v7854_v14 = vld [vmem:[#allocation12 + $0xa28] ss:$28 sps:$4 sm:$0xff]  }
 0x473   :  { %7091 = vmatpush3.bf16.msra.mxu0 %v7790_v15  ;;  %5921 = vmatprep.subr.bf16.mxu1 %v7793_v17  ;;  %v7851_v15 = vld [vmem:[#allocation12 + $0x4e0] ss:$28 sps:$4 sm:$0xff]   ;;  %v7855_v17 = vld [vmem:[#allocation12 + $0x868] ss:$28 sps:$4 sm:$0xff]  }
 0x474   :  { %7092 = vmatprep.subr.bf16.mxu0 %v7794_v19  ;;  %v7858_v19 = vld [vmem:[#allocation12 + $0x51c] ss:$28 sps:$4 sm:$0xff]  }
 0x476   :  { %5922 = vmatpush1.bf16.msra.mxu1 %v7791_v20  ;;  %v7859_v20 = vld [vmem:[#allocation12 + $0xa60] ss:$28 sps:$4 sm:$0xff]  }
 0x477   :  { %7093 = vmatpush3.bf16.msra.mxu0 %v7795_v28  ;;  %5923 = vmatprep.subr.bf16.mxu1 %v7798_v61  ;;  %v7856_v28 = vld [vmem:[#allocation12 + $0x518] ss:$28 sps:$4 sm:$0xff]   ;;  %v7860_v61 = vld [vmem:[#allocation12 + $0x8a0] ss:$28 sps:$4 sm:$0xff]  }
 0x478   :  { %7094 = vmatprep.subr.bf16.mxu0 %v7799_v30  ;;  %v7863_v30 = vld [vmem:[#allocation12 + $0x554] ss:$28 sps:$4 sm:$0xff]  }
 0x47a   :  { %5924 = vmatpush1.bf16.msra.mxu1 %v7796_v32  ;;  %v7864_v32 = vld [vmem:[#allocation12 + $0xc58] ss:$28 sps:$4 sm:$0xff]  }
 0x47b   :  { %7095 = vmatpush3.bf16.msra.mxu0 %v7800_v35  ;;  %5925 = vmatprep.subr.bf16.mxu1 %v7803_v36  ;;  %v7861_v35 = vld [vmem:[#allocation12 + $0x550] ss:$28 sps:$4 sm:$0xff]   ;;  %v7865_v36 = vld [vmem:[#allocation12 + $0xa98] ss:$28 sps:$4 sm:$0xff]  }
 0x47c   :  { %7096 = vmatprep.subr.bf16.mxu0 %v7804_v53  ;;  %v7868_v53 = vld [vmem:[#allocation12 + $0x58c] ss:$28 sps:$4 sm:$0xff]  }
 0x47e   :  { %5926 = vmatpush1.bf16.msra.mxu1 %v7801_v38  ;;  %v7869_v38 = vld [vmem:[#allocation12 + $0xc90] ss:$28 sps:$4 sm:$0xff]  }
 0x47f   :  { %7097 = vmatpush3.bf16.msra.mxu0 %v7805_v39  ;;  %5927 = vmatprep.subr.bf16.mxu1 %v7808_v43  ;;  %v7866_v39 = vld [vmem:[#allocation12 + $0x588] ss:$28 sps:$4 sm:$0xff]   ;;  %v7870_v43 = vld [vmem:[#allocation12 + $0xad0] ss:$28 sps:$4 sm:$0xff]  }
 0x480   :  { %7098 = vmatprep.subr.bf16.mxu0 %v7809_v44  ;;  %v7873_v44 = vld [vmem:[#allocation12 + $0x5c4] ss:$28 sps:$4 sm:$0xff]  }
 0x482   :  { %5928 = vmatpush1.bf16.msra.mxu1 %v7806_v45  ;;  %v7874_v45 = vld [vmem:[#allocation12 + $0xcc8] ss:$28 sps:$4 sm:$0xff]  }
 0x483   :  { %7099 = vmatpush3.bf16.msra.mxu0 %v7810_v46  ;;  %5929 = vmatprep.subr.bf16.mxu1 %v7813_v47  ;;  %v7871_v46 = vld [vmem:[#allocation12 + $0x5c0] ss:$28 sps:$4 sm:$0xff]   ;;  %v7875_v47 = vld [vmem:[#allocation12 + $0xb08] ss:$28 sps:$4 sm:$0xff]  }
 0x484   :  { %7100 = vmatprep.subr.bf16.mxu0 %v7814_v48  ;;  %v7878_v48 = vld [vmem:[#allocation12 + $0x5fc] ss:$28 sps:$4 sm:$0xff]  }
 0x486   :  { %5930 = vmatpush1.bf16.msra.mxu1 %v7811_v50  ;;  %v7879_v50 = vld [vmem:[#allocation12 + $0xd00] ss:$28 sps:$4 sm:$0xff]  }
 0x487   :  { %7101 = vmatpush3.bf16.msra.mxu0 %v7815_v54  ;;  %5931 = vmatprep.subr.bf16.mxu1 %v7818_v55  ;;  %v7876_v54 = vld [vmem:[#allocation12 + $0x5f8] ss:$28 sps:$4 sm:$0xff]   ;;  %v7880_v55 = vld [vmem:[#allocation12 + $0xb40] ss:$28 sps:$4 sm:$0xff]  }
 0x488   :  { %7102 = vmatprep.subr.bf16.mxu0 %v7819_v56  ;;  %v7883_v56 = vld [vmem:[#allocation12 + $0x634] ss:$28 sps:$4 sm:$0xff]  }
 0x48a   :  { %5932 = vmatpush1.bf16.msra.mxu1 %v7816_v57  ;;  %v7884_v57 = vld [vmem:[#allocation12 + $0xd38] ss:$28 sps:$4 sm:$0xff]  }
 0x48b   :  { %7103 = vmatpush3.bf16.msra.mxu0 %v7820_v58  ;;  %5942 = vmatprep.subr.bf16.mxu1 %v7823_v4  ;;  %v7881_v58 = vld [vmem:[#allocation12 + $0x630] ss:$28 sps:$4 sm:$0xff]   ;;  %v7885_v4 = vld [vmem:[#allocation12 + $0xb78] ss:$28 sps:$4 sm:$0xff]  }
 0x48c   :  { %7110 = vmatprep.subr.bf16.mxu0 %v7824_v59  ;;  %v7888_v59 = vld [vmem:[#allocation12 + $0x66c] ss:$28 sps:$4 sm:$0xff]  }
 0x48d   :  { %5934 = vmatmul.mubr.bf16.vlgmr.msra.gmra.mrb[12].mxu1 %v8458_v25  ;;  %v7835_v25 = vld [vmem:[#allocation12 + $0x788] ss:$28 sps:$4 sm:$0xff]  }
 0x48e   :  { %6138 = vmatmul.mubr.bf16.vlgmr.msra.gmra.mrb[28].mxu0 %v8471_v37  ;;  %5943 = vmatpush1.bf16.msra.mxu1 %v7821_v22  ;;  %v7889_v22 = vld [vmem:[#allocation12 + $0xd70] ss:$28 sps:$4 sm:$0xff]  }
 0x48f   :  { %5974 = vmatprep.mubr.bf16.mxu1 %v8462_v13  ;;  %7111 = vmatpush3.bf16.msra.mxu0 %v7825_v60  ;;  %v7840_v13 = vld [vmem:[#allocation12 + $0x7c0] ss:$28 sps:$4 sm:$0xff]   ;;  %v7886_v60 = vld [vmem:[#allocation12 + $0x668] ss:$28 sps:$4 sm:$0xff]  }
 0x490   :  { %6177 = vmatprep.mubr.bf16.mxu0 %v8487_v11  ;;  %5944 = vmatprep.subr.bf16.mxu1 %v7828_v62  ;;  %v7890_v62 = vld [vmem:[#allocation12 + $0xbb0] ss:$28 sps:$4 sm:$0xff]  }
 0x491   :  { %7112 = vmatprep.subr.bf16.mxu0 %v7829_v63  ;;  %v7893_v63 = vld [vmem:[#allocation12 + $0x6a4] ss:$28 sps:$4 sm:$0xff]  }
 0x492   :  { %5945 = vmatpush1.bf16.msra.mxu1 %v7826_v0  ;;  %v7894_v0 = vld [vmem:[#allocation12 + $0xda8] ss:$28 sps:$4 sm:$0xff]  }
 0x493   :  { %7113 = vmatpush3.bf16.msra.mxu0 %v7830_v1  ;;  %5946 = vmatprep.subr.bf16.mxu1 %v7833_v3  ;;  %v7891_v1 = vld [vmem:[#allocation12 + $0x6a0] ss:$28 sps:$4 sm:$0xff]   ;;  %v7895_v3 = vld [vmem:[#allocation12 + $0xbe8] ss:$28 sps:$4 sm:$0xff]  }
 0x494   :  { %7114 = vmatprep.subr.bf16.mxu0 %v7834_v6  ;;  %v7898_v6 = vld [vmem:[#allocation12 + $0x6dc] ss:$28 sps:$4 sm:$0xff]  }
 0x496   :  { %5947 = vmatpush1.bf16.msra.mxu1 %v7831_v31  ;;  %v7899_v31 = vld [vmem:[#allocation12 + $0xde0] ss:$28 sps:$4 sm:$0xff]  }
 0x497   :  { %7115 = vmatpush3.bf16.msra.mxu0 %v7835_v25  ;;  %5948 = vmatprep.subr.bf16.mxu1 %v7838_v5  ;;  %v7896_v25 = vld [vmem:[#allocation12 + $0x6d8] ss:$28 sps:$4 sm:$0xff]   ;;  %v7900_v5 = vld [vmem:[#allocation12 + $0xc20] ss:$28 sps:$4 sm:$0xff]  }
 0x498   :  { %7116 = vmatprep.subr.bf16.mxu0 %v7839_v7  ;;  %v7903_v7 = vld [vmem:[#allocation12 + $0x714] ss:$28 sps:$4 sm:$0xff]  }
 0x49a   :  { %5949 = vmatpush1.bf16.msra.mxu1 %v7836_v8  ;;  %v7901_v8 = vld [vmem:[#allocation12 + $0x710] ss:$28 sps:$4 sm:$0xff]  }
 0x49b   :  { %7117 = vmatpush3.bf16.msra.mxu0 %v7840_v13  ;;  %5950 = vmatprep.subr.bf16.mxu1 %v7843_v10  ;;  %v7906_v13 = vld [vmem:[#allocation12 + $0x74c] ss:$28 sps:$4 sm:$0xff]  }
 0x49c   :  { %7118 = vmatprep.subr.bf16.mxu0 %v7844_v12  ;;  %v7904_v10 = vld [vmem:[#allocation12 + $0x748] ss:$28 sps:$4 sm:$0xff]  }
 0x49d   :  { %v7909_v12 = vld [vmem:[#allocation12 + $0x784] ss:$28 sps:$4 sm:$0xff]  }
 0x49e   :  { %5951 = vmatpush1.bf16.msra.mxu1 %v7841_v29  ;;  %v7907_v29 = vld [vmem:[#allocation12 + $0x780] ss:$28 sps:$4 sm:$0xff]  }
 0x49f   :  { %7119 = vmatpush3.bf16.msra.mxu0 %v7845_v18  ;;  %5952 = vmatprep.subr.bf16.mxu1 %v7848_v21  ;;  %v7912_v18 = vld [vmem:[#allocation12 + $0x7bc] ss:$28 sps:$4 sm:$0xff]  }
 0x4a0   :  { %7120 = vmatprep.subr.bf16.mxu0 %v7849_v23  ;;  %v7910_v21 = vld [vmem:[#allocation12 + $0x7b8] ss:$28 sps:$4 sm:$0xff]  }
 0x4a1   :  { %v7915_v23 = vld [vmem:[#allocation12 + $0x7f4] ss:$28 sps:$4 sm:$0xff]  }
 0x4a2   :  { %5953 = vmatpush1.bf16.msra.mxu1 %v7846_v24  ;;  %v7913_v24 = vld [vmem:[#allocation12 + $0x7f0] ss:$28 sps:$4 sm:$0xff]  }
 0x4a3   :  { %7121 = vmatpush3.bf16.msra.mxu0 %v7850_v26  ;;  %5954 = vmatprep.subr.bf16.mxu1 %v7853_v27  ;;  %v7916_v26 = vld [vmem:[#allocation12 + $0x828] ss:$28 sps:$4 sm:$0xff]  }
 0x4a4   :  { %7122 = vmatprep.subr.bf16.mxu0 %v7854_v14  ;;  %v7921_v27 = vld [vmem:[#allocation12 + $0x864] ss:$28 sps:$4 sm:$0xff]   ;;  %v7924_v14 = vld [vmem:[#allocation12 + $0x89c] ss:$28 sps:$4 sm:$0xff]  }
 0x4a6   :  { %5955 = vmatpush1.bf16.msra.mxu1 %v7851_v15  ;;  %v7922_v15 = vld [vmem:[#allocation12 + $0x898] ss:$28 sps:$4 sm:$0xff]  }
 0x4a7   :  { %7123 = vmatpush3.bf16.msra.mxu0 %v7855_v17  ;;  %5956 = vmatprep.subr.bf16.mxu1 %v7858_v19  ;;  %v7927_v17 = vld [vmem:[#allocation12 + $0x8d4] ss:$28 sps:$4 sm:$0xff]  }
 0x4a8   :  { %7124 = vmatprep.subr.bf16.mxu0 %v7859_v20  ;;  %v7925_v19 = vld [vmem:[#allocation12 + $0x8d0] ss:$28 sps:$4 sm:$0xff]  }
 0x4a9   :  { %v7930_v20 = vld [vmem:[#allocation12 + $0x90c] ss:$28 sps:$4 sm:$0xff]  }
 0x4aa   :  { %5957 = vmatpush1.bf16.msra.mxu1 %v7856_v28  ;;  %v7928_v28 = vld [vmem:[#allocation12 + $0x908] ss:$28 sps:$4 sm:$0xff]  }
 0x4ab   :  { %7125 = vmatpush3.bf16.msra.mxu0 %v7860_v61  ;;  %5958 = vmatprep.subr.bf16.mxu1 %v7863_v30  ;;  %v7933_v61 = vld [vmem:[#allocation12 + $0x944] ss:$28 sps:$4 sm:$0xff]  }
 0x4ac   :  { %7132 = vmatprep.subr.bf16.mxu0 %v7864_v32  ;;  %v7931_v30 = vld [vmem:[#allocation12 + $0x940] ss:$28 sps:$4 sm:$0xff]  }
 0x4ad   :  { %v7936_v32 = vld [vmem:[#allocation12 + $0x97c] ss:$28 sps:$4 sm:$0xff]  }
 0x4ae   :  { %6178 = vmatmul.mubr.bf16.vlgmr.msra.gmra.mrb[32].mxu0 %v8489_v16  ;;  %5959 = vmatpush1.bf16.msra.mxu1 %v7861_v35  ;;  %v7934_v35 = vld [vmem:[#allocation12 + $0x978] ss:$28 sps:$4 sm:$0xff]  }
 0x4af   :  { %7133 = vmatpush3.bf16.msra.mxu0 %v7865_v36  ;;  %6217 = vmatprep.mubr.bf16.mxu0 %v8493_v51  ;;  %v7939_v36 = vld [vmem:[#allocation12 + $0x9b4] ss:$28 sps:$4 sm:$0xff]  }
 0x4b0   :  { %5960 = vmatprep.subr.bf16.mxu1 %v7868_v53  ;;  %7134 = vmatprep.subr.bf16.mxu0 %v7869_v38  ;;  %v7937_v53 = vld [vmem:[#allocation12 + $0x9b0] ss:$28 sps:$4 sm:$0xff]  }
 0x4b1   :  { %v7942_v38 = vld [vmem:[#allocation12 + $0x9ec] ss:$28 sps:$4 sm:$0xff]  }
 0x4b2   :  { %5961 = vmatpush1.bf16.msra.mxu1 %v7866_v39  ;;  %v7940_v39 = vld [vmem:[#allocation12 + $0x9e8] ss:$28 sps:$4 sm:$0xff]  }
 0x4b3   :  { %7135 = vmatpush3.bf16.msra.mxu0 %v7870_v43  ;;  %5962 = vmatprep.subr.bf16.mxu1 %v7873_v44  ;;  %v7945_v43 = vld [vmem:[#allocation12 + $0xa24] ss:$28 sps:$4 sm:$0xff]  }
 0x4b4   :  { %7136 = vmatprep.subr.bf16.mxu0 %v7874_v45  ;;  %v7943_v44 = vld [vmem:[#allocation12 + $0xa20] ss:$28 sps:$4 sm:$0xff]  }
 0x4b5   :  { %v7948_v45 = vld [vmem:[#allocation12 + $0xa5c] ss:$28 sps:$4 sm:$0xff]  }
 0x4b6   :  { %5963 = vmatpush1.bf16.msra.mxu1 %v7871_v46  ;;  %v7946_v46 = vld [vmem:[#allocation12 + $0xa58] ss:$28 sps:$4 sm:$0xff]  }
 0x4b7   :  { %7137 = vmatpush3.bf16.msra.mxu0 %v7875_v47  ;;  %5964 = vmatprep.subr.bf16.mxu1 %v7878_v48  ;;  %v7951_v47 = vld [vmem:[#allocation12 + $0xa94] ss:$28 sps:$4 sm:$0xff]  }
 0x4b8   :  { %7138 = vmatprep.subr.bf16.mxu0 %v7879_v50  ;;  %v7949_v48 = vld [vmem:[#allocation12 + $0xa90] ss:$28 sps:$4 sm:$0xff]  }
 0x4b9   :  { %v7954_v50 = vld [vmem:[#allocation12 + $0xacc] ss:$28 sps:$4 sm:$0xff]  }
 0x4ba   :  { %5965 = vmatpush1.bf16.msra.mxu1 %v7876_v54  ;;  %v7952_v54 = vld [vmem:[#allocation12 + $0xac8] ss:$28 sps:$4 sm:$0xff]  }
 0x4bb   :  { %7139 = vmatpush3.bf16.msra.mxu0 %v7880_v55  ;;  %5966 = vmatprep.subr.bf16.mxu1 %v7883_v56  ;;  %v7957_v55 = vld [vmem:[#allocation12 + $0xb04] ss:$28 sps:$4 sm:$0xff]  }
 0x4bc   :  { %7140 = vmatprep.subr.bf16.mxu0 %v7884_v57  ;;  %v7955_v56 = vld [vmem:[#allocation12 + $0xb00] ss:$28 sps:$4 sm:$0xff]  }
 0x4bd   :  { %v7960_v57 = vld [vmem:[#allocation12 + $0xb3c] ss:$28 sps:$4 sm:$0xff]  }
 0x4be   :  { %5967 = vmatpush1.bf16.msra.mxu1 %v7881_v58  ;;  %v7958_v58 = vld [vmem:[#allocation12 + $0xb38] ss:$28 sps:$4 sm:$0xff]  }
 0x4bf   :  { %7141 = vmatpush3.bf16.msra.mxu0 %v7885_v4  ;;  %5968 = vmatprep.subr.bf16.mxu1 %v7888_v59  ;;  %v7963_v4 = vld [vmem:[#allocation12 + $0xb74] ss:$28 sps:$4 sm:$0xff]  }
 0x4c0   :  { %7142 = vmatprep.subr.bf16.mxu0 %v7889_v22  ;;  %v7961_v59 = vld [vmem:[#allocation12 + $0xb70] ss:$28 sps:$4 sm:$0xff]   ;;  %v8523_v22 = vld [vmem:[#allocation13] sm:$0xff] }
 0x4c2   :  { %5969 = vmatpush1.bf16.msra.mxu1 %v7886_v60  ;;  %v3245_v60 = vrot.slane %v8523_v22, %v8421_v49 }
 0x4c3   :  { %7143 = vmatpush3.bf16.msra.mxu0 %v7890_v62  ;;  %5970 = vmatprep.subr.bf16.mxu1 %v7893_v63  ;;  %v3241_v62 = vrot.slane %v8523_v22, %v8376_v42  ;;  %v3249_v63 = vrot.slane %v8523_v22, %v8424_v52  ;;  %v7972_v52 = vld [vmem:[#allocation12 + $0xc1c] ss:$28 sps:$4 sm:$0xff]  }
 0x4c4   :  { %7144 = vmatprep.subr.bf16.mxu0 %v7894_v0  ;;  %v7964_v0 = vld [vmem:[#allocation12 + $0xba8] ss:$28 sps:$4 sm:$0xff]  }
 0x4c6   :  { %5971 = vmatpush1.bf16.msra.mxu1 %v7891_v1  ;;  %v7969_v1 = vld [vmem:[#allocation12 + $0xbe4] ss:$28 sps:$4 sm:$0xff]  }
 0x4c7   :  { %7145 = vmatpush3.bf16.msra.mxu0 %v7895_v3  ;;  %5972 = vmatprep.subr.bf16.mxu1 %v7898_v6 }
 0x4c8   :  { %7146 = vmatprep.subr.bf16.mxu0 %v7899_v31 }
 0x4ca   :  { %5973 = vmatpush1.bf16.msra.mxu1 %v7896_v25 }
 0x4cb   :  { %7147 = vmatpush3.bf16.msra.mxu0 %v7900_v5  ;;  %5983 = vmatprep.subr.bf16.mxu1 %v7903_v7 }
 0x4cd   :  { %5975 = vmatmul.mubr.bf16.vlgmr.msra.gmra.mrb[12].mxu1 %v8471_v37  ;;  %v7918_v37 = vld [vmem:[#allocation12 + $0x82c] ss:$28 sps:$4 sm:$0xff]  }
 0x4ce   :  { %6218 = vmatmul.mubr.bf16.vlgmr.msra.gmra.mrb[36].mxu0 %v8504_v41  ;;  %5984 = vmatpush1.bf16.msra.mxu1 %v7901_v8 }
 0x4cf   :  { %6015 = vmatprep.mubr.bf16.mxu1 %v8487_v11  ;;  %5985 = vmatprep.subr.bf16.mxu1 %v7906_v13  ;;  %v7919_v11 = vld [vmem:[#allocation12 + $0x860] ss:$28 sps:$4 sm:$0xff]  }
 0x4d2   :  { %5986 = vmatpush1.bf16.msra.mxu1 %v7904_v10  ;;  %v7967_v10 = vld [vmem:[#allocation12 + $0xbe0] ss:$28 sps:$4 sm:$0xff]  }
 0x4d3   :  { %5987 = vmatprep.subr.bf16.mxu1 %v7909_v12 }
 0x4d6   :  { %5988 = vmatpush1.bf16.msra.mxu1 %v7907_v29  ;;  %v7970_v29 = vld [vmem:[#allocation12 + $0xc18] ss:$28 sps:$4 sm:$0xff]  }
 0x4d7   :  { %5989 = vmatprep.subr.bf16.mxu1 %v7912_v18  ;;  %v7975_v18 = vld [vmem:[#allocation12 + $0xc54] ss:$28 sps:$4 sm:$0xff]  }
 0x4da   :  { %5990 = vmatpush1.bf16.msra.mxu1 %v7910_v21  ;;  %v7973_v21 = vld [vmem:[#allocation12 + $0xc50] ss:$28 sps:$4 sm:$0xff]  }
 0x4db   :  { %5991 = vmatprep.subr.bf16.mxu1 %v7915_v23  ;;  %v7978_v23 = vld [vmem:[#allocation12 + $0xc8c] ss:$28 sps:$4 sm:$0xff]  }
 0x4de   :  { %5992 = vmatpush1.bf16.msra.mxu1 %v7913_v24 }
 0x4df   :  { %5993 = vmatprep.subr.bf16.mxu1 %v7918_v37 }
 0x4e2   :  { %5994 = vmatpush1.bf16.msra.mxu1 %v7916_v26  ;;  %v7976_v26 = vld [vmem:[#allocation12 + $0xc88] ss:$28 sps:$4 sm:$0xff]  }
 0x4e3   :  { %5995 = vmatprep.subr.bf16.mxu1 %v7921_v27 }
 0x4e6   :  { %5996 = vmatpush1.bf16.msra.mxu1 %v7919_v11  ;;  %v7981_v11 = vld [vmem:[#allocation12 + $0xcc4] ss:$28 sps:$4 sm:$0xff]  }
 0x4e7   :  { %5997 = vmatprep.subr.bf16.mxu1 %v7924_v14 }
 0x4ea   :  { %5998 = vmatpush1.bf16.msra.mxu1 %v7922_v15 }
 0x4eb   :  { %5999 = vmatprep.subr.bf16.mxu1 %v7927_v17 }
 0x4ee   :  { %6000 = vmatpush1.bf16.msra.mxu1 %v7925_v19  ;;  %v7979_v19 = vld [vmem:[#allocation12 + $0xcc0] ss:$28 sps:$4 sm:$0xff]  }
 0x4ef   :  { %6001 = vmatprep.subr.bf16.mxu1 %v7930_v20  ;;  %v7984_v20 = vld [vmem:[#allocation12 + $0xcfc] ss:$28 sps:$4 sm:$0xff]  }
 0x4f2   :  { %6002 = vmatpush1.bf16.msra.mxu1 %v7928_v28  ;;  %v7982_v28 = vld [vmem:[#allocation12 + $0xcf8] ss:$28 sps:$4 sm:$0xff]  }
 0x4f3   :  { %6003 = vmatprep.subr.bf16.mxu1 %v7933_v61  ;;  %v7987_v61 = vld [vmem:[#allocation12 + $0xd34] ss:$28 sps:$4 sm:$0xff]  }
 0x4f6   :  { %6004 = vmatpush1.bf16.msra.mxu1 %v7931_v30  ;;  %v7985_v30 = vld [vmem:[#allocation12 + $0xd30] ss:$28 sps:$4 sm:$0xff]  }
 0x4f7   :  { %6005 = vmatprep.subr.bf16.mxu1 %v7936_v32  ;;  %v7990_v32 = vld [vmem:[#allocation12 + $0xd6c] ss:$28 sps:$4 sm:$0xff]  }
 0x4fa   :  { %6006 = vmatpush1.bf16.msra.mxu1 %v7934_v35  ;;  %v7988_v35 = vld [vmem:[#allocation12 + $0xd68] ss:$28 sps:$4 sm:$0xff]  }
 0x4fb   :  { %6007 = vmatprep.subr.bf16.mxu1 %v7939_v36  ;;  %v7993_v36 = vld [vmem:[#allocation12 + $0xda4] ss:$28 sps:$4 sm:$0xff]  }
 0x4fe   :  { %6008 = vmatpush1.bf16.msra.mxu1 %v7937_v53 }
 0x4ff   :  { %6009 = vmatprep.subr.bf16.mxu1 %v7942_v38 }
 0x502   :  { %6010 = vmatpush1.bf16.msra.mxu1 %v7940_v39  ;;  %v7991_v39 = vld [vmem:[#allocation12 + $0xda0] ss:$28 sps:$4 sm:$0xff]  }
 0x503   :  { %6011 = vmatprep.subr.bf16.mxu1 %v7945_v43 }
 0x506   :  { %6012 = vmatpush1.bf16.msra.mxu1 %v7943_v44 }
 0x507   :  { %6013 = vmatprep.subr.bf16.mxu1 %v7948_v45  ;;  %v7996_v45 = vld [vmem:[#allocation12 + $0xddc] ss:$28 sps:$4 sm:$0xff]  }
 0x50a   :  { %6014 = vmatpush1.bf16.msra.mxu1 %v7946_v46 }
 0x50b   :  { %6024 = vmatprep.subr.bf16.mxu1 %v7951_v47  ;;  %v7994_v47 = vld [vmem:[#allocation12 + $0xdd8] ss:$28 sps:$4 sm:$0xff]  }
 0x50d   :  { %6016 = vmatmul.mubr.bf16.vlgmr.msra.gmra.mrb[12].mxu1 %v8489_v16  ;;  %v7966_v16 = vld [vmem:[#allocation12 + $0xbac] ss:$28 sps:$4 sm:$0xff]  }
 0x50e   :  { %6025 = vmatpush1.bf16.msra.mxu1 %v7949_v48  ;;  %6056 = vmatprep.mubr.bf16.mxu1 %v8493_v51  ;;  %v3237_v51 = vrot.slane %v8523_v22, %v8373_v40  ;;  %v3261_v48 = vrot.slane %v8523_v22, %v1074_v9 }
 0x50f   :  { %6026 = vmatprep.subr.bf16.mxu1 %v7954_v50 }
 0x512   :  { %6027 = vmatpush1.bf16.msra.mxu1 %v7952_v54 }
 0x513   :  { %6028 = vmatprep.subr.bf16.mxu1 %v7957_v55 }
 0x516   :  { %6029 = vmatpush1.bf16.msra.mxu1 %v7955_v56 }
 0x517   :  { %6030 = vmatprep.subr.bf16.mxu1 %v7960_v57 }
 0x51a   :  { %6031 = vmatpush1.bf16.msra.mxu1 %v7958_v58 }
 0x51b   :  { %6032 = vmatprep.subr.bf16.mxu1 %v7963_v4 }
 0x51e   :  { %6033 = vmatpush1.bf16.msra.mxu1 %v7961_v59 }
 0x51f   :  { %6034 = vmatprep.subr.bf16.mxu1 %v7966_v16 }
 0x520   :  { %v5730_v3 = vpop.f32.mrb[8].mxu1  ;;  %v5894_v6 = vpop.f32.mrb[20].mxu0 }
 0x521   :  { %v7162_v31 = vadd.f32 %v5730_v3, %v3237_v51  ;;  %v7164_v25 = vadd.f32 %v5894_v6, %v3245_v60  ;;  %v5732_v5 = vpop.f32.mrb[9].mxu1  ;;  %v5896_v7 = vpop.f32.mrb[21].mxu0 }
 0x522   :  { %v7163_v40 = vadd.f32 %v5732_v5, %v3241_v62  ;;  %v7165_v8 = vadd.f32 %v5896_v7, %v3249_v63  ;;  %v5734_v13 = vpop.f32.mrb[10].mxu1  ;;  %v5898_v49 = vpop.f32.mrb[22].mxu0  ;;  %6035 = vmatpush1.bf16.msra.mxu1 %v7964_v0  ;;  %v3253_v5 = vrot.slane %v8523_v22, %v1066_v2  ;;  %v3257_v7 = vrot.slane %v8523_v22, %v1070_v33 }
 0x523   :  { %7997 = vtanh.f32 %v7162_v31  ;;  %v5735_v42 = vpop.f32.mrb[11].mxu1  ;;  %v5899_v12 = vpop.f32.mrb[23].mxu0  ;;  %6036 = vmatprep.subr.bf16.mxu1 %v7969_v1 }
 0x524   :  { %7999 = vtanh.f32 %v7164_v25 }
 0x525   :  { %8001 = vtanh.f32 %v7163_v40 }
 0x526   :  { %8003 = vtanh.f32 %v7165_v8  ;;  %6037 = vmatpush1.bf16.msra.mxu1 %v7967_v10 }
 0x527   :  { %6038 = vmatprep.subr.bf16.mxu1 %v7972_v52 }
 0x52a   :  { %6039 = vmatpush1.bf16.msra.mxu1 %v7970_v29 }
 0x52b   :  { %6040 = vmatprep.subr.bf16.mxu1 %v7975_v18 }
 0x52d   :  { %v7998_v24 = vpop.eup %7997 }
 0x52e   :  { %v8000_v37 = vpop.eup %7999  ;;  %6041 = vmatpush1.bf16.msra.mxu1 %v7973_v21 }
 0x52f   :  { %v8002_v27 = vpop.eup %8001  ;;  %6042 = vmatprep.subr.bf16.mxu1 %v7978_v23 }
 0x530   :  { %v8004_v14 = vpop.eup %8003  ;;  %v7062_v15 = vpack.c.bf16 %v8002_v27, %v7998_v24 }
 0x531   :  { %v7063_v17 = vpack.c.bf16 %v8004_v14, %v8000_v37 }
 0x532   :  { %6261 = vst [vmem:[%s8564_s9] sm:$0xff] %v7062_v15  ;;  %6043 = vmatpush1.bf16.msra.mxu1 %v7976_v26 }
 0x533   :  { %6262 = vst [vmem:[%s8564_s9 + $0x8] sm:$0xff] %v7063_v17  ;;  %6044 = vmatprep.subr.bf16.mxu1 %v7981_v11 }
 0x536   :  { %6045 = vmatpush1.bf16.msra.mxu1 %v7979_v19 }
 0x537   :  { %6046 = vmatprep.subr.bf16.mxu1 %v7984_v20 }
 0x53a   :  { %6047 = vmatpush1.bf16.msra.mxu1 %v7982_v28 }
 0x53b   :  { %6048 = vmatprep.subr.bf16.mxu1 %v7987_v61 }
 0x53e   :  { %6049 = vmatpush1.bf16.msra.mxu1 %v7985_v30 }
 0x53f   :  { %6050 = vmatprep.subr.bf16.mxu1 %v7990_v32 }
 0x541   :  { %v7082_v53 = vpop.f32.mrb[24].mxu0 }
 0x542   :  { %v7083_v38 = vpop.f32.mrb[25].mxu0  ;;  %6051 = vmatpush1.bf16.msra.mxu1 %v7988_v35 }
 0x543   :  { %v7084_v43 = vadd.f32 %v7083_v38, %v7082_v53  ;;  %v7085_v44 = vpop.f32.mrb[26].mxu0  ;;  %6052 = vmatprep.subr.bf16.mxu1 %v7993_v36 }
 0x544   :  { %v7086_v46 = vpop.f32.mrb[27].mxu0 }
 0x545   :  { %v6100_v55 = vadd.f32 %v7084_v43, %v3261_v48 }
 0x546   :  { %6053 = vmatpush1.bf16.msra.mxu1 %v7991_v39 }
 0x547   :  { %6054 = vmatprep.subr.bf16.mxu1 %v7996_v45 }
 0x54a   :  { %6055 = vmatpush1.bf16.msra.mxu1 %v7994_v47 }
 0x54d   :  { %6057 = vmatmul.mubr.bf16.vlgmr.msra.gmra.mrb[12].mxu1 %v8504_v41 }
 0x561   :  { %v7104_v50 = vpop.f32.mrb[28].mxu0 }
 0x562   :  { %v7105_v54 = vpop.f32.mrb[29].mxu0 }
 0x563   :  { %v7106_v56 = vadd.f32 %v7105_v54, %v7104_v50  ;;  %v7107_v57 = vpop.f32.mrb[30].mxu0 }
 0x564   :  { %v7108_v58 = vpop.f32.mrb[31].mxu0 }
 0x565   :  { %v6140_v4 = vadd.f32 %v7106_v56, %v6100_v55 }
 0x581   :  { %v7126_v59 = vpop.f32.mrb[32].mxu0 }
 0x582   :  { %v7127_v16 = vpop.f32.mrb[33].mxu0 }
 0x583   :  { %v7128_v51 = vadd.f32 %v7127_v16, %v7126_v59  ;;  %v7129_v60 = vpop.f32.mrb[34].mxu0 }
 0x584   :  { %v7130_v62 = vpop.f32.mrb[35].mxu0 }
 0x585   :  { %v6180_v63 = vadd.f32 %v7128_v51, %v6140_v4 }
 0x5a1   :  { %v7148_v0 = vpop.f32.mrb[36].mxu0 }
 0x5a2   :  { %v7149_v1 = vpop.f32.mrb[37].mxu0 }
 0x5a3   :  { %v7150_v41 = vadd.f32 %v7149_v1, %v7148_v0  ;;  %v7151_v3 = vpop.f32.mrb[38].mxu0 }
 0x5a4   :  { %v7152_v6 = vpop.f32.mrb[39].mxu0 }
 0x5a5   :  { %v6220_v31 = vadd.f32 %v7150_v41, %v6180_v63 }
 0x5a7   :  { %8005 = vtanh.f32 %v6220_v31 }
 0x5b1   :  { %v8006_v9 = vpop.eup %8005 }
 0x5b2   :  { %v7065_v25 = vpack.c.bf16 %v8006_v9, %v8006_v9 }
 0x5b4   :  { %6264 = vst [vmem:[%s8564_s9 + $0x18] sm:$0xf] %v7065_v25 }
 0x620   :  { %v6058_v40 = vpop.f32.mrb[12].mxu1 }
 0x621   :  { %v7166_v8 = vadd.f32 %v6058_v40, %v3253_v5  ;;  %v6060_v13 = vpop.f32.mrb[13].mxu1 }
 0x622   :  { %v7167_v49 = vadd.f32 %v6060_v13, %v3257_v7  ;;  %v6062_v10 = vpop.f32.mrb[14].mxu1 }
 0x623   :  { %8007 = vtanh.f32 %v7166_v8  ;;  %v6063_v42 = vpop.f32.mrb[15].mxu1 }
 0x624   :  { %8009 = vtanh.f32 %v7167_v49 }
 0x62d   :  { %v8008_v12 = vpop.eup %8007 }
 0x62e   :  { %v8010_v52 = vpop.eup %8009 }
 0x62f   :  { %v7064_v29 = vpack.c.bf16 %v8010_v52, %v8008_v12 }
 0x631   :  { %6263 = vst [vmem:[%s8564_s9 + $0x10] sm:$0xff] %v7064_v29 }
 0x632   :  { %6269 = vsyncpa [#allocation3], 1 }
 0x633   :  { %6270 = vsyncpa [#allocation5], 1 }
 0x634   :  { %6271 = vsyncpa [#allocation8], 1 }
 0x635   :  { %6272 = vsyncpa [#allocation11], 1 }
 0x636   :  { %6273 = vsyncpa [#allocation14], 1 }

</bundles_post_ra>
